<compile_context>
chip_gen: v7x
topology: tpu7x:2x2x1
jax: 0.10.0
libtpu: 0.0.40
codegen_flags: <defaults>
</compile_context>

<pallas_src>
import functools

import jax
import jax.numpy as jnp
from jax import lax
from jax.experimental import pallas as pl
from jax.experimental.pallas import tpu as pltpu


def _gate_block(load_tap, w_ref, b_ref, c_ref, hc_ref, *, TR, W, C, HID, KH, KW):
    """Shared per-(batch, row-block) compute.

    load_tap(kh, kw) -> (TR, W, C) shifted view of the padded concat([x, h]).
    w_ref  : (KH*KW*C, 4*HID)  merged conv_x/conv_h weights, tap-major,
             i/f/o output columns pre-scaled by 0.5.
    b_ref  : (1, 4*HID) f32    bx + bh, i/f/o lanes pre-scaled by 0.5.
    c_ref  : (1, TR, W, HID)   current cell state row block.
    hc_ref : (1, TR, W, 2*HID) packed [h_next | c_next] output row block.
    """
    P = TR * W
    G = 4 * HID

    # im2col: one (P, KH*KW*C) patch -> a single deep MXU contraction.
    views = []
    for kh in range(KH):
        for kw in range(KW):
            views.append(load_tap(kh, kw).reshape(P, C))
    patch = jnp.concatenate(views, axis=-1)                       # (P, KH*KW*C)

    acc = jnp.dot(patch, w_ref[...], preferred_element_type=jnp.float32)
    acc = acc + b_ref[...]                                        # (P, G) f32

    # One lane-dense tanh over all gate lanes.  sigmoid(x) = 0.5*tanh(0.5x)+0.5;
    # the 0.5 pre-scale already lives in w/b, only the affine tail remains here.
    t = jnp.tanh(acc)
    i = 0.5 * t[:, 0 * HID:1 * HID] + 0.5
    f = 0.5 * t[:, 1 * HID:2 * HID] + 0.5
    o = 0.5 * t[:, 2 * HID:3 * HID] + 0.5
    g = t[:, 3 * HID:4 * HID]

    c_cur = c_ref[0].reshape(P, HID).astype(jnp.float32)
    c_next = f * c_cur + i * g
    h_next = o * jnp.tanh(c_next)

    hc = jnp.concatenate([h_next, c_next], axis=-1)               # (P, 2*HID)
    hc_ref[0] = hc.reshape(TR, W, 2 * HID).astype(hc_ref.dtype)


def _convlstm_resident_kernel(xh_ref, w_ref, b_ref, c_ref, hc_ref,
                              *, TR, W, C, HID, KH, KW):
    """Small-image path: whole padded image block is VMEM-resident."""
    row0 = pl.multiple_of(pl.program_id(1) * TR, TR)

    def load_tap(kh, kw):
        return xh_ref[0, pl.ds(row0 + kh, TR), kw:kw + W, :]

    _gate_block(load_tap, w_ref, b_ref, c_ref, hc_ref,
                TR=TR, W=W, C=C, HID=HID, KH=KH, KW=KW)


def _convlstm_halo_kernel(xh_hbm, w_ref, b_ref, c_ref, hc_ref, xh_buf, sem,
                          *, TR, W, C, HID, KH, KW):
    """Large-image path: DMA only a TR+KH-1 row halo window of xh per step."""
    bb = pl.program_id(0)
    row0 = pl.multiple_of(pl.program_id(1) * TR, TR)
    halo = TR + KH - 1

    cp = pltpu.make_async_copy(xh_hbm.at[bb, pl.ds(row0, halo), :, :],
                               xh_buf, sem.at[0])
    cp.start()
    cp.wait()
    # TODO(synk): double-buffer this halo DMA (prefetch row block rr+1 while
    # computing rr) to overlap the copy with the MXU work.

    def load_tap(kh, kw):
        return xh_buf[kh:kh + TR, kw:kw + W, :]

    _gate_block(load_tap, w_ref, b_ref, c_ref, hc_ref,
                TR=TR, W=W, C=C, HID=HID, KH=KH, KW=KW)


def convlstm_cell_forward_nhwc(x, h, c, wx_hwio, wh_hwio, bx, bh, kernel_size,
                               *, matmul_dtype=jnp.bfloat16, force_halo=False):
    """NHWC-native ConvLSTMCell forward (use this inside a recurrent scan)."""
    KH, KW = kernel_size
    if KH % 2 != 1 or KW % 2 != 1:
        raise NotImplementedError(
            "odd kernel sizes only (PyTorch padding=k//2 changes the output "
            "size for even kernels)")
    ph, pw = KH // 2, KW // 2
    B, H, W, CIN = x.shape
    HID = h.shape[-1]
    C = CIN + HID
    G = 4 * HID

    # --- row blocking: target P = TR*W ~ 256 rows of the matmul M dim -------
    tr_target = max(1, min(H, max(1, 256 // max(1, W))))
    TR = tr_target
    while H % TR:
        TR -= 1
    H_pad = H
    if 2 * TR <= tr_target:          # degenerate divisor (e.g. prime H): pad+crop
        TR = tr_target
        H_pad = pl.cdiv(H, TR) * TR
    NB = H_pad // TR
    Hp, Wp = H_pad + 2 * ph, W + 2 * pw
    halo = TR + KH - 1

    # --- parameter prep: merge conv_x/conv_h, fold sigmoid 0.5 pre-scale ----
    gate_scale = jnp.concatenate([jnp.full((3 * HID,), 0.5, jnp.float32),
                                  jnp.ones((HID,), jnp.float32)])
    w = jnp.concatenate([wx_hwio, wh_hwio], axis=2).astype(jnp.float32)
    w = (w * gate_scale).reshape(KH * KW * C, G).astype(matmul_dtype)
    b = ((bx + bh).astype(jnp.float32) * gate_scale).reshape(1, G)

    # Single concat + single zero-pad (extra bottom rows only if H was padded).
    xh = jnp.concatenate([x, h], axis=-1)
    xh_pad = jnp.pad(xh, ((0, 0), (ph, ph + (H_pad - H)), (pw, pw), (0, 0)))
    xh_pad = xh_pad.astype(matmul_dtype)
    c_in = c if H_pad == H else jnp.pad(
        c, ((0, 0), (0, H_pad - H), (0, 0), (0, 0)))

    # --- generation-aware VMEM budget ----------------------------------------
    ebytes = jnp.dtype(matmul_dtype).itemsize
    try:
        vmem_cap = int(pltpu.get_tpu_info().vmem_capacity_bytes)
    except Exception:
        vmem_cap = 64 << 20          # conservative fallback (v7x physical VMEM)
    vmem_budget = (3 * vmem_cap) // 4

    w_bytes = KH * KW * C * G * ebytes + G * 4
    row_bytes = TR * W * (HID + 2 * HID) * 4          # c in + packed hc out
    img_bytes = Hp * Wp * C * ebytes
    resident_need = 2 * img_bytes + 2 * (w_bytes + row_bytes)   # xh dbl-buffered
    halo_need = halo * Wp * C * ebytes + 2 * (w_bytes + row_bytes)
    use_halo = bool(force_halo) or (resident_need > vmem_budget)
    need = halo_need if use_halo else resident_need
    vmem_limit = int(min(vmem_budget, max(16 << 20, 2 * need)))

    # --- specs / cost ----------------------------------------------------------
    w_spec = pl.BlockSpec((KH * KW * C, G), lambda bb, rr: (0, 0))
    b_spec = pl.BlockSpec((1, G), lambda bb, rr: (0, 0))
    c_spec = pl.BlockSpec((1, TR, W, HID), lambda bb, rr: (bb, rr, 0, 0))
    hc_spec = pl.BlockSpec((1, TR, W, 2 * HID), lambda bb, rr: (bb, rr, 0, 0))

    flops = 2 * B * H_pad * W * KH * KW * C * G + 12 * B * H_pad * W * HID
    transcendentals = 5 * B * H_pad * W * HID
    bytes_accessed = B * img_bytes + w_bytes + 3 * B * H_pad * W * HID * 4
    cost = pl.CostEstimate(flops=int(flops),
                           transcendentals=int(transcendentals),
                           bytes_accessed=int(bytes_accessed))

    if use_halo:
        kernel = functools.partial(_convlstm_halo_kernel, TR=TR, W=W, C=C,
                                   HID=HID, KH=KH, KW=KW)
        xh_spec = pl.BlockSpec(memory_space=pl.ANY)
        scratch = [pltpu.VMEM((halo, Wp, C), matmul_dtype),
                   pltpu.SemaphoreType.DMA((1,))]
        dims = ("parallel", "arbitrary")
    else:
        kernel = functools.partial(_convlstm_resident_kernel, TR=TR, W=W, C=C,
                                   HID=HID, KH=KH, KW=KW)
        xh_spec = pl.BlockSpec((1, Hp, Wp, C), lambda bb, rr: (bb, 0, 0, 0))
        scratch = []
        dims = ("parallel", "parallel")

    hc = pl.pallas_call(
        kernel,
        out_shape=jax.ShapeDtypeStruct((B, H_pad, W, 2 * HID), h.dtype),
        grid_spec=pltpu.PrefetchScalarGridSpec(
            num_scalar_prefetch=0,
            grid=(B, NB),
            in_specs=[xh_spec, w_spec, b_spec, c_spec],
            out_specs=hc_spec,
            scratch_shapes=scratch),
        compiler_params=pltpu.CompilerParams(
            dimension_semantics=dims,
            vmem_limit_bytes=vmem_limit),
        cost_estimate=cost,
    )(xh_pad, w, b, c_in)

    hc = hc[:, :H] if H_pad != H else hc
    return hc[..., :HID], hc[..., HID:]


def convlstm_cell_forward(x_nchw, h_nchw, c_nchw, wx_hwio, wh_hwio, bx, bh,
                          kernel_size, *, matmul_dtype=jnp.bfloat16,
                          force_halo=False):
    """PyTorch-interface (NCHW) ConvLSTMCell forward.

    x_nchw : (B, CIN, H, W)     h_nchw / c_nchw : (B, HID, H, W)
    wx_hwio: (KH, KW, CIN, 4*HID)   wh_hwio: (KH, KW, HID, 4*HID)
    bx, bh : (4*HID,)
    Returns (h_next, c_next) in NCHW, matching the PyTorch module.
    """
    x = jnp.transpose(x_nchw, (0, 2, 3, 1))
    h = jnp.transpose(h_nchw, (0, 2, 3, 1))
    c = jnp.transpose(c_nchw, (0, 2, 3, 1))
    h_n, c_n = convlstm_cell_forward_nhwc(x, h, c, wx_hwio, wh_hwio, bx, bh,
                                          kernel_size,
                                          matmul_dtype=matmul_dtype,
                                          force_halo=force_halo)
    return (jnp.transpose(h_n, (0, 3, 1, 2)),
            jnp.transpose(c_n, (0, 3, 1, 2)))


def _reference_forward(x_nchw, h_nchw, c_nchw, wx_hwio, wh_hwio, bx, bh,
                       conv_dtype=jnp.float32):
    """Pure-JAX reference (mirrors the PyTorch module) for verification."""
    dn = ('NHWC', 'HWIO', 'NHWC')
    x = jnp.transpose(x_nchw, (0, 2, 3, 1)).astype(conv_dtype)
    h = jnp.transpose(h_nchw, (0, 2, 3, 1)).astype(conv_dtype)
    c = jnp.transpose(c_nchw, (0, 2, 3, 1))
    cx = lax.conv_general_dilated(x, wx_hwio.astype(conv_dtype), (1, 1), 'SAME',
                                  dimension_numbers=dn,
                                  preferred_element_type=jnp.float32) + bx
    ch = lax.conv_general_dilated(h, wh_hwio.astype(conv_dtype), (1, 1), 'SAME',
                                  dimension_numbers=dn,
                                  preferred_element_type=jnp.float32) + bh
    hid = h.shape[-1]
    pre = cx + ch
    i = jax.nn.sigmoid(pre[..., 0 * hid:1 * hid])
    f = jax.nn.sigmoid(pre[..., 1 * hid:2 * hid])
    o = jax.nn.sigmoid(pre[..., 2 * hid:3 * hid])
    g = jnp.tanh(pre[..., 3 * hid:4 * hid])
    c_next = f * c + i * g
    h_next = o * jnp.tanh(c_next)
    return (jnp.transpose(h_next, (0, 3, 1, 2)),
            jnp.transpose(c_next, (0, 3, 1, 2)))


if __name__ == "__main__":
    # Module config: input_size=(16,16), input_dim=4, hidden_dim=32,
    # kernel_size=3, bias=True.  Batch = 2.
    B, CIN, H, W = 2, 4, 16, 16
    HID = 32
    KH = KW = 3

    key = jax.random.PRNGKey(0)
    k = jax.random.split(key, 7)
    x = jax.random.normal(k[0], (B, CIN, H, W), jnp.float32)
    h_cur = jax.random.normal(k[1], (B, HID, H, W), jnp.float32)
    c_cur = jax.random.normal(k[2], (B, HID, H, W), jnp.float32)

    # Deterministic synthetic parameters (Conv2d-like scale), HWIO layout.
    wx = jax.random.normal(k[3], (KH, KW, CIN, 4 * HID), jnp.float32) * 0.1
    wh = jax.random.normal(k[4], (KH, KW, HID, 4 * HID), jnp.float32) * 0.1
    bx = jax.random.normal(k[5], (4 * HID,), jnp.float32) * 0.1
    bh = jax.random.normal(k[6], (4 * HID,), jnp.float32) * 0.1

    # 1) Fast path: bf16 MXU operands, resident (small-image) xh block.
    fwd_fast = jax.jit(functools.partial(convlstm_cell_forward,
                                         kernel_size=(KH, KW)))
    h_fast, c_fast = fwd_fast(x, h_cur, c_cur, wx, wh, bx, bh)
    jax.block_until_ready((h_fast, c_fast))

    # 2) Exact-parity path: f32 MXU operands + forced halo'd row-block DMA path.
    fwd_exact = jax.jit(functools.partial(convlstm_cell_forward,
                                          kernel_size=(KH, KW),
                                          matmul_dtype=jnp.float32,
                                          force_halo=True))
    h_exact, c_exact = fwd_exact(x, h_cur, c_cur, wx, wh, bx, bh)
    jax.block_until_ready((h_exact, c_exact))

    assert h_fast.shape == (B, HID, H, W) and c_fast.shape == (B, HID, H, W)
    assert h_exact.shape == (B, HID, H, W) and c_exact.shape == (B, HID, H, W)

    h_ref32, c_ref32 = _reference_forward(x, h_cur, c_cur, wx, wh, bx, bh)
    h_ref16, c_ref16 = _reference_forward(x, h_cur, c_cur, wx, wh, bx, bh,
                                          conv_dtype=jnp.bfloat16)

    # f32 path must match the f32 reference tightly.
    assert jnp.allclose(h_exact, h_ref32, atol=2e-5, rtol=2e-5)
    assert jnp.allclose(c_exact, c_ref32, atol=2e-5, rtol=2e-5)
    # bf16 path must match a bf16-operand (f32-accumulate) reference tightly,
    # and the f32 reference coarsely (bf16 operand rounding).
    assert jnp.allclose(h_fast, h_ref16, atol=3e-3, rtol=3e-3)
    assert jnp.allclose(c_fast, c_ref16, atol=3e-3, rtol=3e-3)
    assert jnp.allclose(h_fast, h_ref32, atol=1e-1, rtol=1e-1)
    assert jnp.allclose(c_fast, c_ref32, atol=1e-1, rtol=1e-1)

    print("KERNEL_OK")
</pallas_src>

<mosaic_0001>
module attributes {stable_mosaic.version = 11 : i64} {
  func.func @_convlstm_resident_kernel(%arg0: i32, %arg1: i32, %arg2: memref<1x18x18x36xbf16, #tpu.memory_space<vmem>>, %arg3: memref<324x128xbf16, #tpu.memory_space<vmem>>, %arg4: memref<1x128xf32, #tpu.memory_space<vmem>>, %arg5: memref<1x16x16x32xf32, #tpu.memory_space<vmem>>, %arg6: memref<1x16x16x64xf32, #tpu.memory_space<vmem>>) attributes {dimension_semantics = [#tpu.dimension_semantics<parallel>, #tpu.dimension_semantics<parallel>], iteration_bounds = array<i64: 2, 1>, scalar_prefetch = 0 : i64, scratch_operands = 0 : i64, tpu.core_type = #tpu.core_type<tc>, window_params = [{transform_indices = @transform_0, window_bounds = array<i64: 1, 18, 18, 36>}, {pipeline_mode = #tpu.pipeline_mode<synchronous>, transform_indices = @transform_1, window_bounds = array<i64: 324, 128>}, {pipeline_mode = #tpu.pipeline_mode<synchronous>, transform_indices = @transform_2, window_bounds = array<i64: 1, 128>}, {transform_indices = @transform_3, window_bounds = array<i64: 1, 16, 16, 32>}, {transform_indices = @transform_4, window_bounds = array<i64: 1, 16, 16, 64>}]} {
    %c16_i32 = arith.constant 16 : i32
    %0 = arith.muli %arg1, %c16_i32 : i32
    %1 = tpu.assume_multiple %0, 16 : i32
    %c0_i32 = arith.constant 0 : i32
    %2 = arith.addi %1, %c0_i32 : i32
    %c0 = arith.constant 0 : index
    %3 = arith.index_cast %2 : i32 to index
    %c0_0 = arith.constant 0 : index
    %c0_1 = arith.constant 0 : index
    %4 = vector.load %arg2[%c0, %3, %c0_0, %c0_1] : memref<1x18x18x36xbf16, #tpu.memory_space<vmem>>, vector<1x16x16x36xbf16>
    %5 = vector.shape_cast %4 : vector<1x16x16x36xbf16> to vector<16x16x36xbf16>
    %6 = vector.shape_cast %5 : vector<16x16x36xbf16> to vector<256x36xbf16>
    %c0_i32_2 = arith.constant 0 : i32
    %7 = arith.addi %1, %c0_i32_2 : i32
    %c0_3 = arith.constant 0 : index
    %8 = arith.index_cast %7 : i32 to index
    %c1 = arith.constant 1 : index
    %c0_4 = arith.constant 0 : index
    %9 = vector.load %arg2[%c0_3, %8, %c1, %c0_4] : memref<1x18x18x36xbf16, #tpu.memory_space<vmem>>, vector<1x16x16x36xbf16>
    %10 = vector.shape_cast %9 : vector<1x16x16x36xbf16> to vector<16x16x36xbf16>
    %11 = vector.shape_cast %10 : vector<16x16x36xbf16> to vector<256x36xbf16>
    %c0_i32_5 = arith.constant 0 : i32
    %12 = arith.addi %1, %c0_i32_5 : i32
    %c0_6 = arith.constant 0 : index
    %13 = arith.index_cast %12 : i32 to index
    %c2 = arith.constant 2 : index
    %c0_7 = arith.constant 0 : index
    %14 = vector.load %arg2[%c0_6, %13, %c2, %c0_7] : memref<1x18x18x36xbf16, #tpu.memory_space<vmem>>, vector<1x16x16x36xbf16>
    %15 = vector.shape_cast %14 : vector<1x16x16x36xbf16> to vector<16x16x36xbf16>
    %16 = vector.shape_cast %15 : vector<16x16x36xbf16> to vector<256x36xbf16>
    %c1_i32 = arith.constant 1 : i32
    %17 = arith.addi %1, %c1_i32 : i32
    %c0_8 = arith.constant 0 : index
    %18 = arith.index_cast %17 : i32 to index
    %c0_9 = arith.constant 0 : index
    %c0_10 = arith.constant 0 : index
    %19 = vector.load %arg2[%c0_8, %18, %c0_9, %c0_10] : memref<1x18x18x36xbf16, #tpu.memory_space<vmem>>, vector<1x16x16x36xbf16>
    %20 = vector.shape_cast %19 : vector<1x16x16x36xbf16> to vector<16x16x36xbf16>
    %21 = vector.shape_cast %20 : vector<16x16x36xbf16> to vector<256x36xbf16>
    %c1_i32_11 = arith.constant 1 : i32
    %22 = arith.addi %1, %c1_i32_11 : i32
    %c0_12 = arith.constant 0 : index
    %23 = arith.index_cast %22 : i32 to index
    %c1_13 = arith.constant 1 : index
    %c0_14 = arith.constant 0 : index
    %24 = vector.load %arg2[%c0_12, %23, %c1_13, %c0_14] : memref<1x18x18x36xbf16, #tpu.memory_space<vmem>>, vector<1x16x16x36xbf16>
    %25 = vector.shape_cast %24 : vector<1x16x16x36xbf16> to vector<16x16x36xbf16>
    %26 = vector.shape_cast %25 : vector<16x16x36xbf16> to vector<256x36xbf16>
    %c1_i32_15 = arith.constant 1 : i32
    %27 = arith.addi %1, %c1_i32_15 : i32
    %c0_16 = arith.constant 0 : index
    %28 = arith.index_cast %27 : i32 to index
    %c2_17 = arith.constant 2 : index
    %c0_18 = arith.constant 0 : index
    %29 = vector.load %arg2[%c0_16, %28, %c2_17, %c0_18] : memref<1x18x18x36xbf16, #tpu.memory_space<vmem>>, vector<1x16x16x36xbf16>
    %30 = vector.shape_cast %29 : vector<1x16x16x36xbf16> to vector<16x16x36xbf16>
    %31 = vector.shape_cast %30 : vector<16x16x36xbf16> to vector<256x36xbf16>
    %c2_i32 = arith.constant 2 : i32
    %32 = arith.addi %1, %c2_i32 : i32
    %c0_19 = arith.constant 0 : index
    %33 = arith.index_cast %32 : i32 to index
    %c0_20 = arith.constant 0 : index
    %c0_21 = arith.constant 0 : index
    %34 = vector.load %arg2[%c0_19, %33, %c0_20, %c0_21] : memref<1x18x18x36xbf16, #tpu.memory_space<vmem>>, vector<1x16x16x36xbf16>
    %35 = vector.shape_cast %34 : vector<1x16x16x36xbf16> to vector<16x16x36xbf16>
    %36 = vector.shape_cast %35 : vector<16x16x36xbf16> to vector<256x36xbf16>
    %c2_i32_22 = arith.constant 2 : i32
    %37 = arith.addi %1, %c2_i32_22 : i32
    %c0_23 = arith.constant 0 : index
    %38 = arith.index_cast %37 : i32 to index
    %c1_24 = arith.constant 1 : index
    %c0_25 = arith.constant 0 : index
    %39 = vector.load %arg2[%c0_23, %38, %c1_24, %c0_25] : memref<1x18x18x36xbf16, #tpu.memory_space<vmem>>, vector<1x16x16x36xbf16>
    %40 = vector.shape_cast %39 : vector<1x16x16x36xbf16> to vector<16x16x36xbf16>
    %41 = vector.shape_cast %40 : vector<16x16x36xbf16> to vector<256x36xbf16>
    %c2_i32_26 = arith.constant 2 : i32
    %42 = arith.addi %1, %c2_i32_26 : i32
    %c0_27 = arith.constant 0 : index
    %43 = arith.index_cast %42 : i32 to index
    %c2_28 = arith.constant 2 : index
    %c0_29 = arith.constant 0 : index
    %44 = vector.load %arg2[%c0_27, %43, %c2_28, %c0_29] : memref<1x18x18x36xbf16, #tpu.memory_space<vmem>>, vector<1x16x16x36xbf16>
    %45 = vector.shape_cast %44 : vector<1x16x16x36xbf16> to vector<16x16x36xbf16>
    %46 = vector.shape_cast %45 : vector<16x16x36xbf16> to vector<256x36xbf16>
    %47 = tpu.concatenate %6, %11, %16, %21, %26, %31, %36, %41, %46 in 1 : vector<256x36xbf16>, vector<256x36xbf16>, vector<256x36xbf16>, vector<256x36xbf16>, vector<256x36xbf16>, vector<256x36xbf16>, vector<256x36xbf16>, vector<256x36xbf16>, vector<256x36xbf16> -> vector<256x324xbf16>
    %c0_30 = arith.constant 0 : index
    %c0_31 = arith.constant 0 : index
    %48 = vector.load %arg3[%c0_30, %c0_31] : memref<324x128xbf16, #tpu.memory_space<vmem>>, vector<324x128xbf16>
    %cst = arith.constant dense<0.000000e+00> : vector<256x128xf32>
    %49 = tpu.matmul %47, %48, %cst {dimension_numbers = #tpu.dot_dimension_numbers<[1], [0], [0], [1], [0, 0, 1, 1], [], []>} : vector<256x324xbf16>, vector<324x128xbf16>, vector<256x128xf32> -> vector<256x128xf32>
    %c0_32 = arith.constant 0 : index
    %c0_33 = arith.constant 0 : index
    %50 = vector.load %arg4[%c0_32, %c0_33] : memref<1x128xf32, #tpu.memory_space<vmem>>, vector<1x128xf32>
    %51 = vector.broadcast %50 : vector<1x128xf32> to vector<256x128xf32>
    %52 = arith.addf %49, %51 : vector<256x128xf32>
    %53 = math.tanh %52 : vector<256x128xf32>
    %54 = vector.extract_strided_slice %53 {offsets = [0, 0], sizes = [256, 32], strides = [1, 1]} : vector<256x128xf32> to vector<256x32xf32>
    %cst_34 = arith.constant 5.000000e-01 : f32
    %55 = vector.broadcast %cst_34 : f32 to vector<256x32xf32>
    %56 = arith.mulf %55, %54 : vector<256x32xf32>
    %cst_35 = arith.constant 5.000000e-01 : f32
    %57 = vector.broadcast %cst_35 : f32 to vector<256x32xf32>
    %58 = arith.addf %56, %57 : vector<256x32xf32>
    %59 = vector.extract_strided_slice %53 {offsets = [0, 32], sizes = [256, 32], strides = [1, 1]} : vector<256x128xf32> to vector<256x32xf32>
    %cst_36 = arith.constant 5.000000e-01 : f32
    %60 = vector.broadcast %cst_36 : f32 to vector<256x32xf32>
    %61 = arith.mulf %60, %59 : vector<256x32xf32>
    %cst_37 = arith.constant 5.000000e-01 : f32
    %62 = vector.broadcast %cst_37 : f32 to vector<256x32xf32>
    %63 = arith.addf %61, %62 : vector<256x32xf32>
    %64 = vector.extract_strided_slice %53 {offsets = [0, 64], sizes = [256, 32], strides = [1, 1]} : vector<256x128xf32> to vector<256x32xf32>
    %cst_38 = arith.constant 5.000000e-01 : f32
    %65 = vector.broadcast %cst_38 : f32 to vector<256x32xf32>
    %66 = arith.mulf %65, %64 : vector<256x32xf32>
    %cst_39 = arith.constant 5.000000e-01 : f32
    %67 = vector.broadcast %cst_39 : f32 to vector<256x32xf32>
    %68 = arith.addf %66, %67 : vector<256x32xf32>
    %69 = vector.extract_strided_slice %53 {offsets = [0, 96], sizes = [256, 32], strides = [1, 1]} : vector<256x128xf32> to vector<256x32xf32>
    %c0_40 = arith.constant 0 : index
    %c0_41 = arith.constant 0 : index
    %c0_42 = arith.constant 0 : index
    %c0_43 = arith.constant 0 : index
    %70 = vector.load %arg5[%c0_40, %c0_41, %c0_42, %c0_43] : memref<1x16x16x32xf32, #tpu.memory_space<vmem>>, vector<1x16x16x32xf32>
    %71 = vector.shape_cast %70 : vector<1x16x16x32xf32> to vector<16x16x32xf32>
    %72 = vector.shape_cast %71 : vector<16x16x32xf32> to vector<256x32xf32>
    %73 = arith.mulf %63, %72 : vector<256x32xf32>
    %74 = arith.mulf %58, %69 : vector<256x32xf32>
    %75 = arith.addf %73, %74 : vector<256x32xf32>
    %76 = math.tanh %75 : vector<256x32xf32>
    %77 = arith.mulf %68, %76 : vector<256x32xf32>
    %78 = tpu.concatenate %77, %75 in 1 : vector<256x32xf32>, vector<256x32xf32> -> vector<256x64xf32>
    %79 = vector.shape_cast %78 : vector<256x64xf32> to vector<16x16x64xf32>
    %c0_44 = arith.constant 0 : index
    %c0_45 = arith.constant 0 : index
    %c0_46 = arith.constant 0 : index
    %c0_47 = arith.constant 0 : index
    %80 = vector.load %arg6[%c0_44, %c0_45, %c0_46, %c0_47] : memref<1x16x16x64xf32, #tpu.memory_space<vmem>>, vector<1x16x16x64xf32>
    %81 = vector.shape_cast %80 : vector<1x16x16x64xf32> to vector<16x16x64xf32>
    %82 = vector.shape_cast %79 : vector<16x16x64xf32> to vector<1x16x16x64xf32>
    tpu.vector_store %arg6[%c0_44, %c0_45, %c0_46, %c0_47], %82 {strides = array<i32>} : memref<1x16x16x64xf32, #tpu.memory_space<vmem>>, vector<1x16x16x64xf32>,
    return
  }
  func.func @transform_0(%arg0: i32, %arg1: i32) -> (i32, i32, i32, i32) {
    %c0_i32 = arith.constant 0 : i32
    %c0_i32_0 = arith.constant 0 : i32
    %c0_i32_1 = arith.constant 0 : i32
    %c0_i32_2 = arith.constant 0 : i32
    return %arg0, %c0_i32, %c0_i32_0, %c0_i32_1 : i32, i32, i32, i32
  }
  func.func @transform_1(%arg0: i32, %arg1: i32) -> (i32, i32) {
    %c0_i32 = arith.constant 0 : i32
    %c0_i32_0 = arith.constant 0 : i32
    %c0_i32_1 = arith.constant 0 : i32
    return %c0_i32, %c0_i32_0 : i32, i32
  }
  func.func @transform_2(%arg0: i32, %arg1: i32) -> (i32, i32) {
    %c0_i32 = arith.constant 0 : i32
    %c0_i32_0 = arith.constant 0 : i32
    %c0_i32_1 = arith.constant 0 : i32
    return %c0_i32, %c0_i32_0 : i32, i32
  }
  func.func @transform_3(%arg0: i32, %arg1: i32) -> (i32, i32, i32, i32) {
    %c0_i32 = arith.constant 0 : i32
    %c0_i32_0 = arith.constant 0 : i32
    %c0_i32_1 = arith.constant 0 : i32
    return %arg0, %arg1, %c0_i32, %c0_i32_0 : i32, i32, i32, i32
  }
  func.func @transform_4(%arg0: i32, %arg1: i32) -> (i32, i32, i32, i32) {
    %c0_i32 = arith.constant 0 : i32
    %c0_i32_0 = arith.constant 0 : i32
    %c0_i32_1 = arith.constant 0 : i32
    return %arg0, %arg1, %c0_i32, %c0_i32_0 : i32, i32, i32, i32
  }
}

</mosaic_0001>

<bundles_post_ra>
// kernel: convlstm_cell_forward.1
= control target key start
LH: loop header
LB: loop body
LE: loop exit
PB: predicated region body
PF: predicated region fallthrough
CT: control target
= control target key end

     0   :  { %s5680_s15 = smov 0   ;;  %s5682_s16 = smov 0   ;;  %s8248_s0 = inlined_call_operand.vmem [shape: bf16[2,18,18,36], index: 0, kind: input, shape index: {}]   ;;  %s8249_s1 = inlined_call_operand.vmem [shape: bf16[324,128], index: 1, kind: input, shape index: {}]   ;;  %s8250_s2 = inlined_call_operand.vmem [shape: f32[1,128], index: 2, kind: input, shape index: {}]   ;;  %s8251_s3 = inlined_call_operand.vmem [shape: f32[2,16,16,32], index: 3, kind: input, shape index: {}]   ;;  %s8252_s4 = inlined_call_operand.vmem [shape: f32[2,16,16,64], index: 4, kind: output, shape index: {}]  }
   0x1   :  { %s5684_s17 = smov 0  }
   0x2 LB: > { %s26_s18 = sadd.s32 1, %s5640_s16  ;;  %p4798_p0 = scmp.ge.s32.totalorder %s5644_s17, 1  ;;  %s5644_s17 = sphi %s5684_s17, %s14_s17   ;;  %s5640_s16 = sphi %s5682_s16, %s8338_s16   ;;  %s5636_s15 = sphi %s5680_s15, %s8337_s15  }
   0x3   : > { %p28_p1 = scmp.ge.s32.totalorder %s26_s18, 2  ;;  %p194_p2 = scmp.lt.s32.totalorder %s5644_s17, 3 }
   0x5   : > { %s8340_s18 = smov (%p28_p1, %s26_s18), 0  ;;  %p195_p3 = pnand %p4798_p0, %p194_p2 }
   0x7   : > { %198 = sbr.rel (%p195_p3) target bundleno = 1191 (0x4a7), region = 36 }
   0xe   : > { %p235_p4 = scmp.lt.s32.totalorder %s5636_s15, 1  ;;  %vm766_vm0 = vcmask 1042432   ;;  %vm767_vm1 = vcmask 1046532   ;;  %vm315_vm2 = vsmask.f32 3328  ;;  %s5646_s23 = smov 108  }
   0xf   : > { %vm316_vm3 = vsmask.f32 7440  ;;  %vm5721_vm4 = vmor %vm766_vm0, %vm767_vm1  ;;  %v5407_v45 = vld [vmem:[%s8249_s1 + $0x40] sm:$0xff]   ;;  %s5647_s26 = smov 88   ;;  %s5648_s29 = smov 52   ;;  %v5410_v62 = vld [vmem:[%s8249_s1 + $0x48] sm:$0xff]  }
  0x10   : > { %s8342_s15 = smov (!%p235_p4, %s5636_s15), 1  ;;  %vm5744_vm5 = vmor %vm315_vm2, %vm316_vm3  ;;  %v5408_v50 = vld [vmem:[%s8249_s1] sm:$0xff]   ;;  %5166 = vmatprep.subr.bf16.mxu0 %v5407_v45  ;;  %5341 = vmatprep.subr.bf16.mxu1 %v5407_v45  ;;  %s5649_s8 = smov 16   ;;  %vm2972_vm6 = vcmask 130048   ;;  %vm3005_vm7 = vcmask 424960   ;;  %vm3038_vm8 = vcmask 719872  }
  0x11   : > { %s5358_s19 = smul.u32 216, %s8342_s15  ;;  %5167 = vmatpush3.bf16.msra.mxu0 %v5408_v50  ;;  %5349 = vmatpush3.bf16.msra.mxu1 %v5408_v50  ;;  %s5650_s9 = smov 72   ;;  %v5416_v50 = vld [vmem:[%s8249_s1 + $0x18] sm:$0xff]   ;;  %vm3071_vm9 = vcmask 1014784   ;;  %vm2841_vm10 = vcmask 293888   ;;  %vm2890_vm11 = vcmask 588800  }
  0x12   : > { %5168 = vmatprep.subr.bf16.mxu0 %v5410_v62  ;;  %5342 = vmatprep.subr.bf16.mxu1 %v5410_v62  ;;  %s5651_s24 = smov 124   ;;  %s5652_s25 = smov 36   ;;  %vm2923_vm12 = vcmask 883712   ;;  %vm3120_vm13 = vcmask 261120   ;;  %vm3324_vm14 = vcmask 556032   ;;  %vm3357_vm15 = vcmask 1041408  }
  0x13   : > { %s5704_s22 = scalar_lea.vmem %s8248_s0, %s5358_s19  ;;  %s5653_s30 = smov 32   ;;  %vm4643_vm0 = vcmask 523264  }
  0x14   : > { %v4844_v0 = vld [vmem:[%s5704_s22 + $0x9c] sm:$0xf]  ;;  %v5708_v1 = vld [vmem:[%s5704_s22 + $0xa0] sm:$0xf]  ;;  %v4820_v2 = vld [vmem:[%s5704_s22 + $0xc] sm:$0xf] }
  0x15   : > { %v1231_v3 = vshll.u32 %v5708_v1, 16  ;;  %v1235_v4 = vshrl.u32 %v5708_v1, 16  ;;  %v5040_v5 = vcombine.low %v4844_v0, %v5708_v1  ;;  %v1222_v6 = vshrl.u32 %v4844_v0, 16  ;;  %v4821_v7 = vld [vmem:[%s5704_s22 + $0x10] sm:$0xf] }
  0x16   : > { %v1225_v8 = vshll.u32 %v4844_v0, 16  ;;  %v943_v9 = vshll.u32 %v4821_v7, 16  ;;  %v947_v10 = vshrl.u32 %v4821_v7, 16  ;;  %v5028_v11 = vcombine.low %v4820_v2, %v4821_v7  ;;  %v4852_v12 = vld [vmem:[%s5704_s22 + $0x14] sm:$0x1] }
  0x17   : > { %v5716_v13 = vrot.slane %v1235_v4, 4  ;;  %2417 = vrot.lane.b32.xlu1 %v5040_v5, %s5646_s23  ;;  %v1224_v14 = vrot.slane %v1222_v6, 4  ;;  %v934_v15 = vshrl.u32 %v4820_v2, 16  ;;  %v937_v16 = vshll.u32 %v4820_v2, 16  ;;  %v4868_v18 = vld [vmem:[%s5704_s22 + $0xc] sm:$0xe] }
  0x18   : > { %v1227_v19 = vrot.slane %v1225_v8, 5  ;;  %v949_v20 = vrot.slane %v947_v10, 4  ;;  %2393 = vrot.lane.b32.xlu0 %v5028_v11, %s5646_s23  ;;  %v4884_v21 = vrot.slane %v4868_v18, 9  ;;  %v1383_v22 = vrot.slane %v4821_v7, 5  ;;  %v4900_v23 = vld [vmem:[%s5704_s22 + $0x18] sm:$0xf] }
  0x19   : > { %v936_v24 = vrot.slane %v934_v15, 4  ;;  %v939_v25 = vrot.slane %v937_v16, 5  ;;  %v1386_v26 = vrot.slane %v4852_v12, 5  ;;  %v4901_v27 = vld [vmem:[%s5704_s22 + $0x1c] sm:$0xf]  ;;  %v1546_v28 = vshrl.u32 %v4900_v23, 16 }
  0x1a   : > { %v1228_v29 = vor.u32 %v1227_v19, %v1224_v14  ;;  %v1384_v30 = vsel %vm5721_vm4, %v4884_v21, %v1383_v22  ;;  %v1385_v31 = vrot.slane %v1383_v22, 4  ;;  %v1549_v32 = vshll.u32 %v4900_v23, 16  ;;  %v5732_v33 = vld [vmem:[%s5704_s22 + $0x4] sm:$0xf]  ;;  %v5735_v38 = vld [vmem:[%s5704_s22 + $0x8] sm:$0x1] }
  0x1b   : > { %v940_v34 = vor.u32 %v939_v25, %v936_v24  ;;  %v1548_v35 = vrot.slane %v1546_v28, 4  ;;  %v1559_v36 = vshrl.u32 %v4901_v27, 16  ;;  %v5076_v37 = vcombine.low %v4900_v23, %v4901_v27  ;;  %v702_v39 = vld [vmem:[%s5704_s22] sm:$0xe]  ;;  %v4932_v54 = vld [vmem:[%s5704_s22 + $0x20] sm:$0x1] }
  0x1c   : > { %v5738_v40 = vrot.slane %v1228_v29, 4  ;;  %v1387_v41 = vsel %vm5721_vm4, %v1385_v31, %v1386_v26  ;;  %v1551_v42 = vrot.slane %v1549_v32, 5  ;;  %v945_v44 = vrot.slane %v943_v9, 5  ;;  %v4880_v56 = vld [vmem:[%s5704_s22 + $0x9c] sm:$0xe]  ;;  %v5411_v5 = vld [vmem:[%s8249_s1 + $0x8] sm:$0xff]  }
  0x1d   : > { %v941_v46 = vrot.slane %v940_v34, 4  ;;  %v5060_v47 = vcombine.low %v1384_v30, %v1387_v41  ;;  %2649 = vrot.lane.b32.xlu0 %v5076_v37, %s5647_s26  ;;  %v953_v48 = vshll.u32 %v4852_v12, 16  ;;  %v4804_v49 = vrot.slane %v702_v39, 9  ;;  %v4864_v61 = vld [vmem:[%s5704_s22 + $0xa4] sm:$0x1]  ;;  %5169 = vmatpush3.bf16.msra.mxu0 %v5411_v5  ;;  %v5413_v34 = vld [vmem:[%s8249_s1 + $0x10] sm:$0xff]  }
  0x1e   : > { %v950_v51 = vor.u32 %v949_v20, %v945_v44  ;;  %v771_v52 = vrot.slane %v5732_v33, 5  ;;  %v774_v53 = vrot.slane %v5735_v38, 5  ;;  %v1552_v55 = vor.u32 %v1551_v42, %v1548_v35  ;;  %v267_v15 = vld [vmem:[%s5704_s22] sm:$0xf]  ;;  %5350 = vmatpush3.bf16.msra.mxu1 %v5411_v5  ;;  %v291_v32 = vld [vmem:[%s5704_s22 + $0x90] sm:$0xf] }
  0x1f   : > { %2553 = vrot.lane.b32.xlu1 %v5060_v47, %s5648_s29  ;;  %v946_v57 = vsel %vm5744_vm5, %v941_v46, %v945_v44  ;;  %v955_v58 = vrot.slane %v953_v48, 5  ;;  %v1555_v59 = vshll.u32 %v4901_v27, 16  ;;  %v1561_v60 = vrot.slane %v1559_v36, 4  ;;  %v5412_v27 = vld [vmem:[%s8249_s1 + $0x50] sm:$0xff]   ;;  %v5415_v44 = vld [vmem:[%s8249_s1 + $0x58] sm:$0xff]  }
  0x20   : > { %v951_v63 = vrot.slane %v950_v51, 4  ;;  %v772_v0 = vsel %vm5721_vm4, %v4804_v49, %v771_v52  ;;  %v773_v2 = vrot.slane %v771_v52, 4  ;;  %v1553_v4 = vrot.slane %v1552_v55, 4  ;;  %v5803_v39 = vld [vmem:[%s5704_s22 + $0x94] sm:$0xf]  ;;  %5170 = vmatprep.subr.bf16.mxu0 %v5412_v27  ;;  %5343 = vmatprep.subr.bf16.mxu1 %v5412_v27 }
  0x21   : > { %v1557_v6 = vrot.slane %v1555_v59, 5  ;;  %v1565_v7 = vshll.u32 %v4932_v54, 16  ;;  %v4896_v8 = vrot.slane %v4880_v56, 9  ;;  %v1467_v9 = vrot.slane %v5708_v1, 5  ;;  %5171 = vmatpush3.bf16.msra.mxu0 %v5413_v34  ;;  %v5813_v48 = vld [vmem:[%s5704_s22 + $0x98] sm:$0x1] }
  0x22   : > { %v956_v10 = vsel %vm5744_vm5, %v951_v63, %v955_v58  ;;  %v775_v11 = vsel %vm5721_vm4, %v773_v2, %v774_v53  ;;  %v1470_v12 = vrot.slane %v4864_v61, 5  ;;  %v1233_v14 = vrot.slane %v1231_v3, 5  ;;  %5351 = vmatpush3.bf16.msra.mxu1 %v5413_v34  ;;  %v4924_v55 = vld [vmem:[%s5704_s22 + $0xa8] sm:$0xf]  ;;  %5172 = vmatprep.subr.bf16.mxu0 %v5415_v44  ;;  %v5823_v59 = vld [vmem:[%s5704_s22 + $0xac] sm:$0xf] }
  0x23   : > { %v5044_v16 = vcombine.low %v946_v57, %v956_v10  ;;  %v5012_v18 = vcombine.low %v772_v0, %v775_v11  ;;  %v1558_v19 = vsel %vm5744_vm5, %v1553_v4, %v1557_v6  ;;  %v1562_v20 = vor.u32 %v1561_v60, %v1557_v6  ;;  %5344 = vmatprep.subr.bf16.mxu1 %v5415_v44  ;;  %v714_v10 = vld [vmem:[%s5704_s22 + $0x90] sm:$0xe]  ;;  %v5844_v27 = vld [vmem:[%s5704_s22 + $0x18] sm:$0xf] }
  0x24   : > { %v1567_v21 = vrot.slane %v1565_v7, 5  ;;  %v1468_v22 = vsel %vm5721_vm4, %v4896_v8, %v1467_v9  ;;  %v1469_v23 = vrot.slane %v1467_v9, 4  ;;  %v1234_v24 = vsel %vm5744_vm5, %v5738_v40, %v1233_v14  ;;  %v4869_v44 = vld [vmem:[%s5704_s22 + $0x18] sm:$0xe] }
  0x25   : > { %2473 = vrot.lane.b32.xlu0 %v5044_v16, %s5649_s8  ;;  %2297 = vrot.lane.b32.xlu1 %v5012_v18, %s5650_s9  ;;  %v1563_v1 = vrot.slane %v1562_v20, 4  ;;  %v1238_v3 = vor.u32 %v5716_v13, %v1233_v14  ;;  %v1241_v25 = vshll.u32 %v4864_v61, 16  ;;  %v319_v26 = vshrl.u32 %v267_v15, 16  ;;  %v5835_v20 = vld [vmem:[%s5704_s22 + $0xb0] sm:$0x1] }
  0x26   : > { %v1471_v28 = vsel %vm5721_vm4, %v1469_v23, %v1470_v12  ;;  %v322_v29 = vshll.u32 %v267_v15, 16  ;;  %v328_v30 = vshll.u32 %v5732_v33, 16  ;;  %v332_v31 = vshrl.u32 %v5732_v33, 16  ;;  %5173 = vmatpush3.bf16.msra.mxu0 %v5416_v50  ;;  %5352 = vmatpush3.bf16.msra.mxu1 %v5416_v50 }
  0x27   : > { %v1568_v13 = vsel %vm5744_vm5, %v1563_v1, %v1567_v21  ;;  %v5072_v35 = vcombine.low %v1468_v22, %v1471_v28  ;;  %v1239_v36 = vrot.slane %v1238_v3, 4  ;;  %v1243_v37 = vrot.slane %v1241_v25, 5 }
  0x28   : > { %v5092_v40 = vcombine.low %v1558_v19, %v1568_v13  ;;  %v321_v41 = vrot.slane %v319_v26, 4  ;;  %v324_v42 = vrot.slane %v322_v29, 5  ;;  %v330_v33 = vrot.slane %v328_v30, 5 }
  0x29   : > { %2577 = vrot.lane.b32.xlu1 %v5072_v35, %s5648_s29  ;;  %v1244_v45 = vsel %vm5744_vm5, %v1239_v36, %v1243_v37  ;;  %v334_v46 = vrot.slane %v332_v31, 4  ;;  %v338_v47 = vshll.u32 %v5735_v38, 16  ;;  %v607_v49 = vshrl.u32 %v291_v32, 16  ;;  %v5856_v37 = vld [vmem:[%s5704_s22 + $0x20] sm:$0x1] }
  0x2a   : > { %2729 = vrot.lane.b32.xlu0 %v5092_v40, %s5651_s24  ;;  %v5056_v51 = vcombine.low %v1234_v24, %v1244_v45  ;;  %v325_v52 = vor.u32 %v324_v42, %v321_v41  ;;  %v610_v53 = vshll.u32 %v291_v32, 16  ;;  %v616_v54 = vshll.u32 %v5803_v39, 16  ;;  %v5852_v32 = vld [vmem:[%s5704_s22 + $0x1c] sm:$0xf]  ;;  %v5418_v45 = vld [vmem:[%s8249_s1 + $0x20] sm:$0xff]  }
  0x2b   : > { %v335_v56 = vor.u32 %v334_v46, %v330_v33  ;;  %v340_v38 = vrot.slane %v338_v47, 5  ;;  %v609_v57 = vrot.slane %v607_v49, 4  ;;  %v620_v58 = vshrl.u32 %v5803_v39, 16 }
  0x2c   : > { %v326_v60 = vrot.slane %v325_v52, 4  ;;  %v612_v61 = vrot.slane %v610_v53, 5  ;;  %v618_v62 = vrot.slane %v616_v54, 5  ;;  %v626_v63 = vshll.u32 %v5813_v48, 16  ;;  %v269_v54 = vld [vmem:[%s5704_s22 + $0xc] sm:$0xf] }
  0x2d   : > { %v336_v0 = vrot.slane %v335_v56, 4  ;;  %v622_v2 = vrot.slane %v620_v58, 4  ;;  %v1834_v4 = vshrl.u32 %v4924_v55, 16  ;;  %v1837_v5 = vshll.u32 %v4924_v55, 16 }
  0x2e   : > { %2497 = vrot.lane.b32.xlu0 %v5056_v51, %s5649_s8  ;;  %v331_v6 = vsel %vm5744_vm5, %v326_v60, %v330_v33  ;;  %v613_v7 = vor.u32 %v612_v61, %v609_v57  ;;  %v628_v8 = vrot.slane %v626_v63, 5  ;;  %v1847_v9 = vshrl.u32 %v5823_v59, 16 }
  0x2f   : > { %v341_v11 = vsel %vm5744_vm5, %v336_v0, %v340_v38  ;;  %v623_v12 = vor.u32 %v622_v2, %v618_v62  ;;  %v1836_v14 = vrot.slane %v1834_v4, 4  ;;  %v1839_v15 = vrot.slane %v1837_v5, 5  ;;  %v5885_v0 = vld [vmem:[%s5704_s22 + $0x10] sm:$0xf]  ;;  %v5421_v2 = vld [vmem:[%s8249_s1 + $0x28] sm:$0xff]  }
  0x30   : > { %v4996_v16 = vcombine.low %v331_v6, %v341_v11  ;;  %v614_v18 = vrot.slane %v613_v7, 4  ;;  %v5088_v19 = vcombine.low %v4924_v55, %v5823_v59  ;;  %v4816_v22 = vrot.slane %v714_v10, 9  ;;  %v5420_v55 = vld [vmem:[%s8249_s1 + $0x68] sm:$0xff]   ;;  %v5894_v6 = vld [vmem:[%s5704_s22 + $0x14] sm:$0x1] }
  0x31   : > { %v624_v21 = vrot.slane %v623_v12, 4  ;;  %v855_v23 = vrot.slane %v5803_v39, 5  ;;  %v858_v24 = vrot.slane %v5813_v48, 5  ;;  %v1840_v3 = vor.u32 %v1839_v15, %v1836_v14  ;;  %v5417_v39 = vld [vmem:[%s8249_s1 + $0x60] sm:$0xff]  }
  0x32   : > { %2217 = vrot.lane.b32.xlu1 %v4996_v16, %s5652_s25  ;;  %v619_v1 = vsel %vm5744_vm5, %v614_v18, %v618_v62  ;;  %v1843_v25 = vshll.u32 %v5823_v59, 16  ;;  %v1849_v26 = vrot.slane %v1847_v9, 4  ;;  %v1853_v31 = vshll.u32 %v5835_v20, 16  ;;  %5174 = vmatprep.subr.bf16.mxu0 %v5417_v39  ;;  %v5422_v9 = vld [vmem:[%s8249_s1 + $0x70] sm:$0xff]   ;;  %v5902_v15 = vld [vmem:[%s5704_s22 + $0x24] sm:$0xf] }
  0x33   : > { %v629_v28 = vsel %vm5744_vm5, %v624_v21, %v628_v8  ;;  %v856_v29 = vsel %vm5721_vm4, %v4816_v22, %v855_v23  ;;  %v857_v30 = vrot.slane %v855_v23, 4  ;;  %v2079_v13 = vrot.slane %v5823_v59, 5  ;;  %5345 = vmatprep.subr.bf16.mxu1 %v5417_v39  ;;  %5175 = vmatpush3.bf16.msra.mxu0 %v5418_v45  ;;  %v5423_v22 = vld [vmem:[%s8249_s1 + $0x30] sm:$0xff]  }
  0x34   : > { %v5008_v34 = vcombine.low %v619_v1, %v629_v28  ;;  %v1841_v35 = vrot.slane %v1840_v3, 4  ;;  %v1845_v36 = vrot.slane %v1843_v25, 5  ;;  %v1855_v41 = vrot.slane %v1853_v31, 5  ;;  %5353 = vmatpush3.bf16.msra.mxu1 %v5418_v45  ;;  %5176 = vmatprep.subr.bf16.mxu0 %v5420_v55  ;;  %v5425_v25 = vld [vmem:[%s8249_s1 + $0x78] sm:$0xff]   ;;  %v703_v31 = vld [vmem:[%s5704_s22 + $0xc] sm:$0xe] }
  0x35   : > { %v859_v40 = vsel %vm5721_vm4, %v857_v30, %v858_v24  ;;  %v958_v42 = vshrl.u32 %v5844_v27, 16  ;;  %v961_v33 = vshll.u32 %v5844_v27, 16  ;;  %v971_v49 = vshrl.u32 %v5852_v32, 16  ;;  %5346 = vmatprep.subr.bf16.mxu1 %v5420_v55 }
  0x36   : > { %2241 = vrot.lane.b32.xlu0 %v5008_v34, %s5652_s25  ;;  %2673 = vrot.lane.b32.xlu1 %v5088_v19, %s5647_s26  ;;  %v5024_v46 = vcombine.low %v856_v29, %v859_v40  ;;  %v1846_v47 = vsel %vm5744_vm5, %v1841_v35, %v1845_v36  ;;  %v1850_v48 = vor.u32 %v1849_v26, %v1845_v36  ;;  %v967_v53 = vshll.u32 %v5852_v32, 16  ;;  %v4903_v29 = vld [vmem:[%s5704_s22 + $0x28] sm:$0xf] }
  0x37   : > { %v960_v50 = vrot.slane %v958_v42, 4  ;;  %v963_v51 = vrot.slane %v961_v33, 5  ;;  %v5029_v52 = vcombine.low %v5844_v27, %v5852_v32  ;;  %v973_v38 = vrot.slane %v971_v49, 4  ;;  %5177 = vmatpush3.bf16.msra.mxu0 %v5421_v2  ;;  %v4933_v42 = vld [vmem:[%s5704_s22 + $0x2c] sm:$0x1]  ;;  %v5427_v33 = vld [vmem:[%s8249_s1 + $0x38] sm:$0xff]  }
  0x38   : > { %v1851_v56 = vrot.slane %v1850_v48, 4  ;;  %v977_v57 = vshll.u32 %v5856_v37, 16  ;;  %v4885_v58 = vrot.slane %v4869_v44, 9  ;;  %v969_v61 = vrot.slane %v967_v53, 5  ;;  %5354 = vmatpush3.bf16.msra.mxu1 %v5421_v2  ;;  %5178 = vmatprep.subr.bf16.mxu0 %v5422_v9  ;;  %v5931_v48 = vld [vmem:[%s5704_s22 + $0xa8] sm:$0xf] }
  0x39   : > { %v964_v60 = vor.u32 %v963_v51, %v960_v50  ;;  %v1390_v62 = vrot.slane %v5852_v32, 5  ;;  %v1393_v63 = vrot.slane %v5856_v37, 5  ;;  %v343_v7 = vshrl.u32 %v269_v54, 16  ;;  %5347 = vmatprep.subr.bf16.mxu1 %v5422_v9  ;;  %v4881_v9 = vld [vmem:[%s5704_s22 + $0xa8] sm:$0xe] }
  0x3a   : > { %2321 = vrot.lane.b32.xlu0 %v5024_v46, %s5650_s9  ;;  %v1856_v4 = vsel %vm5744_vm5, %v1851_v56, %v1855_v41  ;;  %v979_v5 = vrot.slane %v977_v57, 5  ;;  %v346_v8 = vshll.u32 %v269_v54, 16  ;;  %v974_v12 = vor.u32 %v973_v38, %v969_v61 }
  0x3b   : > { %v5104_v10 = vcombine.low %v1846_v47, %v1856_v4  ;;  %v965_v11 = vrot.slane %v964_v60, 4  ;;  %v1391_v14 = vsel %vm5721_vm4, %v4885_v58, %v1390_v62  ;;  %v1392_v16 = vrot.slane %v1390_v62, 4  ;;  %5179 = vmatpush3.bf16.msra.mxu0 %v5423_v22  ;;  %v4847_v60 = vld [vmem:[%s5704_s22 + $0xac] sm:$0xf]  ;;  %v4865_v4 = vld [vmem:[%s5704_s22 + $0xb0] sm:$0x1] }
  0x3c   : > { %v345_v18 = vrot.slane %v343_v7, 4  ;;  %v348_v19 = vrot.slane %v346_v8, 5  ;;  %v352_v21 = vshll.u32 %v5885_v0, 16  ;;  %v975_v24 = vrot.slane %v974_v12, 4  ;;  %5355 = vmatpush3.bf16.msra.mxu1 %v5423_v22  ;;  %5180 = vmatprep.subr.bf16.mxu0 %v5425_v25 }
  0x3d   : > { %2753 = vrot.lane.b32.xlu1 %v5104_v10, %s5651_s24  ;;  %v970_v23 = vsel %vm5744_vm5, %v965_v11, %v969_v61  ;;  %v356_v1 = vshrl.u32 %v5885_v0, 16  ;;  %v362_v3 = vshll.u32 %v5894_v6, 16  ;;  %v1394_v26 = vsel %vm5721_vm4, %v1392_v16, %v1393_v63  ;;  %5348 = vmatprep.subr.bf16.mxu1 %v5425_v25 }
  0x3e   : > { %2395 = vrot.lane.b32.xlu0 %v5029_v52, %s5646_s23  ;;  %v349_v27 = vor.u32 %v348_v19, %v345_v18  ;;  %v354_v28 = vrot.slane %v352_v21, 5  ;;  %v1570_v30 = vshrl.u32 %v5902_v15, 16  ;;  %v980_v32 = vsel %vm5744_vm5, %v975_v24, %v979_v5  ;;  %v293_v21 = vld [vmem:[%s5704_s22 + $0x9c] sm:$0xf] }
  0x3f   : > { %v5061_v34 = vcombine.low %v1391_v14, %v1394_v26  ;;  %v358_v35 = vrot.slane %v356_v1, 4  ;;  %v364_v36 = vrot.slane %v362_v3, 5  ;;  %v5045_v37 = vcombine.low %v970_v23, %v980_v32  ;;  %5181 = vmatpush3.bf16.msra.mxu0 %v5427_v33 }
  0x40   : > { %v350_v39 = vrot.slane %v349_v27, 4  ;;  %v1572_v40 = vrot.slane %v1570_v30, 4  ;;  %v1573_v41 = vshll.u32 %v5902_v15, 16  ;;  %v1583_v45 = vshrl.u32 %v4903_v29, 16  ;;  %5356 = vmatpush3.bf16.msra.mxu1 %v5427_v33 }
  0x41   : > { %v359_v44 = vor.u32 %v358_v35, %v354_v28  ;;  %v5077_v46 = vcombine.low %v5902_v15, %v4903_v29  ;;  %v4805_v47 = vrot.slane %v703_v31, 9  ;;  %2475 = vrot.lane.b32.xlu1 %v5045_v37, %s5649_s8  ;;  %v778_v51 = vrot.slane %v5885_v0, 5  ;;  %v312_v31 = vld [vmem:[%s5704_s22 + $0xa4] sm:$0x1] }
  0x42   : > { %2555 = vrot.lane.b32.xlu0 %v5061_v34, %s5648_s29  ;;  %v355_v49 = vsel %vm5744_vm5, %v350_v39, %v354_v28  ;;  %v1575_v50 = vrot.slane %v1573_v41, 5  ;;  %v781_v52 = vrot.slane %v5894_v6, 5  ;;  %v1579_v54 = vshll.u32 %v4903_v29, 16  ;;  %v294_v28 = vld [vmem:[%s5704_s22 + $0xa0] sm:$0xf] }
  0x43   : > { %v360_v53 = vrot.slane %v359_v44, 4  ;;  %v1585_v55 = vrot.slane %v1583_v45, 4  ;;  %v1589_v56 = vshll.u32 %v4933_v42, 16  ;;  %v779_v38 = vsel %vm5721_vm4, %v4805_v47, %v778_v51 }
  0x44   : > { %v780_v57 = vrot.slane %v778_v51, 4  ;;  %v1576_v58 = vor.u32 %v1575_v50, %v1572_v40  ;;  %v1246_v61 = vshrl.u32 %v5931_v48, 16  ;;  %v1581_v63 = vrot.slane %v1579_v54, 5  ;;  %v4926_v40 = vld [vmem:[%s5704_s22 + $0xb4] sm:$0xf] }
  0x45   : > { %v365_v62 = vsel %vm5744_vm5, %v360_v53, %v364_v36  ;;  %v1591_v0 = vrot.slane %v1589_v56, 5  ;;  %v1249_v2 = vshll.u32 %v5931_v48, 16  ;;  %v1259_v14 = vshrl.u32 %v4847_v60, 16 }
  0x46   : > { %v4997_v5 = vcombine.low %v355_v49, %v365_v62  ;;  %2651 = vrot.lane.b32.xlu0 %v5077_v46, %s5647_s26  ;;  %v782_v6 = vsel %vm5721_vm4, %v780_v57, %v781_v52  ;;  %v1577_v7 = vrot.slane %v1576_v58, 4  ;;  %v1248_v8 = vrot.slane %v1246_v61, 4  ;;  %v5970_v49 = vld [vmem:[%s5704_s22 + $0xb8] sm:$0xf]  ;;  %v715_v57 = vld [vmem:[%s5704_s22 + $0x9c] sm:$0xe] }
  0x47   : > { %v5013_v10 = vcombine.low %v779_v38, %v782_v6  ;;  %v1586_v11 = vor.u32 %v1585_v55, %v1581_v63  ;;  %v1251_v12 = vrot.slane %v1249_v2, 5  ;;  %v5041_v16 = vcombine.low %v5931_v48, %v4847_v60  ;;  %v5983_v6 = vld [vmem:[%s5704_s22 + $0x24] sm:$0xf] }
  0x48   : > { %2219 = vrot.lane.b32.xlu1 %v4997_v5, %s5652_s25  ;;  %v1582_v15 = vsel %vm5744_vm5, %v1577_v7, %v1581_v63  ;;  %v1255_v18 = vshll.u32 %v4847_v60, 16  ;;  %v1265_v19 = vshll.u32 %v4865_v4, 16  ;;  %v1261_v24 = vrot.slane %v1259_v14, 4  ;;  %v5980_v5 = vld [vmem:[%s5704_s22 + $0xbc] sm:$0x1] }
  0x49   : > { %v1587_v22 = vrot.slane %v1586_v11, 4  ;;  %v1252_v23 = vor.u32 %v1251_v12, %v1248_v8  ;;  %v4897_v1 = vrot.slane %v4881_v9, 9  ;;  %v1474_v26 = vrot.slane %v4847_v60, 5 }
  0x4a   : > { %v1257_v3 = vrot.slane %v1255_v18, 5  ;;  %v1267_v25 = vrot.slane %v1265_v19, 5  ;;  %v1477_v27 = vrot.slane %v4865_v4, 5  ;;  %v631_v32 = vshrl.u32 %v293_v21, 16 }
  0x4b   : > { %v1592_v29 = vsel %vm5744_vm5, %v1587_v22, %v1591_v0  ;;  %v1253_v30 = vrot.slane %v1252_v23, 4  ;;  %v634_v34 = vshll.u32 %v293_v21, 16  ;;  %v1475_v37 = vsel %vm5721_vm4, %v4897_v1, %v1474_v26 }
  0x4c   : > { %2299 = vrot.lane.b32.xlu1 %v5013_v10, %s5650_s9  ;;  %v5093_v35 = vcombine.low %v1582_v15, %v1592_v29  ;;  %v1262_v36 = vor.u32 %v1261_v24, %v1257_v3  ;;  %v1476_v39 = vrot.slane %v1474_v26, 4  ;;  %v633_v42 = vrot.slane %v631_v32, 4  ;;  %v4854_v29 = vld [vmem:[%s5704_s22 + $0x2c] sm:$0x1] }
  0x4d   : > { %v1258_v41 = vsel %vm5744_vm5, %v1253_v30, %v1257_v3  ;;  %v636_v33 = vrot.slane %v634_v34, 5  ;;  %v640_v44 = vshll.u32 %v294_v28, 16  ;;  %v644_v47 = vshrl.u32 %v294_v28, 16  ;;  %v4870_v30 = vld [vmem:[%s5704_s22 + $0x24] sm:$0xe] }
  0x4e   : > { %2731 = vrot.lane.b32.xlu0 %v5093_v35, %s5651_s24  ;;  %v1263_v45 = vrot.slane %v1262_v36, 4  ;;  %v1478_v46 = vsel %vm5721_vm4, %v1476_v39, %v1477_v27  ;;  %v650_v48 = vshll.u32 %v312_v31, 16  ;;  %v1858_v53 = vshrl.u32 %v4926_v40, 16  ;;  %v271_v36 = vld [vmem:[%s5704_s22 + $0x18] sm:$0xf] }
  0x4f   : > { %v637_v51 = vor.u32 %v636_v33, %v633_v42  ;;  %v642_v52 = vrot.slane %v640_v44, 5  ;;  %v5073_v55 = vcombine.low %v1475_v37, %v1478_v46  ;;  %v646_v56 = vrot.slane %v644_v47, 4  ;;  %v6010_v42 = vld [vmem:[%s5704_s22 + $0x1c] sm:$0xf] }
  0x50   : > { %2419 = vrot.lane.b32.xlu1 %v5041_v16, %s5646_s23  ;;  %v1268_v54 = vsel %vm5744_vm5, %v1263_v45, %v1267_v25  ;;  %v1861_v38 = vshll.u32 %v4926_v40, 16  ;;  %v1860_v61 = vrot.slane %v1858_v53, 4  ;;  %v1871_v62 = vshrl.u32 %v5970_v49, 16  ;;  %v4825_v16 = vld [vmem:[%s5704_s22 + $0x28] sm:$0xf] }
  0x51   : > { %v5057_v58 = vcombine.low %v1258_v41, %v1268_v54  ;;  %v638_v60 = vrot.slane %v637_v51, 4  ;;  %v647_v63 = vor.u32 %v646_v56, %v642_v52  ;;  %v652_v0 = vrot.slane %v650_v48, 5 }
  0x52   : > { %v1863_v2 = vrot.slane %v1861_v38, 5  ;;  %v5089_v4 = vcombine.low %v4926_v40, %v5970_v49  ;;  %v4817_v8 = vrot.slane %v715_v57, 9  ;;  %v862_v9 = vrot.slane %v294_v28, 5  ;;  %v301_v38 = vld [vmem:[%s5704_s22 + $0x20] sm:$0x1] }
  0x53   : > { %2499 = vrot.lane.b32.xlu0 %v5057_v58, %s5649_s8  ;;  %v643_v7 = vsel %vm5744_vm5, %v638_v60, %v642_v52  ;;  %v865_v10 = vrot.slane %v312_v31, 5  ;;  %v648_v11 = vrot.slane %v647_v63, 4  ;;  %v1867_v14 = vshll.u32 %v5970_v49, 16  ;;  %v4905_v63 = vld [vmem:[%s5704_s22 + $0x34] sm:$0xf] }
  0x54   : > { %2579 = vrot.lane.b32.xlu1 %v5073_v55, %s5648_s29  ;;  %v1864_v12 = vor.u32 %v1863_v2, %v1860_v61  ;;  %v1873_v15 = vrot.slane %v1871_v62, 4  ;;  %v863_v19 = vsel %vm5721_vm4, %v4817_v8, %v862_v9  ;;  %v864_v21 = vrot.slane %v862_v9, 4  ;;  %v4904_v62 = vld [vmem:[%s5704_s22 + $0x30] sm:$0xf] }
  0x55   : > { %v1877_v22 = vshll.u32 %v5980_v5, 16  ;;  %v653_v23 = vsel %vm5744_vm5, %v648_v11, %v652_v0  ;;  %v1869_v1 = vrot.slane %v1867_v14, 5  ;;  %v982_v3 = vshrl.u32 %v5983_v6, 16 }
  0x56   : > { %v1865_v24 = vrot.slane %v1864_v12, 4  ;;  %v5009_v25 = vcombine.low %v643_v7, %v653_v23  ;;  %v866_v26 = vsel %vm5721_vm4, %v864_v21, %v865_v10  ;;  %v985_v28 = vshll.u32 %v5983_v6, 16  ;;  %v704_v7 = vld [vmem:[%s5704_s22 + $0x18] sm:$0xe] }
  0x57   : > { %v1879_v27 = vrot.slane %v1877_v22, 5  ;;  %v5025_v31 = vcombine.low %v863_v19, %v866_v26  ;;  %v1874_v34 = vor.u32 %v1873_v15, %v1869_v1  ;;  %v984_v35 = vrot.slane %v982_v3, 4  ;;  %v4934_v26 = vld [vmem:[%s5704_s22 + $0x38] sm:$0x1] }
  0x58   : > { %2675 = vrot.lane.b32.xlu1 %v5089_v4, %s5647_s26  ;;  %v1870_v32 = vsel %vm5744_vm5, %v1865_v24, %v1869_v1  ;;  %2243 = vrot.lane.b32.xlu0 %v5009_v25, %s5652_s25  ;;  %v987_v37 = vrot.slane %v985_v28, 5  ;;  %v995_v39 = vshrl.u32 %v4825_v16, 16  ;;  %v5030_v40 = vcombine.low %v5983_v6, %v4825_v16 }
  0x59   : > { %v991_v41 = vshll.u32 %v4825_v16, 16  ;;  %v1875_v33 = vrot.slane %v1874_v34, 4  ;;  %v1001_v44 = vshll.u32 %v4854_v29, 16  ;;  %v4886_v45 = vrot.slane %v4870_v30, 9 }
  0x5a   : > { %v1397_v46 = vrot.slane %v4825_v16, 5  ;;  %v988_v47 = vor.u32 %v987_v37, %v984_v35  ;;  %v997_v51 = vrot.slane %v995_v39, 4  ;;  %v1400_v52 = vrot.slane %v4854_v29, 5 }
  0x5b   : > { %v993_v48 = vrot.slane %v991_v41, 5  ;;  %v1880_v53 = vsel %vm5744_vm5, %v1875_v33, %v1879_v27  ;;  %v1003_v54 = vrot.slane %v1001_v44, 5  ;;  %v367_v61 = vshrl.u32 %v271_v36, 16 }
  0x5c   : > { %v1398_v55 = vsel %vm5721_vm4, %v4886_v45, %v1397_v46  ;;  %v1399_v56 = vrot.slane %v1397_v46, 4  ;;  %2323 = vrot.lane.b32.xlu0 %v5025_v31, %s5650_s9  ;;  %v5105_v57 = vcombine.low %v1870_v32, %v1880_v53  ;;  %v989_v58 = vrot.slane %v988_v47, 4  ;;  %v6033_v31 = vld [vmem:[%s5704_s22 + $0xb4] sm:$0xf]  ;;  %v6036_v32 = vld [vmem:[%s5704_s22 + $0xb8] sm:$0xf] }
  0x5d   : > { %v998_v60 = vor.u32 %v997_v51, %v993_v48  ;;  %v370_v2 = vshll.u32 %v271_v36, 16  ;;  %v376_v4 = vshll.u32 %v6010_v42, 16  ;;  %v380_v6 = vshrl.u32 %v6010_v42, 16 }
  0x5e   : > { %v1401_v0 = vsel %vm5721_vm4, %v1399_v56, %v1400_v52  ;;  %2755 = vrot.lane.b32.xlu1 %v5105_v57, %s5651_s24  ;;  %v994_v8 = vsel %vm5744_vm5, %v989_v58, %v993_v48  ;;  %v369_v11 = vrot.slane %v367_v61, 4  ;;  %v386_v16 = vshll.u32 %v301_v38, 16  ;;  %v4866_v48 = vld [vmem:[%s5704_s22 + $0xbc] sm:$0x1] }
  0x5f   : > { %v999_v9 = vrot.slane %v998_v60, 4  ;;  %v5062_v10 = vcombine.low %v1398_v55, %v1401_v0  ;;  %v372_v12 = vrot.slane %v370_v2, 5  ;;  %v378_v14 = vrot.slane %v376_v4, 5  ;;  %v295_v55 = vld [vmem:[%s5704_s22 + $0xa8] sm:$0xf] }
  0x60   : > { %v382_v15 = vrot.slane %v380_v6, 4  ;;  %2397 = vrot.lane.b32.xlu0 %v5030_v40, %s5646_s23  ;;  %v1594_v21 = vshrl.u32 %v4904_v62, 16  ;;  %v1597_v22 = vshll.u32 %v4904_v62, 16  ;;  %v1607_v23 = vshrl.u32 %v4905_v63, 16 }
  0x61   : > { %v1004_v19 = vsel %vm5744_vm5, %v999_v9, %v1003_v54  ;;  %v373_v1 = vor.u32 %v372_v12, %v369_v11  ;;  %v388_v25 = vrot.slane %v386_v16, 5  ;;  %v5078_v29 = vcombine.low %v4904_v62, %v4905_v63 }
  0x62   : > { %v5046_v24 = vcombine.low %v994_v8, %v1004_v19  ;;  %v383_v3 = vor.u32 %v382_v15, %v378_v14  ;;  %v1596_v27 = vrot.slane %v1594_v21, 4  ;;  %v1599_v28 = vrot.slane %v1597_v22, 5  ;;  %v296_v15 = vld [vmem:[%s5704_s22 + $0xac] sm:$0xf] }
  0x63   : > { %v4806_v30 = vrot.slane %v704_v7, 9  ;;  %v374_v34 = vrot.slane %v373_v1, 4  ;;  %v785_v36 = vrot.slane %v6010_v42, 5  ;;  %v788_v37 = vrot.slane %v301_v38, 5  ;;  %v4882_v42 = vld [vmem:[%s5704_s22 + $0xb4] sm:$0xe] }
  0x64   : > { %2477 = vrot.lane.b32.xlu1 %v5046_v24, %s5649_s8  ;;  %v384_v35 = vrot.slane %v383_v3, 4  ;;  %2557 = vrot.lane.b32.xlu0 %v5062_v10, %s5648_s29  ;;  %v1600_v39 = vor.u32 %v1599_v28, %v1596_v27  ;;  %v1603_v40 = vshll.u32 %v4905_v63, 16  ;;  %v1609_v41 = vrot.slane %v1607_v23, 4  ;;  %v313_v23 = vld [vmem:[%s5704_s22 + $0xb0] sm:$0x1] }
  0x65   : > { %v1613_v33 = vshll.u32 %v4934_v26, 16  ;;  %v379_v44 = vsel %vm5744_vm5, %v374_v34, %v378_v14  ;;  %v786_v46 = vsel %vm5721_vm4, %v4806_v30, %v785_v36  ;;  %v787_v47 = vrot.slane %v785_v36, 4 }
  0x66   : > { %v389_v45 = vsel %vm5744_vm5, %v384_v35, %v388_v25  ;;  %v1601_v52 = vrot.slane %v1600_v39, 4  ;;  %v1605_v53 = vrot.slane %v1603_v40, 5  ;;  %v1270_v38 = vshrl.u32 %v6033_v31, 16 }
  0x67   : > { %v4998_v51 = vcombine.low %v379_v44, %v389_v45  ;;  %v1615_v54 = vrot.slane %v1613_v33, 5  ;;  %v789_v56 = vsel %vm5721_vm4, %v787_v47, %v788_v37  ;;  %v1273_v57 = vshll.u32 %v6033_v31, 16  ;;  %v6077_v37 = vld [vmem:[%s5704_s22 + $0xc4] sm:$0xf]  ;;  %v716_v44 = vld [vmem:[%s5704_s22 + $0xa8] sm:$0xe] }
  0x68   : > { %v1283_v58 = vshrl.u32 %v6036_v32, 16  ;;  %2653 = vrot.lane.b32.xlu0 %v5078_v29, %s5647_s26  ;;  %v5014_v60 = vcombine.low %v786_v46, %v789_v56  ;;  %v1606_v61 = vsel %vm5744_vm5, %v1601_v52, %v1605_v53  ;;  %v1610_v62 = vor.u32 %v1609_v41, %v1605_v53 }
  0x69   : > { %2221 = vrot.lane.b32.xlu1 %v4998_v51, %s5652_s25  ;;  %v1279_v63 = vshll.u32 %v6036_v32, 16  ;;  %v1272_v0 = vrot.slane %v1270_v38, 4  ;;  %v1275_v2 = vrot.slane %v1273_v57, 5  ;;  %v5042_v4 = vcombine.low %v6033_v31, %v6036_v32  ;;  %v4928_v31 = vld [vmem:[%s5704_s22 + $0xc0] sm:$0xf] }
  0x6a   : > { %v1285_v6 = vrot.slane %v1283_v58, 4  ;;  %v1611_v7 = vrot.slane %v1610_v62, 4  ;;  %v1289_v9 = vshll.u32 %v4866_v48, 16  ;;  %v4898_v10 = vrot.slane %v4882_v42, 9 }
  0x6b   : > { %v1281_v8 = vrot.slane %v1279_v63, 5  ;;  %v1276_v11 = vor.u32 %v1275_v2, %v1272_v0  ;;  %v1481_v12 = vrot.slane %v6036_v32, 5  ;;  %v1484_v14 = vrot.slane %v4866_v48, 5  ;;  %v6094_v63 = vld [vmem:[%s5704_s22 + $0x30] sm:$0xf] }
  0x6c   : > { %v655_v16 = vshrl.u32 %v295_v55, 16  ;;  %v1616_v19 = vsel %vm5744_vm5, %v1611_v7, %v1615_v54  ;;  %v1291_v22 = vrot.slane %v1289_v9, 5  ;;  %v658_v24 = vshll.u32 %v295_v55, 16  ;;  %v6086_v54 = vld [vmem:[%s5704_s22 + $0xc8] sm:$0x1] }
  0x6d   : > { %2301 = vrot.lane.b32.xlu1 %v5014_v60, %s5650_s9  ;;  %v1286_v21 = vor.u32 %v1285_v6, %v1281_v8  ;;  %v5094_v1 = vcombine.low %v1606_v61, %v1616_v19  ;;  %v1277_v3 = vrot.slane %v1276_v11, 4  ;;  %v1482_v25 = vsel %vm5721_vm4, %v4898_v10, %v1481_v12  ;;  %v4827_v11 = vld [vmem:[%s5704_s22 + $0x34] sm:$0xf] }
  0x6e   : > { %v1483_v26 = vrot.slane %v1481_v12, 4  ;;  %v657_v28 = vrot.slane %v655_v16, 4  ;;  %v660_v29 = vrot.slane %v658_v24, 5  ;;  %v664_v30 = vshll.u32 %v296_v15, 16  ;;  %v4855_v24 = vld [vmem:[%s5704_s22 + $0x38] sm:$0x1] }
  0x6f   : > { %v1287_v27 = vrot.slane %v1286_v21, 4  ;;  %2733 = vrot.lane.b32.xlu0 %v5094_v1, %s5651_s24  ;;  %v1282_v32 = vsel %vm5744_vm5, %v1277_v3, %v1281_v8  ;;  %v668_v35 = vshrl.u32 %v296_v15, 16  ;;  %v674_v36 = vshll.u32 %v313_v23, 16  ;;  %v4871_v1 = vld [vmem:[%s5704_s22 + $0x30] sm:$0xe] }
  0x70   : > { %v1485_v34 = vsel %vm5721_vm4, %v1483_v26, %v1484_v14  ;;  %v661_v41 = vor.u32 %v660_v29, %v657_v28  ;;  %v666_v33 = vrot.slane %v664_v30, 5  ;;  %v1882_v48 = vshrl.u32 %v4928_v31, 16 }
  0x71   : > { %2421 = vrot.lane.b32.xlu1 %v5042_v4, %s5646_s23  ;;  %v1292_v39 = vsel %vm5744_vm5, %v1287_v27, %v1291_v22  ;;  %v5074_v40 = vcombine.low %v1482_v25, %v1485_v34  ;;  %v670_v47 = vrot.slane %v668_v35, 4  ;;  %v676_v51 = vrot.slane %v674_v36, 5 }
  0x72   : > { %v5058_v46 = vcombine.low %v1282_v32, %v1292_v39  ;;  %v662_v42 = vrot.slane %v661_v41, 4  ;;  %v1885_v52 = vshll.u32 %v4928_v31, 16  ;;  %v1895_v53 = vshrl.u32 %v6077_v37, 16  ;;  %v273_v32 = vld [vmem:[%s5704_s22 + $0x24] sm:$0xf] }
  0x73   : > { %v671_v55 = vor.u32 %v670_v47, %v666_v33  ;;  %v1884_v56 = vrot.slane %v1882_v48, 4  ;;  %v5090_v38 = vcombine.low %v4928_v31, %v6077_v37  ;;  %v4818_v57 = vrot.slane %v716_v44, 9 }
  0x74   : > { %2501 = vrot.lane.b32.xlu0 %v5058_v46, %s5649_s8  ;;  %v667_v58 = vsel %vm5744_vm5, %v662_v42, %v666_v33  ;;  %v1887_v60 = vrot.slane %v1885_v52, 5  ;;  %v869_v61 = vrot.slane %v296_v15, 5  ;;  %v872_v62 = vrot.slane %v313_v23, 5  ;;  %v274_v46 = vld [vmem:[%s5704_s22 + $0x28] sm:$0xf] }
  0x75   : > { %2581 = vrot.lane.b32.xlu1 %v5074_v40, %s5648_s29  ;;  %v672_v0 = vrot.slane %v671_v55, 4  ;;  %v1891_v2 = vshll.u32 %v6077_v37, 16  ;;  %v1897_v4 = vrot.slane %v1895_v53, 4  ;;  %v1901_v6 = vshll.u32 %v6086_v54, 16  ;;  %v302_v42 = vld [vmem:[%s5704_s22 + $0x2c] sm:$0x1] }
  0x76   : > { %v870_v8 = vsel %vm5721_vm4, %v4818_v57, %v869_v61  ;;  %v871_v9 = vrot.slane %v869_v61, 4  ;;  %v1888_v10 = vor.u32 %v1887_v60, %v1884_v56  ;;  %v1006_v16 = vshrl.u32 %v6094_v63, 16  ;;  %v4906_v57 = vld [vmem:[%s5704_s22 + $0x3c] sm:$0xf] }
  0x77   : > { %v677_v12 = vsel %vm5744_vm5, %v672_v0, %v676_v51  ;;  %v1893_v14 = vrot.slane %v1891_v2, 5  ;;  %v1903_v15 = vrot.slane %v1901_v6, 5  ;;  %v1009_v23 = vshll.u32 %v6094_v63, 16 }
  0x78   : > { %v5010_v19 = vcombine.low %v667_v58, %v677_v12  ;;  %v873_v21 = vsel %vm5721_vm4, %v871_v9, %v872_v62  ;;  %v1889_v22 = vrot.slane %v1888_v10, 4  ;;  %v1008_v26 = vrot.slane %v1006_v16, 4  ;;  %v6130_v10 = vld [vmem:[%s5704_s22 + $0x40] sm:$0xf]  ;;  %v705_v12 = vld [vmem:[%s5704_s22 + $0x24] sm:$0xe] }
  0x79   : > { %2677 = vrot.lane.b32.xlu1 %v5090_v38, %s5647_s26  ;;  %v5026_v3 = vcombine.low %v870_v8, %v873_v21  ;;  %v1898_v25 = vor.u32 %v1897_v4, %v1893_v14  ;;  %v1019_v27 = vshrl.u32 %v4827_v11, 16  ;;  %v1011_v29 = vrot.slane %v1009_v23, 5 }
  0x7a   : > { %2245 = vrot.lane.b32.xlu0 %v5010_v19, %s5652_s25  ;;  %v1894_v28 = vsel %vm5744_vm5, %v1889_v22, %v1893_v14  ;;  %v5031_v30 = vcombine.low %v6094_v63, %v4827_v11  ;;  %v1015_v31 = vshll.u32 %v4827_v11, 16  ;;  %v1025_v36 = vshll.u32 %v4855_v24, 16 }
  0x7b   : > { %v1899_v34 = vrot.slane %v1898_v25, 4  ;;  %v1021_v35 = vrot.slane %v1019_v27, 4  ;;  %v4887_v39 = vrot.slane %v4871_v1, 9  ;;  %v1012_v40 = vor.u32 %v1011_v29, %v1008_v26  ;;  %v6137_v1 = vld [vmem:[%s5704_s22 + $0x44] sm:$0x1] }
  0x7c   : > { %v1017_v41 = vrot.slane %v1015_v31, 5  ;;  %v1404_v33 = vrot.slane %v4827_v11, 5  ;;  %v1407_v44 = vrot.slane %v4855_v24, 5  ;;  %v1027_v48 = vrot.slane %v1025_v36, 5 }
  0x7d   : > { %v1904_v47 = vsel %vm5744_vm5, %v1899_v34, %v1903_v15  ;;  %v391_v51 = vshrl.u32 %v273_v32, 16  ;;  %v394_v52 = vshll.u32 %v273_v32, 16  ;;  %v1013_v55 = vrot.slane %v1012_v40, 4 }
  0x7e   : > { %2325 = vrot.lane.b32.xlu0 %v5026_v3, %s5650_s9  ;;  %v5106_v53 = vcombine.low %v1894_v28, %v1904_v47  ;;  %v1022_v56 = vor.u32 %v1021_v35, %v1017_v41  ;;  %v1405_v38 = vsel %vm5721_vm4, %v4887_v39, %v1404_v33  ;;  %v1406_v58 = vrot.slane %v1404_v33, 4  ;;  %v6142_v28 = vld [vmem:[%s5704_s22 + $0xc0] sm:$0xf] }
  0x7f   : > { %v393_v60 = vrot.slane %v391_v51, 4  ;;  %v396_v61 = vrot.slane %v394_v52, 5  ;;  %v400_v62 = vshll.u32 %v274_v46, 16  ;;  %v1018_v63 = vsel %vm5744_vm5, %v1013_v55, %v1017_v41  ;;  %v4867_v52 = vld [vmem:[%s5704_s22 + $0xc8] sm:$0x1] }
  0x80   : > { %2757 = vrot.lane.b32.xlu1 %v5106_v53, %s5651_s24  ;;  %v1023_v0 = vrot.slane %v1022_v56, 4  ;;  %v404_v2 = vshrl.u32 %v274_v46, 16  ;;  %v410_v4 = vshll.u32 %v302_v42, 16  ;;  %v1408_v6 = vsel %vm5721_vm4, %v1406_v58, %v1407_v44  ;;  %v4851_v44 = vld [vmem:[%s5704_s22 + $0xc4] sm:$0xf] }
  0x81   : > { %v397_v8 = vor.u32 %v396_v61, %v393_v60  ;;  %v402_v9 = vrot.slane %v400_v62, 5  ;;  %v1618_v11 = vshrl.u32 %v4906_v57, 16  ;;  %v5063_v15 = vcombine.low %v1405_v38, %v1408_v6 }
  0x82   : > { %2399 = vrot.lane.b32.xlu0 %v5031_v30, %s5646_s23  ;;  %v1028_v14 = vsel %vm5744_vm5, %v1023_v0, %v1027_v48  ;;  %v406_v16 = vrot.slane %v404_v2, 4  ;;  %v412_v19 = vrot.slane %v410_v4, 5  ;;  %v1621_v24 = vshll.u32 %v4906_v57, 16 }
  0x83   : > { %v5047_v21 = vcombine.low %v1018_v63, %v1028_v14  ;;  %v398_v22 = vrot.slane %v397_v8, 4  ;;  %v1620_v23 = vrot.slane %v1618_v11, 4  ;;  %v1631_v25 = vshrl.u32 %v6130_v10, 16  ;;  %v297_v8 = vld [vmem:[%s5704_s22 + $0xb4] sm:$0xf] }
  0x84   : > { %v407_v3 = vor.u32 %v406_v16, %v402_v9  ;;  %v5079_v26 = vcombine.low %v4906_v57, %v6130_v10  ;;  %v4807_v27 = vrot.slane %v705_v12, 9  ;;  %v1623_v30 = vrot.slane %v1621_v24, 5  ;;  %v4883_v57 = vld [vmem:[%s5704_s22 + $0xc0] sm:$0xe] }
  0x85   : > { %2479 = vrot.lane.b32.xlu1 %v5047_v21, %s5649_s8  ;;  %v403_v29 = vsel %vm5744_vm5, %v398_v22, %v402_v9  ;;  %v792_v31 = vrot.slane %v274_v46, 5  ;;  %v795_v32 = vrot.slane %v302_v42, 5  ;;  %v1627_v35 = vshll.u32 %v6130_v10, 16  ;;  %v6170_v9 = vld [vmem:[%s5704_s22 + $0xb8] sm:$0xf] }
  0x86   : > { %2559 = vrot.lane.b32.xlu0 %v5063_v15, %s5648_s29  ;;  %v408_v34 = vrot.slane %v407_v3, 4  ;;  %v1633_v36 = vrot.slane %v1631_v25, 4  ;;  %v1637_v39 = vshll.u32 %v6137_v1, 16  ;;  %v1624_v33 = vor.u32 %v1623_v30, %v1620_v23  ;;  %v6178_v3 = vld [vmem:[%s5704_s22 + $0xcc] sm:$0xf] }
  0x87   : > { %v793_v40 = vsel %vm5721_vm4, %v4807_v27, %v792_v31  ;;  %v794_v41 = vrot.slane %v792_v31, 4  ;;  %v1294_v47 = vshrl.u32 %v6142_v28, 16  ;;  %v1629_v48 = vrot.slane %v1627_v35, 5 }
  0x88   : > { %v413_v46 = vsel %vm5744_vm5, %v408_v34, %v412_v19  ;;  %v1639_v42 = vrot.slane %v1637_v39, 5  ;;  %v1297_v51 = vshll.u32 %v6142_v28, 16  ;;  %v1625_v56 = vrot.slane %v1624_v33, 4  ;;  %v6175_v19 = vld [vmem:[%s5704_s22 + $0xbc] sm:$0x1] }
  0x89   : > { %v4999_v53 = vcombine.low %v403_v29, %v413_v46  ;;  %v796_v55 = vsel %vm5721_vm4, %v794_v41, %v795_v32  ;;  %v1296_v38 = vrot.slane %v1294_v47, 4  ;;  %v1634_v60 = vor.u32 %v1633_v36, %v1629_v48  ;;  %v6172_v11 = vpop.permute.xlu1 %2417  ;;  %v6196_v46 = vld [vmem:[%s5704_s22 + $0xd0] sm:$0xf] }
  0x8a   : > { %2655 = vrot.lane.b32.xlu0 %v5079_v26, %s5647_s26  ;;  %v5015_v58 = vcombine.low %v793_v40, %v796_v55  ;;  %v1299_v61 = vrot.slane %v1297_v51, 5  ;;  %v1307_v62 = vshrl.u32 %v4851_v44, 16  ;;  %v6162_v63 = vpop.permute.xlu0 %2393  ;;  %v1630_v0 = vsel %vm5744_vm5, %v1625_v56, %v1629_v48 }
  0x8b   : > { %2223 = vrot.lane.b32.xlu1 %v4999_v53, %s5652_s25  ;;  %v5043_v2 = vcombine.low %v6142_v28, %v4851_v44  ;;  %v1303_v4 = vshll.u32 %v4851_v44, 16  ;;  %v1313_v6 = vshll.u32 %v4867_v52, 16  ;;  %v1635_v12 = vrot.slane %v1634_v60, 4 }
  0x8c   : > { %v1300_v14 = vor.u32 %v1299_v61, %v1296_v38  ;;  %v1309_v15 = vrot.slane %v1307_v62, 4  ;;  %v4899_v16 = vrot.slane %v4883_v57, 9  ;;  %v1488_v23 = vrot.slane %v4851_v44, 5 }
  0x8d   : > { %v1305_v21 = vrot.slane %v1303_v4, 5  ;;  %v1315_v22 = vrot.slane %v1313_v6, 5  ;;  %v1491_v24 = vrot.slane %v4867_v52, 5  ;;  %v1640_v25 = vsel %vm5744_vm5, %v1635_v12, %v1639_v42  ;;  %v4947_v12 = vld [vmem:[%s5704_s22 + $0xd4] sm:$0x1] }
  0x8e   : > { %v1301_v26 = vrot.slane %v1300_v14, 4  ;;  %v679_v27 = vshrl.u32 %v297_v8, 16  ;;  %v682_v28 = vshll.u32 %v297_v8, 16  ;;  %v5095_v29 = vcombine.low %v1630_v0, %v1640_v25  ;;  %v5610_v42 = vld [vmem:[%s5704_s22 + $0xb8] sm:$0xf] }
  0x8f   : > { %2303 = vrot.lane.b32.xlu1 %v5015_v58, %s5650_s9  ;;  %v1310_v30 = vor.u32 %v1309_v15, %v1305_v21  ;;  %v1489_v31 = vsel %vm5721_vm4, %v4899_v16, %v1488_v23  ;;  %v1490_v32 = vrot.slane %v1488_v23, 4  ;;  %v688_v39 = vshll.u32 %v6170_v9, 16  ;;  %v6188_v40 = vpop.permute.xlu0 %2649  ;;  %v717_v58 = vld [vmem:[%s5704_s22 + $0xb4] sm:$0xe] }
  0x90   : > { %v1306_v34 = vsel %vm5744_vm5, %v1301_v26, %v1305_v21  ;;  %v681_v35 = vrot.slane %v679_v27, 4  ;;  %v684_v36 = vrot.slane %v682_v28, 5  ;;  %2735 = vrot.lane.b32.xlu0 %v5095_v29, %s5651_s24  ;;  %v692_v44 = vshrl.u32 %v6170_v9, 16 }
  0x91   : > { %v1311_v41 = vrot.slane %v1310_v30, 4  ;;  %v1492_v33 = vsel %vm5721_vm4, %v1490_v32, %v1491_v24  ;;  %v698_v47 = vshll.u32 %v6175_v19, 16  ;;  %v6198_v48 = vpop.permute.xlu1 %2553  ;;  %v690_v52 = vrot.slane %v688_v39, 5 }
  0x92   : > { %v685_v51 = vor.u32 %v684_v36, %v681_v35  ;;  %v1906_v53 = vshrl.u32 %v6178_v3, 16  ;;  %v5075_v56 = vcombine.low %v1489_v31, %v1492_v33  ;;  %v694_v38 = vrot.slane %v692_v44, 4  ;;  %v4856_v44 = vld [vmem:[%s5704_s22 + $0x44] sm:$0x1] }
  0x93   : > { %2423 = vrot.lane.b32.xlu1 %v5043_v2, %s5646_s23  ;;  %v1316_v55 = vsel %vm5744_vm5, %v1311_v41, %v1315_v22  ;;  %v1909_v57 = vshll.u32 %v6178_v3, 16  ;;  %v1919_v0 = vshrl.u32 %v6196_v46, 16  ;;  %v700_v6 = vrot.slane %v698_v47, 5  ;;  %v6217_v22 = vld [vmem:[%s5704_s22 + $0x3c] sm:$0xf] }
  0x94   : > { %v5059_v60 = vcombine.low %v1306_v34, %v1316_v55  ;;  %v686_v61 = vrot.slane %v685_v51, 4  ;;  %v1908_v62 = vrot.slane %v1906_v53, 4  ;;  %v695_v4 = vor.u32 %v694_v38, %v690_v52  ;;  %v4829_v34 = vld [vmem:[%s5704_s22 + $0x40] sm:$0xf]  ;;  %v4872_v47 = vld [vmem:[%s5704_s22 + $0x3c] sm:$0xe] }
  0x95   : > { %v1911_v8 = vrot.slane %v1909_v57, 5  ;;  %v5091_v2 = vcombine.low %v6178_v3, %v6196_v46  ;;  %v4819_v15 = vrot.slane %v717_v58, 9  ;;  %v876_v16 = vrot.slane %v6170_v9, 5  ;;  %v5609_v9 = vld [vmem:[%s5704_s22 + $0xb4] sm:$0xf] }
  0x96   : > { %2503 = vrot.lane.b32.xlu0 %v5059_v60, %s5649_s8  ;;  %v691_v14 = vsel %vm5744_vm5, %v686_v61, %v690_v52  ;;  %v879_v21 = vrot.slane %v6175_v19, 5  ;;  %v696_v24 = vrot.slane %v695_v4, 4  ;;  %v1915_v25 = vshll.u32 %v6196_v46, 16 }
  0x97   : > { %v6219_v23 = vpop.permute.xlu0 %2473  ;;  %2583 = vrot.lane.b32.xlu1 %v5075_v56, %s5648_s29  ;;  %v1912_v3 = vor.u32 %v1911_v8, %v1908_v62  ;;  %v1921_v26 = vrot.slane %v1919_v0, 4  ;;  %v6223_v27 = vpop.permute.xlu1 %2297  ;;  %v877_v19 = vsel %vm5721_vm4, %v4819_v15, %v876_v16  ;;  %v878_v28 = vrot.slane %v876_v16, 4  ;;  %v276_v16 = vld [vmem:[%s5704_s22 + $0x34] sm:$0xf] }
  0x98   : > { %v1925_v29 = vshll.u32 %v4947_v12, 16  ;;  %v701_v30 = vsel %vm5744_vm5, %v696_v24, %v700_v6  ;;  %v1917_v32 = vrot.slane %v1915_v25, 5  ;;  %v1030_v35 = vshrl.u32 %v6217_v22, 16  ;;  %v275_v6 = vld [vmem:[%s5704_s22 + $0x30] sm:$0xf] }
  0x99   : > { %v1913_v31 = vrot.slane %v1912_v3, 4  ;;  %v5011_v36 = vcombine.low %v691_v14, %v701_v30  ;;  %v880_v39 = vsel %vm5721_vm4, %v878_v28, %v879_v21  ;;  %v1033_v33 = vshll.u32 %v6217_v22, 16  ;;  %v303_v28 = vld [vmem:[%s5704_s22 + $0x38] sm:$0x1]  ;;  %v4908_v30 = vld [vmem:[%s5704_s22 + $0x48] sm:$0xf] }
  0x9a   : > { %v1927_v41 = vrot.slane %v1925_v29, 5  ;;  %v5027_v51 = vcombine.low %v877_v19, %v880_v39  ;;  %v1922_v53 = vor.u32 %v1921_v26, %v1917_v32  ;;  %v1032_v55 = vrot.slane %v1030_v35, 4 }
  0x9b   : > { %2679 = vrot.lane.b32.xlu1 %v5091_v2, %s5647_s26  ;;  %v1918_v52 = vsel %vm5744_vm5, %v1913_v31, %v1917_v32  ;;  %2247 = vrot.lane.b32.xlu0 %v5011_v36, %s5652_s25  ;;  %v1035_v38 = vrot.slane %v1033_v33, 5  ;;  %v1043_v57 = vshrl.u32 %v4829_v34, 16  ;;  %v5032_v58 = vcombine.low %v6217_v22, %v4829_v34  ;;  %v6245_v8 = vpop.permute.xlu1 %2577  ;;  %v6258_v36 = vld [vmem:[%s5704_s22 + $0x4c] sm:$0xf] }
  0x9c   : > { %v6240_v56 = vpop.permute.xlu0 %2729  ;;  %v1039_v60 = vshll.u32 %v4829_v34, 16  ;;  %v1923_v61 = vrot.slane %v1922_v53, 4  ;;  %v1049_v62 = vshll.u32 %v4856_v44, 16  ;;  %v4888_v0 = vrot.slane %v4872_v47, 9 }
  0x9d   : > { %v1411_v4 = vrot.slane %v4829_v34, 5  ;;  %v1036_v2 = vor.u32 %v1035_v38, %v1032_v55  ;;  %v1045_v14 = vrot.slane %v1043_v57, 4  ;;  %v1414_v15 = vrot.slane %v4856_v44, 5  ;;  %v706_v38 = vld [vmem:[%s5704_s22 + $0x30] sm:$0xe] }
  0x9e   : > { %v1041_v12 = vrot.slane %v1039_v60, 5  ;;  %v1928_v21 = vsel %vm5744_vm5, %v1923_v61, %v1927_v41  ;;  %v1051_v22 = vrot.slane %v1049_v62, 5  ;;  %v415_v29 = vshrl.u32 %v275_v6, 16 }
  0x9f   : > { %v1412_v24 = vsel %vm5721_vm4, %v4888_v0, %v1411_v4  ;;  %v1413_v3 = vrot.slane %v1411_v4, 4  ;;  %2327 = vrot.lane.b32.xlu0 %v5027_v51, %s5650_s9  ;;  %v5107_v25 = vcombine.low %v1918_v52, %v1928_v21  ;;  %v1037_v26 = vrot.slane %v1036_v2, 4 }
  0xa0   : > { %v1046_v19 = vor.u32 %v1045_v14, %v1041_v12  ;;  %v418_v32 = vshll.u32 %v275_v6, 16  ;;  %v424_v34 = vshll.u32 %v276_v16, 16  ;;  %v428_v35 = vshrl.u32 %v276_v16, 16  ;;  %v6260_v39 = vpop.permute.xlu0 %2497 }
  0xa1   : > { %v1415_v31 = vsel %vm5721_vm4, %v1413_v3, %v1414_v15  ;;  %2759 = vrot.lane.b32.xlu1 %v5107_v25, %s5651_s24  ;;  %v1042_v41 = vsel %vm5744_vm5, %v1037_v26, %v1041_v12  ;;  %v417_v47 = vrot.slane %v415_v29, 4  ;;  %v434_v55 = vshll.u32 %v303_v28, 16 }
  0xa2   : > { %v1047_v33 = vrot.slane %v1046_v19, 4  ;;  %v5064_v44 = vcombine.low %v1412_v24, %v1415_v31  ;;  %v420_v51 = vrot.slane %v418_v32, 5  ;;  %v426_v52 = vrot.slane %v424_v34, 5  ;;  %v6278_v19 = vld [vmem:[%s5704_s22 + $0x50] sm:$0x1] }
  0xa3   : > { %v430_v53 = vrot.slane %v428_v35, 4  ;;  %2401 = vrot.lane.b32.xlu0 %v5032_v58, %s5646_s23  ;;  %v1642_v61 = vshrl.u32 %v4908_v30, 16  ;;  %v1645_v62 = vshll.u32 %v4908_v30, 16  ;;  %v1655_v0 = vshrl.u32 %v6258_v36, 16  ;;  %v4948_v35 = vld [vmem:[%s5704_s22 + $0x18] sm:$0xe] }
  0xa4   : > { %v6266_v57 = vpop.permute.xlu1 %2217  ;;  %v1052_v60 = vsel %vm5744_vm5, %v1047_v33, %v1051_v22  ;;  %v421_v6 = vor.u32 %v420_v51, %v417_v47  ;;  %v436_v12 = vrot.slane %v434_v55, 5  ;;  %v5080_v21 = vcombine.low %v4908_v30, %v6258_v36 }
  0xa5   : > { %v5048_v4 = vcombine.low %v1042_v41, %v1052_v60  ;;  %v431_v2 = vor.u32 %v430_v53, %v426_v52  ;;  %v1644_v14 = vrot.slane %v1642_v61, 4  ;;  %v1647_v15 = vrot.slane %v1645_v62, 5  ;;  %v5589_v62 = vld [vmem:[%s5704_s22 + $0x1c] sm:$0xf] }
  0xa6   : > { %v4808_v24 = vrot.slane %v706_v38, 9  ;;  %v422_v58 = vrot.slane %v421_v6, 4  ;;  %v799_v22 = vrot.slane %v276_v16, 5  ;;  %v802_v25 = vrot.slane %v303_v28, 5  ;;  %v6306_v6 = vld [vmem:[%s5704_s22 + $0x48] sm:$0xf] }
  0xa7   : > { %2481 = vrot.lane.b32.xlu1 %v5048_v4, %s5649_s8  ;;  %v432_v3 = vrot.slane %v431_v2, 4  ;;  %2561 = vrot.lane.b32.xlu0 %v5064_v44, %s5648_s29  ;;  %v1648_v29 = vor.u32 %v1647_v15, %v1644_v14  ;;  %v1651_v31 = vshll.u32 %v6258_v36, 16  ;;  %v2974_v33 = vsel %vm2972_vm6, %v6162_v63, %v6219_v23  ;;  %v5590_v2 = vld [vmem:[%s5704_s22 + $0x20] sm:$0x1]  ;;  %v6310_v14 = vld [vmem:[%s5704_s22 + $0x4c] sm:$0xf] }
  0xa8   : > { %v6274_v26 = vpop.permute.xlu0 %2241  ;;  %v6281_v30 = vpop.permute.xlu1 %2673  ;;  %v427_v32 = vsel %vm5744_vm5, %v422_v58, %v426_v52  ;;  %v800_v28 = vsel %vm5721_vm4, %v4808_v24, %v799_v22  ;;  %v801_v34 = vrot.slane %v799_v22, 4  ;;  %v3007_v52 = vsel %vm3005_vm7, %v2974_v33, %v6198_v48 }
  0xa9   : > { %v437_v16 = vsel %vm5744_vm5, %v432_v3, %v436_v12  ;;  %v1649_v44 = vrot.slane %v1648_v29, 4  ;;  %v1653_v47 = vrot.slane %v1651_v31, 5  ;;  %v1657_v53 = vrot.slane %v1655_v0, 4  ;;  %v6323_v31 = vld [vmem:[%s5704_s22 + $0x50] sm:$0x1] }
  0xaa   : > { %v5000_v41 = vcombine.low %v427_v32, %v437_v16  ;;  %v803_v51 = vsel %vm5721_vm4, %v801_v34, %v802_v25  ;;  %v1661_v55 = vshll.u32 %v6278_v19, 16  ;;  %v4964_v61 = vrot.slane %v4948_v35, 9 }
  0xab   : > { %2657 = vrot.lane.b32.xlu0 %v5080_v21, %s5647_s26  ;;  %v5016_v23 = vcombine.low %v800_v28, %v803_v51  ;;  %v1654_v60 = vsel %vm5744_vm5, %v1649_v44, %v1653_v47  ;;  %v1995_v4 = vrot.slane %v5589_v62, 5  ;;  %v1658_v48 = vor.u32 %v1657_v53, %v1653_v47  ;;  %v4949_v47 = vld [vmem:[%s5704_s22 + $0x24] sm:$0xe] }
  0xac   : > { %v6298_v38 = vpop.permute.xlu0 %2321  ;;  %2225 = vrot.lane.b32.xlu1 %v5000_v41, %s5652_s25  ;;  %v1663_v0 = vrot.slane %v1661_v55, 5  ;;  %v1998_v12 = vrot.slane %v5590_v2, 5  ;;  %v3040_v24 = vsel %vm3038_vm8, %v3007_v52, %v6188_v40  ;;  %v1054_v25 = vshrl.u32 %v6306_v6, 16 }
  0xad   : > { %v1996_v15 = vsel %vm5721_vm4, %v4964_v61, %v1995_v4  ;;  %v1997_v21 = vrot.slane %v1995_v4, 4  ;;  %v1659_v3 = vrot.slane %v1658_v48, 4  ;;  %v3073_v22 = vsel %vm3071_vm9, %v3040_v24, %v6240_v56  ;;  %v5591_v4 = vld [vmem:[%s5704_s22 + $0x4] sm:$0xf] }
  0xae   : > { %v1057_v29 = vshll.u32 %v6306_v6, 16  ;;  %3393 = vmatprep.mubr.bf16.mxu0 %v3073_v22  ;;  %v1067_v16 = vshrl.u32 %v6310_v14, 16  ;;  %v5033_v28 = vcombine.low %v6306_v6, %v6310_v14  ;;  %v1063_v34 = vshll.u32 %v6310_v14, 16  ;;  %v5592_v6 = vld [vmem:[%s5704_s22] sm:$0xf] }
  0xaf   : > { %v6316_v58 = vpop.permute.xlu1 %2753  ;;  %v1999_v40 = vsel %vm5721_vm4, %v1997_v21, %v1998_v12  ;;  %v1664_v35 = vsel %vm5744_vm5, %v1659_v3, %v1663_v0  ;;  %v1056_v33 = vrot.slane %v1054_v25, 4  ;;  %v1073_v55 = vshll.u32 %v6323_v31, 16  ;;  %v5594_v22 = vld [vmem:[%s5704_s22 + $0x2c] sm:$0x1] }
  0xb0   : > { %v6325_v32 = vpop.permute.xlu0 %2395  ;;  %2305 = vrot.lane.b32.xlu1 %v5016_v23, %s5650_s9  ;;  %v5108_v41 = vcombine.low %v1996_v15, %v1999_v40  ;;  %v1059_v44 = vrot.slane %v1057_v29, 5  ;;  %v5096_v51 = vcombine.low %v1654_v60, %v1664_v35  ;;  %v1065_v52 = vrot.slane %v1063_v34, 5  ;;  %v4873_v23 = vld [vmem:[%s5704_s22 + $0x48] sm:$0xe] }
  0xb1   : > { %v1069_v53 = vrot.slane %v1067_v16, 4  ;;  %v2998_v62 = vsel %vm2972_vm6, %v6172_v11, %v6260_v39  ;;  %v4980_v48 = vcombine.low %v5592_v6, %v5591_v4  ;;  %v1075_v12 = vrot.slane %v1073_v55, 5  ;;  %v5593_v39 = vld [vmem:[%s5704_s22 + $0x28] sm:$0xf]  ;;  %v6373_v55 = vld [vmem:[%s8249_s1 + $0x80] sm:$0xff]  }
  0xb2   : > { %v1060_v61 = vor.u32 %v1059_v44, %v1056_v33  ;;  %2737 = vrot.lane.b32.xlu0 %v5096_v51, %s5651_s24  ;;  %v4965_v15 = vrot.slane %v4949_v47, 9  ;;  %v2002_v21 = vrot.slane %v5593_v39, 5  ;;  %v2005_v25 = vrot.slane %v5594_v22, 5  ;;  %v5595_v44 = vld [vmem:[%s5704_s22 + $0x90] sm:$0xf]  ;;  %5299 = vmatprep.subr.bf16.mxu1 %v6373_v55 }
  0xb3   : > { %v6344_v0 = vpop.permute.xlu1 %2475  ;;  %v1070_v60 = vor.u32 %v1069_v53, %v1065_v52  ;;  %v2844_v3 = vsel %vm2841_vm10, %v4980_v48, %v6266_v57  ;;  %v4889_v29 = vrot.slane %v4873_v23, 9  ;;  %v1418_v35 = vrot.slane %v6310_v14, 5  ;;  %v5596_v47 = vld [vmem:[%s5704_s22 + $0x94] sm:$0xf]  ;;  %v277_v51 = vld [vmem:[%s5704_s22 + $0x3c] sm:$0xf] }
  0xb4   : > { %v6346_v2 = vpop.permute.xlu0 %2555  ;;  %2809 = vrot.lane.b32.xlu1 %v5108_v41, %s5653_s30  ;;  %v1061_v24 = vrot.slane %v1060_v61, 4  ;;  %v2003_v16 = vsel %vm5721_vm4, %v4965_v15, %v2002_v21  ;;  %v2004_v34 = vrot.slane %v2002_v21, 4  ;;  %v1421_v33 = vrot.slane %v6323_v31, 5  ;;  %v278_v6 = vld [vmem:[%s5704_s22 + $0x40] sm:$0xf] }
  0xb5   : > { %v1071_v40 = vrot.slane %v1070_v60, 4  ;;  %v4992_v57 = vcombine.low %v5595_v44, %v5596_v47  ;;  %v1420_v31 = vrot.slane %v1418_v35, 4  ;;  %v2892_v4 = vsel %vm2890_vm11, %v2844_v3, %v6223_v27  ;;  %v304_v48 = vld [vmem:[%s5704_s22 + $0x44] sm:$0x1]  ;;  %v6391_v22 = vld [vmem:[%s5704_s22 + $0x58] sm:$0xf] }
  0xb6   : > { %v1066_v41 = vsel %vm5744_vm5, %v1061_v24, %v1065_v52  ;;  %2403 = vrot.lane.b32.xlu0 %v5033_v28, %s5646_s23  ;;  %v2006_v14 = vsel %vm5721_vm4, %v2004_v34, %v2005_v25  ;;  %v1419_v52 = vsel %vm5721_vm4, %v4889_v29, %v1418_v35  ;;  %v3031_v39 = vsel %vm3005_vm7, %v2998_v62, %v6245_v8  ;;  %v4910_v24 = vld [vmem:[%s5704_s22 + $0x54] sm:$0xf] }
  0xb7   : > { %v1076_v53 = vsel %vm5744_vm5, %v1071_v40, %v1075_v12  ;;  %v5109_v61 = vcombine.low %v2003_v16, %v2006_v14  ;;  %v2880_v28 = vsel %vm2841_vm10, %v4992_v57, %v6274_v26  ;;  %v1422_v15 = vsel %vm5721_vm4, %v1420_v31, %v1421_v33  ;;  %v707_v33 = vld [vmem:[%s5704_s22 + $0x3c] sm:$0xe]  ;;  %v6409_v31 = vld [vmem:[%s5704_s22 + $0x5c] sm:$0x1] }
  0xb8   : > { %v5049_v23 = vcombine.low %v1066_v41, %v1076_v53  ;;  %v6383_v12 = vpop.permute.xlu0 %2651  ;;  %v439_v21 = vshrl.u32 %v277_v51, 16  ;;  %v5065_v27 = vcombine.low %v1419_v52, %v1422_v15  ;;  %v2925_v26 = vsel %vm2923_vm12, %v2892_v4, %v6162_v63 }
  0xb9   : > { %v3064_v3 = vsel %vm3038_vm8, %v3031_v39, %v6281_v30  ;;  %v442_v25 = vshll.u32 %v277_v51, 16  ;;  %3394 = vmatmul.mubr.bf16.vlgmr.msra.gmra.mrb[0].mxu0 %v2925_v26  ;;  %v448_v62 = vshll.u32 %v278_v6, 16  ;;  %v452_v29 = vshrl.u32 %v278_v6, 16 }
  0xba   : > { %v6381_v60 = vpop.permute.xlu1 %2219  ;;  %2483 = vrot.lane.b32.xlu1 %v5049_v23, %s5649_s8  ;;  %2811 = vrot.lane.b32.xlu0 %v5109_v61, %s5653_s30  ;;  %v441_v8 = vrot.slane %v439_v21, 4  ;;  %v458_v40 = vshll.u32 %v304_v48, 16  ;;  %v1666_v34 = vshrl.u32 %v4910_v24, 16  ;;  %v1669_v35 = vshll.u32 %v4910_v24, 16 }
  0xbb   : > { %v444_v16 = vrot.slane %v442_v25, 5  ;;  %v1679_v41 = vshrl.u32 %v6391_v22, 16  ;;  %v450_v63 = vrot.slane %v448_v62, 5  ;;  %v454_v47 = vrot.slane %v452_v29, 4 }
  0xbc   : > { %v460_v30 = vrot.slane %v458_v40, 5  ;;  %v5081_v57 = vcombine.low %v4910_v24, %v6391_v22  ;;  %v1668_v53 = vrot.slane %v1666_v34, 4  ;;  %v1671_v14 = vrot.slane %v1669_v35, 5  ;;  %v5448_v34 = vld [vmem:[%s8249_s1 + $0x88] sm:$0xff]  }
  0xbd   : > { %v445_v51 = vor.u32 %v444_v16, %v441_v8  ;;  %v2916_v52 = vsel %vm2890_vm11, %v2880_v28, %v6298_v38  ;;  %v455_v61 = vor.u32 %v454_v47, %v450_v63  ;;  %v4809_v4 = vrot.slane %v707_v33, 9  ;;  %v4950_v16 = vld [vmem:[%s5704_s22 + $0x30] sm:$0xe]  ;;  %v6435_v47 = vld [vmem:[%s5704_s22 + $0x54] sm:$0xf] }
  0xbe   : > { %v6402_v44 = vpop.permute.xlu1 %2299  ;;  %2563 = vrot.lane.b32.xlu1 %v5065_v27, %s5648_s29  ;;  %v806_v15 = vrot.slane %v278_v6, 5  ;;  %v809_v39 = vrot.slane %v304_v48, 5  ;;  %v1672_v26 = vor.u32 %v1671_v14, %v1668_v53  ;;  %v1675_v24 = vshll.u32 %v6391_v22, 16 }
  0xbf   : > { %v446_v21 = vrot.slane %v445_v51, 4  ;;  %v1681_v27 = vrot.slane %v1679_v41, 4  ;;  %v456_v8 = vrot.slane %v455_v61, 4  ;;  %v1685_v62 = vshll.u32 %v6409_v31, 16 }
  0xc0   : > { %v6411_v23 = vpop.permute.xlu0 %2731  ;;  %v807_v38 = vsel %vm5721_vm4, %v4809_v4, %v806_v15  ;;  %v808_v28 = vrot.slane %v806_v15, 4  ;;  %v1673_v48 = vrot.slane %v1672_v26, 4  ;;  %v1677_v29 = vrot.slane %v1675_v24, 5 }
  0xc1   : > { %v451_v6 = vsel %vm5744_vm5, %v446_v21, %v450_v63  ;;  %v3109_v40 = vsel %vm3071_vm9, %v3064_v3, %v6316_v58  ;;  %v461_v35 = vsel %vm5744_vm5, %v456_v8, %v460_v30  ;;  %v1687_v33 = vrot.slane %v1685_v62, 5  ;;  %v6438_v3 = vld [vmem:[%s5704_s22 + $0x58] sm:$0xf]  ;;  %v5449_v8 = vld [vmem:[%s8249_s1 + $0x90] sm:$0xff]  }
  0xc2   : > { %v6414_v25 = vpop.permute.xlu1 %2419  ;;  %2659 = vrot.lane.b32.xlu1 %v5081_v57, %s5647_s26  ;;  %v810_v41 = vsel %vm5721_vm4, %v808_v28, %v809_v39  ;;  %3489 = vmatprep.mubr.bf16.mxu1 %v3109_v40  ;;  %v2961_v63 = vsel %vm2923_vm12, %v2916_v52, %v6172_v11  ;;  %v5001_v51 = vcombine.low %v451_v6, %v461_v35  ;;  %v4966_v11 = vrot.slane %v4950_v16, 9  ;;  %v5597_v52 = vld [vmem:[%s5704_s22 + $0x34] sm:$0xf]  ;;  %v5598_v39 = vld [vmem:[%s5704_s22 + $0x38] sm:$0x1] }
  0xc3   : > { %v5017_v53 = vcombine.low %v807_v38, %v810_v41  ;;  %v1678_v30 = vsel %vm5744_vm5, %v1673_v48, %v1677_v29  ;;  %v1682_v14 = vor.u32 %v1681_v27, %v1677_v29  ;;  %3490 = vmatmul.mubr.bf16.vlgmr.msra.gmra.mrb[0].mxu1 %v2961_v63  ;;  %v2976_v4 = vsel %vm2972_vm6, %v6325_v32, %v6344_v0  ;;  %v6466_v6 = vld [vmem:[%s5704_s22 + $0x5c] sm:$0x1]  ;;  %v5599_v16 = vld [vmem:[%s5704_s22 + $0xc] sm:$0xf]  ;;  %v5600_v35 = vld [vmem:[%s5704_s22 + $0x10] sm:$0xf] }
  0xc4   : > { %v2009_v15 = vrot.slane %v5597_v52, 5  ;;  %v2012_v21 = vrot.slane %v5598_v39, 5  ;;  %5300 = vmatpush3.bf16.msra.mxu1 %v6373_v55  ;;  %2227 = vrot.lane.b32.xlu0 %v5001_v51, %s5652_s25  ;;  %v1078_v24 = vshrl.u32 %v6435_v47, 16  ;;  %v1081_v27 = vshll.u32 %v6435_v47, 16  ;;  %v4951_v63 = vld [vmem:[%s5704_s22 + $0x3c] sm:$0xe] }
  0xc5   : > { %v6440_v57 = vpop.permute.xlu0 %2499  ;;  %v1683_v26 = vrot.slane %v1682_v14, 4  ;;  %v1091_v0 = vshrl.u32 %v6438_v3, 16  ;;  %5301 = vmatprep.subr.bf16.mxu1 %v5448_v34  ;;  %v5034_v28 = vcombine.low %v6435_v47, %v6438_v3  ;;  %v3009_v62 = vsel %vm3005_vm7, %v2976_v4, %v6346_v2  ;;  %v4874_v39 = vld [vmem:[%s5704_s22 + $0x54] sm:$0xe] }
  0xc6   : > { %v6444_v61 = vpop.permute.xlu1 %2579  ;;  %v2010_v55 = vsel %vm5721_vm4, %v4966_v11, %v2009_v15  ;;  %v2011_v38 = vrot.slane %v2009_v15, 4  ;;  %v1080_v29 = vrot.slane %v1078_v24, 4  ;;  %v1083_v40 = vrot.slane %v1081_v27, 5  ;;  %v279_v27 = vld [vmem:[%s5704_s22 + $0x48] sm:$0xf] }
  0xc7   : > { %v1688_v48 = vsel %vm5744_vm5, %v1683_v26, %v1687_v33  ;;  %v4981_v41 = vcombine.low %v5599_v16, %v5600_v35  ;;  %v1087_v47 = vshll.u32 %v6438_v3, 16  ;;  %v1093_v11 = vrot.slane %v1091_v0, 4  ;;  %v6509_v35 = vld [vmem:[%s5704_s22 + $0x50] sm:$0x1] }
  0xc8   : > { %v5097_v51 = vcombine.low %v1678_v30, %v1688_v48  ;;  %v2013_v14 = vsel %vm5721_vm4, %v2011_v38, %v2012_v21  ;;  %5302 = vmatpush3.bf16.msra.mxu1 %v5448_v34  ;;  %2307 = vrot.lane.b32.xlu0 %v5017_v53, %s5650_s9  ;;  %v1084_v30 = vor.u32 %v1083_v40, %v1080_v29  ;;  %v1097_v15 = vshll.u32 %v6466_v6, 16  ;;  %v5451_v21 = vld [vmem:[%s8249_s1 + $0x98] sm:$0xff]   ;;  %v6497_v48 = vld [vmem:[%s5704_s22 + $0x4c] sm:$0xf] }
  0xc9   : > { %v5110_v33 = vcombine.low %v2010_v55, %v2013_v14  ;;  %v2847_v52 = vsel %vm2841_vm10, %v4981_v41, %v6381_v60  ;;  %5303 = vmatprep.subr.bf16.mxu1 %v5449_v8  ;;  %v1089_v26 = vrot.slane %v1087_v47, 5  ;;  %v4967_v34 = vrot.slane %v4951_v63, 9  ;;  %v6516_v47 = vld [vmem:[%s5704_s22 + $0x60] sm:$0xf] }
  0xca   : > { %v6476_v2 = vpop.permute.xlu0 %2243  ;;  %v6478_v4 = vpop.permute.xlu1 %2675  ;;  %2739 = vrot.lane.b32.xlu1 %v5097_v51, %s5651_s24  ;;  %v2016_v53 = vrot.slane %v6130_v10, 5  ;;  %v2019_v24 = vrot.slane %v6137_v1, 5  ;;  %v1085_v60 = vrot.slane %v1084_v30, 4  ;;  %v1099_v0 = vrot.slane %v1097_v15, 5 }
  0xcb   : > { %v3042_v55 = vsel %vm3038_vm8, %v3009_v62, %v6383_v12  ;;  %v2894_v38 = vsel %vm2890_vm11, %v2847_v52, %v6402_v44  ;;  %v1094_v29 = vor.u32 %v1093_v11, %v1089_v26  ;;  %v4890_v10 = vrot.slane %v4874_v39, 9 }
  0xcc   : > { %v2017_v40 = vsel %vm5721_vm4, %v4967_v34, %v2016_v53  ;;  %v2018_v16 = vrot.slane %v2016_v53, 4  ;;  %5304 = vmatpush3.bf16.msra.mxu1 %v5449_v8  ;;  %2813 = vrot.lane.b32.xlu0 %v5110_v33, %s5653_s30  ;;  %v1090_v12 = vsel %vm5744_vm5, %v1085_v60, %v1089_v26  ;;  %v1425_v62 = vrot.slane %v6438_v3, 5  ;;  %v6526_v26 = vld [vmem:[%s5704_s22 + $0x64] sm:$0xf] }
  0xcd   : > { %v1428_v44 = vrot.slane %v6466_v6, 5  ;;  %v463_v41 = vshrl.u32 %v279_v27, 16  ;;  %5305 = vmatprep.subr.bf16.mxu1 %v5451_v21  ;;  %v1095_v63 = vrot.slane %v1094_v29, 4  ;;  %v466_v51 = vshll.u32 %v279_v27, 16  ;;  %v708_v29 = vld [vmem:[%s5704_s22 + $0x48] sm:$0xe] }
  0xce   : > { %v6501_v1 = vpop.permute.xlu0 %2323  ;;  %2405 = vrot.lane.b32.xlu1 %v5034_v28, %s5646_s23  ;;  %v2020_v8 = vsel %vm5721_vm4, %v2018_v16, %v2019_v24  ;;  %v472_v14 = vshll.u32 %v6497_v48, 16  ;;  %v1426_v6 = vsel %vm5721_vm4, %v4890_v10, %v1425_v62  ;;  %v1427_v33 = vrot.slane %v1425_v62, 4 }
  0xcf   : > { %v5111_v3 = vcombine.low %v2017_v40, %v2020_v8  ;;  %v465_v52 = vrot.slane %v463_v41, 4  ;;  %v1100_v28 = vsel %vm5744_vm5, %v1095_v63, %v1099_v0  ;;  %v468_v30 = vrot.slane %v466_v51, 5 }
  0xd0   : > { %v6518_v11 = vpop.permute.xlu1 %2755  ;;  %v474_v15 = vrot.slane %v472_v14, 5  ;;  %v476_v39 = vshrl.u32 %v6497_v48, 16  ;;  %5306 = vmatpush3.bf16.msra.mxu1 %v5451_v21  ;;  %v5050_v53 = vcombine.low %v1090_v12, %v1100_v28  ;;  %v1429_v24 = vsel %vm5721_vm4, %v1427_v33, %v1428_v44 }
  0xd1   : > { %v482_v27 = vshll.u32 %v6509_v35, 16  ;;  %v1690_v60 = vshrl.u32 %v6516_v47, 16  ;;  %v5066_v0 = vcombine.low %v1426_v6, %v1429_v24  ;;  %v469_v40 = vor.u32 %v468_v30, %v465_v52 }
  0xd2   : > { %v6528_v34 = vpop.permute.xlu0 %2397  ;;  %2815 = vrot.lane.b32.xlu1 %v5111_v3, %s5653_s30  ;;  %v478_v16 = vrot.slane %v476_v39, 4  ;;  %v1693_v10 = vshll.u32 %v6516_v47, 16  ;;  %2485 = vrot.lane.b32.xlu0 %v5050_v53, %s5649_s8  ;;  %v1703_v62 = vshrl.u32 %v6526_v26, 16  ;;  %v5082_v44 = vcombine.low %v6516_v47, %v6526_v26  ;;  %v6552_v47 = vld [vmem:[%s5704_s22 + $0x68] sm:$0x1] }
  0xd3   : > { %v484_v21 = vrot.slane %v482_v27, 5  ;;  %v1692_v12 = vrot.slane %v1690_v60, 4  ;;  %v470_v63 = vrot.slane %v469_v40, 4  ;;  %v4810_v14 = vrot.slane %v708_v29, 9  ;;  %v6570_v29 = vld [vmem:[%s5704_s22 + $0x60] sm:$0xf] }
  0xd4   : > { %v479_v8 = vor.u32 %v478_v16, %v474_v15  ;;  %v1695_v51 = vrot.slane %v1693_v10, 5  ;;  %v813_v6 = vrot.slane %v6497_v48, 5  ;;  %v816_v33 = vrot.slane %v6509_v35, 5  ;;  %v4952_v35 = vld [vmem:[%s5704_s22 + $0x48] sm:$0xe] }
  0xd5   : > { %v3076_v52 = vsel %vm3071_vm9, %v3042_v55, %v6411_v23  ;;  %v2928_v28 = vsel %vm2923_vm12, %v2894_v38, %v6325_v32  ;;  %v475_v30 = vsel %vm5744_vm5, %v470_v63, %v474_v15  ;;  %v3000_v48 = vsel %vm2972_vm6, %v6414_v25, %v6440_v57 }
  0xd6   : > { %v6541_v41 = vpop.permute.xlu1 %2477  ;;  %v6543_v3 = vpop.permute.xlu0 %2557  ;;  %v480_v39 = vrot.slane %v479_v8, 4  ;;  %3401 = vmatprep.mubr.bf16.mxu0 %v3076_v52  ;;  %v1696_v53 = vor.u32 %v1695_v51, %v1692_v12  ;;  %2565 = vrot.lane.b32.xlu0 %v5066_v0, %s5648_s29  ;;  %v814_v55 = vsel %vm5721_vm4, %v4810_v14, %v813_v6  ;;  %v815_v32 = vrot.slane %v813_v6, 4  ;;  %v6581_v51 = vld [vmem:[%s5704_s22 + $0x64] sm:$0xf]  ;;  %v5602_v52 = vld [vmem:[%s5704_s22 + $0xa0] sm:$0xf] }
  0xd7   : > { %3402 = vmatmul.mubr.bf16.gmra.mrb[4].mxu0 %v2928_v28  ;;  %v3033_v38 = vsel %vm3005_vm7, %v3000_v48, %v6444_v61  ;;  %v1699_v15 = vshll.u32 %v6526_v26, 16  ;;  %v1705_v57 = vrot.slane %v1703_v62, 4  ;;  %v1709_v60 = vshll.u32 %v6552_v47, 16 }
  0xd8   : > { %v485_v24 = vsel %vm5744_vm5, %v480_v39, %v484_v21  ;;  %v1697_v27 = vrot.slane %v1696_v53, 4  ;;  %v817_v61 = vsel %vm5721_vm4, %v815_v32, %v816_v33  ;;  %v4968_v10 = vrot.slane %v4952_v35, 9  ;;  %v5601_v33 = vld [vmem:[%s5704_s22 + $0x9c] sm:$0xf] }
  0xd9   : > { %v5002_v40 = vcombine.low %v475_v30, %v485_v24  ;;  %v1701_v16 = vrot.slane %v1699_v15, 5  ;;  %v5018_v63 = vcombine.low %v814_v55, %v817_v61  ;;  %v1711_v21 = vrot.slane %v1709_v60, 5 }
  0xda   : > { %v6576_v12 = vpop.permute.xlu0 %2653  ;;  %v2023_v62 = vrot.slane %v6258_v36, 5  ;;  %v2026_v8 = vrot.slane %v6278_v19, 5  ;;  %2661 = vrot.lane.b32.xlu0 %v5082_v44, %s5647_s26  ;;  %v4993_v28 = vcombine.low %v5601_v33, %v5602_v52  ;;  %v1102_v30 = vshrl.u32 %v6570_v29, 16  ;;  %v4859_v44 = vld [vmem:[%s5704_s22 + $0x68] sm:$0x1] }
  0xdb   : > { %v6572_v0 = vpop.permute.xlu1 %2221  ;;  %2229 = vrot.lane.b32.xlu1 %v5002_v40, %s5652_s25  ;;  %v1702_v14 = vsel %vm5744_vm5, %v1697_v27, %v1701_v16  ;;  %v1706_v6 = vor.u32 %v1705_v57, %v1701_v16  ;;  %v3066_v39 = vsel %vm3038_vm8, %v3033_v38, %v6478_v4  ;;  %v1105_v48 = vshll.u32 %v6570_v29, 16  ;;  %v4953_v57 = vld [vmem:[%s5704_s22 + $0x54] sm:$0xe]  ;;  %v4875_v16 = vld [vmem:[%s5704_s22 + $0x60] sm:$0xe] }
  0xdc   : > { %v2024_v36 = vsel %vm5721_vm4, %v4968_v10, %v2023_v62  ;;  %v2025_v19 = vrot.slane %v2023_v62, 4  ;;  %v2883_v55 = vsel %vm2841_vm10, %v4993_v28, %v6476_v2  ;;  %v1104_v32 = vrot.slane %v1102_v30, 4 }
  0xdd   : > { %v1707_v35 = vrot.slane %v1706_v6, 4  ;;  %v1115_v15 = vshrl.u32 %v6581_v51, 16  ;;  %v1107_v27 = vrot.slane %v1105_v48, 5  ;;  %v5035_v4 = vcombine.low %v6570_v29, %v6581_v51  ;;  %v281_v48 = vld [vmem:[%s5704_s22 + $0x54] sm:$0xf] }
  0xde   : > { %v2027_v24 = vsel %vm5721_vm4, %v2025_v19, %v2026_v8  ;;  %v1111_v38 = vshll.u32 %v6581_v51, 16  ;;  %v1121_v61 = vshll.u32 %v4859_v44, 16  ;;  %v2918_v29 = vsel %vm2890_vm11, %v2883_v55, %v6501_v1 }
  0xdf   : > { %v6596_v53 = vpop.permute.xlu1 %2301  ;;  %2309 = vrot.lane.b32.xlu1 %v5018_v63, %s5650_s9  ;;  %v1712_v60 = vsel %vm5744_vm5, %v1707_v35, %v1711_v21  ;;  %v5112_v40 = vcombine.low %v2024_v36, %v2027_v24  ;;  %v1117_v2 = vrot.slane %v1115_v15, 4  ;;  %v1108_v8 = vor.u32 %v1107_v27, %v1104_v32  ;;  %v282_v24 = vld [vmem:[%s5704_s22 + $0x58] sm:$0xf] }
  0xe0   : > { %v5098_v62 = vcombine.low %v1702_v14, %v1712_v60  ;;  %v1113_v6 = vrot.slane %v1111_v38, 5  ;;  %v1123_v52 = vrot.slane %v1121_v61, 5  ;;  %v4969_v63 = vrot.slane %v4953_v57, 9  ;;  %v306_v60 = vld [vmem:[%s5704_s22 + $0x5c] sm:$0x1] }
  0xe1   : > { %v6611_v10 = vpop.permute.xlu0 %2733  ;;  %v2030_v28 = vrot.slane %v6391_v22, 5  ;;  %v2033_v21 = vrot.slane %v6409_v31, 5  ;;  %v1109_v30 = vrot.slane %v1108_v8, 4  ;;  %v4891_v19 = vrot.slane %v4875_v16, 9  ;;  %v6653_v8 = vld [vmem:[%s5704_s22 + $0x70] sm:$0xf] }
  0xe2   : > { %2741 = vrot.lane.b32.xlu0 %v5098_v62, %s5651_s24  ;;  %v1118_v36 = vor.u32 %v1117_v2, %v1113_v6  ;;  %v1432_v14 = vrot.slane %v6581_v51, 5  ;;  %v1435_v22 = vrot.slane %v4859_v44, 5  ;;  %v3112_v31 = vsel %vm3071_vm9, %v3066_v39, %v6518_v11  ;;  %v6645_v2 = vld [vmem:[%s5704_s22 + $0x6c] sm:$0xf] }
  0xe3   : > { %v6615_v33 = vpop.permute.xlu1 %2421  ;;  %2817 = vrot.lane.b32.xlu1 %v5112_v40, %s5653_s30  ;;  %v2031_v1 = vsel %vm5721_vm4, %v4969_v63, %v2030_v28  ;;  %v2032_v35 = vrot.slane %v2030_v28, 4  ;;  %v1114_v55 = vsel %vm5744_vm5, %v1109_v30, %v1113_v6  ;;  %3497 = vmatprep.mubr.bf16.mxu1 %v3112_v31  ;;  %v2964_v39 = vsel %vm2923_vm12, %v2918_v29, %v6414_v25 }
  0xe4   : > { %v1119_v32 = vrot.slane %v1118_v36, 4  ;;  %v1433_v51 = vsel %vm5721_vm4, %v4891_v19, %v1432_v14  ;;  %v1434_v15 = vrot.slane %v1432_v14, 4  ;;  %v2978_v57 = vsel %vm2972_vm6, %v6528_v34, %v6541_v41  ;;  %3498 = vmatmul.mubr.bf16.gmra.mrb[4].mxu1 %v2964_v39  ;;  %v709_v36 = vld [vmem:[%s5704_s22 + $0x54] sm:$0xe]  ;;  %v5604_v39 = vld [vmem:[%s5704_s22 + $0x1c] sm:$0xf] }
  0xe5   : > { %v2034_v44 = vsel %vm5721_vm4, %v2032_v35, %v2033_v21  ;;  %v487_v40 = vshrl.u32 %v281_v48, 16  ;;  %v490_v25 = vshll.u32 %v281_v48, 16  ;;  %v496_v63 = vshll.u32 %v282_v24, 16 }
  0xe6   : > { %v6632_v27 = vpop.permute.xlu0 %2501  ;;  %2407 = vrot.lane.b32.xlu0 %v5035_v4, %s5646_s23  ;;  %v1124_v61 = vsel %vm5744_vm5, %v1119_v32, %v1123_v52  ;;  %v5113_v16 = vcombine.low %v2031_v1, %v2034_v44  ;;  %v1436_v62 = vsel %vm5721_vm4, %v1434_v15, %v1435_v22  ;;  %v500_v21 = vshrl.u32 %v282_v24, 16  ;;  %v5603_v44 = vld [vmem:[%s5704_s22 + $0x18] sm:$0xf] }
  0xe7   : > { %v6634_v38 = vpop.permute.xlu1 %2581  ;;  %v5051_v6 = vcombine.low %v1114_v55, %v1124_v61  ;;  %v5067_v41 = vcombine.low %v1433_v51, %v1436_v62  ;;  %v489_v29 = vrot.slane %v487_v40, 4  ;;  %v492_v28 = vrot.slane %v490_v25, 5 }
  0xe8   : > { %v506_v30 = vshll.u32 %v306_v60, 16  ;;  %v1714_v4 = vshrl.u32 %v6645_v2, 16  ;;  %v498_v52 = vrot.slane %v496_v63, 5  ;;  %v1717_v19 = vshll.u32 %v6645_v2, 16 }
  0xe9   : > { %2487 = vrot.lane.b32.xlu1 %v5051_v6, %s5649_s8  ;;  %v1727_v14 = vshrl.u32 %v6653_v8, 16  ;;  %v5083_v48 = vcombine.low %v6645_v2, %v6653_v8  ;;  %v493_v1 = vor.u32 %v492_v28, %v489_v29  ;;  %v502_v35 = vrot.slane %v500_v21, 4  ;;  %v6672_v6 = vld [vmem:[%s5704_s22 + $0x74] sm:$0x1] }
  0xea   : > { %2819 = vrot.lane.b32.xlu0 %v5113_v16, %s5653_s30  ;;  %v508_v22 = vrot.slane %v506_v30, 5  ;;  %v1716_v31 = vrot.slane %v1714_v4, 4  ;;  %v1719_v51 = vrot.slane %v1717_v19, 5  ;;  %v3011_v15 = vsel %vm3005_vm7, %v2978_v57, %v6543_v3  ;;  %v4954_v57 = vld [vmem:[%s5704_s22 + $0x60] sm:$0xe] }
  0xeb   : > { %v6665_v32 = vpop.permute.xlu1 %2677  ;;  %v4982_v40 = vcombine.low %v5603_v44, %v5604_v39  ;;  %v4811_v2 = vrot.slane %v709_v36, 9  ;;  %v494_v61 = vrot.slane %v493_v1, 4  ;;  %v503_v16 = vor.u32 %v502_v35, %v498_v52 }
  0xec   : > { %v6663_v55 = vpop.permute.xlu0 %2245  ;;  %v820_v62 = vrot.slane %v282_v24, 5  ;;  %v823_v25 = vrot.slane %v306_v60, 5  ;;  %v1720_v63 = vor.u32 %v1719_v51, %v1716_v31  ;;  %v1723_v28 = vshll.u32 %v6653_v8, 16  ;;  %v6698_v51 = vld [vmem:[%s5704_s22 + $0x70] sm:$0xf] }
  0xed   : > { %2567 = vrot.lane.b32.xlu1 %v5067_v41, %s5648_s29  ;;  %v2850_v29 = vsel %vm2841_vm10, %v4982_v40, %v6572_v0  ;;  %v1729_v3 = vrot.slane %v1727_v14, 4  ;;  %v499_v21 = vsel %vm5744_vm5, %v494_v61, %v498_v52  ;;  %v504_v30 = vrot.slane %v503_v16, 4  ;;  %v6689_v14 = vld [vmem:[%s5704_s22 + $0x6c] sm:$0xf]  ;;  %v6709_v16 = vld [vmem:[%s5704_s22 + $0x74] sm:$0x1] }
  0xee   : > { %v821_v24 = vsel %vm5721_vm4, %v4811_v2, %v820_v62  ;;  %v822_v60 = vrot.slane %v820_v62, 4  ;;  %v1721_v41 = vrot.slane %v1720_v63, 4  ;;  %v1725_v36 = vrot.slane %v1723_v28, 5  ;;  %v4955_v28 = vld [vmem:[%s5704_s22 + $0x6c] sm:$0xe] }
  0xef   : > { %v1733_v0 = vshll.u32 %v6672_v6, 16  ;;  %v3044_v19 = vsel %vm3038_vm8, %v3011_v15, %v6576_v12  ;;  %v509_v52 = vsel %vm5744_vm5, %v504_v30, %v508_v22  ;;  %v2896_v35 = vsel %vm2890_vm11, %v2850_v29, %v6596_v53 }
  0xf0   : > { %v6683_v4 = vpop.permute.xlu0 %2325  ;;  %v824_v1 = vsel %vm5721_vm4, %v822_v60, %v823_v25  ;;  %v4970_v31 = vrot.slane %v4954_v57, 9  ;;  %v5003_v39 = vcombine.low %v499_v21, %v509_v52  ;;  %v1726_v15 = vsel %vm5744_vm5, %v1721_v41, %v1725_v36 }
  0xf1   : > { %2663 = vrot.lane.b32.xlu1 %v5083_v48, %s5647_s26  ;;  %v5019_v12 = vcombine.low %v821_v24, %v824_v1  ;;  %v1730_v22 = vor.u32 %v1729_v3, %v1725_v36  ;;  %v1735_v40 = vrot.slane %v1733_v0, 5  ;;  %v2037_v2 = vrot.slane %v6526_v26, 5 }
  0xf2   : > { %v6700_v44 = vpop.permute.xlu1 %2757  ;;  %v2040_v61 = vrot.slane %v6552_v47, 5  ;;  %v1126_v53 = vshrl.u32 %v6689_v14, 16  ;;  %2231 = vrot.lane.b32.xlu0 %v5003_v39, %s5652_s25  ;;  %v1129_v48 = vshll.u32 %v6689_v14, 16  ;;  %v1139_v29 = vshrl.u32 %v6698_v51, 16 }
  0xf3   : > { %v1731_v25 = vrot.slane %v1730_v22, 4  ;;  %v5036_v63 = vcombine.low %v6689_v14, %v6698_v51  ;;  %v2038_v26 = vsel %vm5721_vm4, %v4970_v31, %v2037_v2  ;;  %v2039_v47 = vrot.slane %v2037_v2, 4  ;;  %v4876_v2 = vld [vmem:[%s5704_s22 + $0x6c] sm:$0xe] }
  0xf4   : > { %v6711_v62 = vpop.permute.xlu0 %2399  ;;  %v1128_v3 = vrot.slane %v1126_v53, 4  ;;  %v1135_v57 = vshll.u32 %v6698_v51, 16  ;;  %v1131_v30 = vrot.slane %v1129_v48, 5  ;;  %v1141_v24 = vrot.slane %v1139_v29, 4  ;;  %v283_v48 = vld [vmem:[%s5704_s22 + $0x60] sm:$0xf] }
  0xf5   : > { %v1736_v21 = vsel %vm5744_vm5, %v1731_v25, %v1735_v40  ;;  %v1145_v60 = vshll.u32 %v6709_v16, 16  ;;  %v2041_v0 = vsel %vm5721_vm4, %v2039_v47, %v2040_v61  ;;  %v4971_v52 = vrot.slane %v4955_v28, 9 }
  0xf6   : > { %v5099_v36 = vcombine.low %v1726_v15, %v1736_v21  ;;  %v1137_v14 = vrot.slane %v1135_v57, 5  ;;  %2311 = vrot.lane.b32.xlu0 %v5019_v12, %s5650_s9  ;;  %v5114_v31 = vcombine.low %v2038_v26, %v2041_v0  ;;  %v1132_v39 = vor.u32 %v1131_v30, %v1128_v3  ;;  %v6759_v57 = vld [vmem:[%s5704_s22 + $0x68] sm:$0x1] }
  0xf7   : > { %v6725_v41 = vpop.permute.xlu1 %2479  ;;  %v1147_v22 = vrot.slane %v1145_v60, 5  ;;  %v2044_v40 = vrot.slane %v6653_v8, 5  ;;  %v2047_v53 = vrot.slane %v6672_v6, 5  ;;  %v3079_v61 = vsel %vm3071_vm9, %v3044_v19, %v6611_v10 }
  0xf8   : > { %v6729_v1 = vpop.permute.xlu0 %2559  ;;  %2743 = vrot.lane.b32.xlu1 %v5099_v36, %s5651_s24  ;;  %v1142_v15 = vor.u32 %v1141_v24, %v1137_v14  ;;  %v2931_v25 = vsel %vm2923_vm12, %v2896_v35, %v6528_v34  ;;  %v1133_v12 = vrot.slane %v1132_v39, 4  ;;  %3409 = vmatprep.mubr.bf16.mxu0 %v3079_v61  ;;  %v3002_v28 = vsel %vm2972_vm6, %v6615_v33, %v6632_v27  ;;  %v6750_v35 = vld [vmem:[%s5704_s22 + $0x64] sm:$0xf] }
  0xf9   : > { %v2045_v29 = vsel %vm5721_vm4, %v4971_v52, %v2044_v40  ;;  %v2046_v8 = vrot.slane %v2044_v40, 4  ;;  %3410 = vmatmul.mubr.bf16.gmra.mrb[8].mxu0 %v2931_v25  ;;  %v3035_v6 = vsel %vm3005_vm7, %v3002_v28, %v6634_v38  ;;  %v4892_v19 = vrot.slane %v4876_v2, 9  ;;  %v5605_v2 = vld [vmem:[%s5704_s22 + $0xa8] sm:$0xf] }
  0xfa   : > { %v1143_v26 = vrot.slane %v1142_v15, 4  ;;  %v1439_v34 = vrot.slane %v6698_v51, 5  ;;  %2821 = vrot.lane.b32.xlu0 %v5114_v31, %s5653_s30  ;;  %v1138_v47 = vsel %vm5744_vm5, %v1133_v12, %v1137_v14  ;;  %v1442_v27 = vrot.slane %v6709_v16, 5  ;;  %v4916_v31 = vld [vmem:[%s5704_s22 + $0x78] sm:$0xf] }
  0xfb   : > { %v2048_v3 = vsel %vm5721_vm4, %v2046_v8, %v2047_v53  ;;  %v511_v21 = vshrl.u32 %v283_v48, 16  ;;  %v514_v14 = vshll.u32 %v283_v48, 16  ;;  %v520_v52 = vshll.u32 %v6750_v35, 16  ;;  %v4917_v53 = vld [vmem:[%s5704_s22 + $0x7c] sm:$0xf] }
  0xfc   : > { %v6763_v51 = vpop.permute.xlu0 %2655  ;;  %2409 = vrot.lane.b32.xlu1 %v5036_v63, %s5646_s23  ;;  %v1148_v30 = vsel %vm5744_vm5, %v1143_v26, %v1147_v22  ;;  %v5115_v24 = vcombine.low %v2045_v29, %v2048_v3  ;;  %v1440_v60 = vsel %vm5721_vm4, %v4892_v19, %v1439_v34  ;;  %v1441_v16 = vrot.slane %v1439_v34, 4  ;;  %v5606_v22 = vld [vmem:[%s5704_s22 + $0xac] sm:$0xf] }
  0xfd   : > { %v6761_v38 = vpop.permute.xlu1 %2223  ;;  %v5052_v36 = vcombine.low %v1138_v47, %v1148_v30  ;;  %v513_v0 = vrot.slane %v511_v21, 4  ;;  %v524_v63 = vshrl.u32 %v6750_v35, 16  ;;  %v530_v40 = vshll.u32 %v6759_v57, 16  ;;  %v710_v21 = vld [vmem:[%s5704_s22 + $0x60] sm:$0xe] }
  0xfe   : > { %v1443_v39 = vsel %vm5721_vm4, %v1441_v16, %v1442_v27  ;;  %v4994_v15 = vcombine.low %v5605_v2, %v5606_v22  ;;  %v516_v25 = vrot.slane %v514_v14, 5  ;;  %v522_v48 = vrot.slane %v520_v52, 5  ;;  %v4940_v52 = vld [vmem:[%s5704_s22 + $0x80] sm:$0x1]  ;;  %v4956_v22 = vld [vmem:[%s5704_s22 + $0x78] sm:$0xe] }
  0xff   : > { %2489 = vrot.lane.b32.xlu0 %v5052_v36, %s5649_s8  ;;  %v5068_v61 = vcombine.low %v1440_v60, %v1443_v39  ;;  %v3068_v12 = vsel %vm3038_vm8, %v3035_v6, %v6665_v32  ;;  %v526_v8 = vrot.slane %v524_v63, 4  ;;  %v532_v28 = vrot.slane %v530_v40, 5 }
 0x100   : > { %2823 = vrot.lane.b32.xlu1 %v5115_v24, %s5653_s30  ;;  %v2886_v26 = vsel %vm2841_vm10, %v4994_v15, %v6663_v55  ;;  %v1738_v19 = vshrl.u32 %v4916_v31, 16  ;;  %v517_v34 = vor.u32 %v516_v25, %v513_v0  ;;  %v1741_v47 = vshll.u32 %v4916_v31, 16 }
 0x101   : > { %v6782_v29 = vpop.permute.xlu1 %2303  ;;  %v1747_v3 = vshll.u32 %v4917_v53, 16  ;;  %v1751_v27 = vshrl.u32 %v4917_v53, 16  ;;  %v527_v32 = vor.u32 %v526_v8, %v522_v48  ;;  %v2051_v60 = vrot.slane %v4917_v53, 5 }
 0x102   : > { %v6788_v30 = vpop.permute.xlu0 %2735  ;;  %v1740_v6 = vrot.slane %v1738_v19, 4  ;;  %v5084_v16 = vcombine.low %v4916_v31, %v4917_v53  ;;  %v518_v24 = vrot.slane %v517_v34, 4  ;;  %v1743_v36 = vrot.slane %v1741_v47, 5 }
 0x103   : > { %2569 = vrot.lane.b32.xlu0 %v5068_v61, %s5648_s29  ;;  %v1749_v14 = vrot.slane %v1747_v3, 5  ;;  %v1753_v55 = vrot.slane %v1751_v27, 4  ;;  %v528_v0 = vrot.slane %v527_v32, 4  ;;  %v4812_v63 = vrot.slane %v710_v21, 9  ;;  %v4838_v32 = vld [vmem:[%s5704_s22 + $0x78] sm:$0xf] }
 0x104   : > { %v827_v40 = vrot.slane %v6750_v35, 5  ;;  %v830_v2 = vrot.slane %v6759_v57, 5  ;;  %v523_v15 = vsel %vm5744_vm5, %v518_v24, %v522_v48  ;;  %v1744_v31 = vor.u32 %v1743_v36, %v1740_v6 }
 0x105   : > { %v6792_v39 = vpop.permute.xlu1 %2423  ;;  %v2920_v53 = vsel %vm2890_vm11, %v2886_v26, %v6683_v4  ;;  %v1754_v61 = vor.u32 %v1753_v55, %v1749_v14  ;;  %v533_v25 = vsel %vm5744_vm5, %v528_v0, %v532_v28  ;;  %v1757_v35 = vshll.u32 %v4940_v52, 16  ;;  %v6821_v55 = vld [vmem:[%s5704_s22 + $0x7c] sm:$0xf]  ;;  %v6824_v0 = vld [vmem:[%s5704_s22 + $0x80] sm:$0x1] }
 0x106   : > { %v828_v8 = vsel %vm5721_vm4, %v4812_v63, %v827_v40  ;;  %v829_v19 = vrot.slane %v827_v40, 4  ;;  %v5004_v57 = vcombine.low %v523_v15, %v533_v25  ;;  %v1745_v47 = vrot.slane %v1744_v31, 4  ;;  %v6836_v15 = vld [vmem:[%s5704_s22 + $0x84] sm:$0xf]  ;;  %v6843_v25 = vld [vmem:[%s5704_s22 + $0x88] sm:$0xf] }
 0x107   : > { %2665 = vrot.lane.b32.xlu0 %v5084_v16, %s5647_s26  ;;  %v1755_v48 = vrot.slane %v1754_v61, 4  ;;  %v4972_v4 = vrot.slane %v4956_v22, 9  ;;  %v1759_v3 = vrot.slane %v1757_v35, 5  ;;  %v2053_v27 = vrot.slane %v2051_v60, 4 }
 0x108   : > { %v6805_v34 = vpop.permute.xlu0 %2503  ;;  %v831_v28 = vsel %vm5721_vm4, %v829_v19, %v830_v2  ;;  %v2054_v21 = vrot.slane %v4940_v52, 5  ;;  %2233 = vrot.lane.b32.xlu1 %v5004_v57, %s5652_s25  ;;  %v1750_v24 = vsel %vm5744_vm5, %v1745_v47, %v1749_v14  ;;  %v3115_v36 = vsel %vm3071_vm9, %v3068_v12, %v6700_v44  ;;  %v5607_v47 = vld [vmem:[%s5704_s22 + $0x24] sm:$0xf] }
 0x109   : > { %v6808_v26 = vpop.permute.xlu1 %2583  ;;  %v5020_v6 = vcombine.low %v828_v8, %v831_v28  ;;  %v2052_v16 = vsel %vm5721_vm4, %v4972_v4, %v2051_v60  ;;  %v1760_v52 = vsel %vm5744_vm5, %v1755_v48, %v1759_v3  ;;  %3505 = vmatprep.mubr.bf16.mxu1 %v3115_v36  ;;  %v2967_v14 = vsel %vm2923_vm12, %v2920_v53, %v6615_v33  ;;  %v5608_v48 = vld [vmem:[%s5704_s22 + $0x28] sm:$0xf]  ;;  %v4941_v28 = vld [vmem:[%s5704_s22 + $0x8c] sm:$0x1] }
 0x10a   : > { %v2055_v63 = vsel %vm5721_vm4, %v2053_v27, %v2054_v21  ;;  %v2980_v60 = vsel %vm2972_vm6, %v6711_v62, %v6725_v41  ;;  %v5100_v12 = vcombine.low %v1750_v24, %v1760_v52  ;;  %3506 = vmatmul.mubr.bf16.gmra.mrb[8].mxu1 %v2967_v14  ;;  %v1150_v2 = vshrl.u32 %v4838_v32, 16  ;;  %v4957_v24 = vld [vmem:[%s5704_s22 + $0x84] sm:$0xe] }
 0x10b   : > { %v5116_v40 = vcombine.low %v2052_v16, %v2055_v63  ;;  %v1153_v22 = vshll.u32 %v4838_v32, 16  ;;  %v1163_v31 = vshrl.u32 %v6821_v55, 16  ;;  %v5037_v61 = vcombine.low %v4838_v32, %v6821_v55 }
 0x10c   : > { %v1159_v33 = vshll.u32 %v6821_v55, 16  ;;  %v1169_v53 = vshll.u32 %v6824_v0, 16  ;;  %2313 = vrot.lane.b32.xlu1 %v5020_v6, %s5650_s9  ;;  %2745 = vrot.lane.b32.xlu0 %v5100_v12, %s5651_s24  ;;  %v1152_v19 = vrot.slane %v1150_v2, 4  ;;  %v3013_v57 = vsel %vm3005_vm7, %v2980_v60, %v6729_v1 }
 0x10d   : > { %v6845_v41 = vpop.permute.xlu0 %2247  ;;  %v6847_v8 = vpop.permute.xlu1 %2679  ;;  %v1155_v35 = vrot.slane %v1153_v22, 5  ;;  %v4983_v4 = vcombine.low %v5607_v47, %v5608_v48  ;;  %v1165_v27 = vrot.slane %v1163_v31, 4  ;;  %v1762_v32 = vshrl.u32 %v6836_v15, 16  ;;  %v4877_v47 = vld [vmem:[%s5704_s22 + $0x78] sm:$0xe] }
 0x10e   : > { %v1161_v3 = vrot.slane %v1159_v33, 5  ;;  %v1171_v21 = vrot.slane %v1169_v53, 5  ;;  %v1765_v36 = vshll.u32 %v6836_v15, 16  ;;  %v1771_v52 = vshll.u32 %v6843_v25, 16 }
 0x10f   : > { %v1156_v16 = vor.u32 %v1155_v35, %v1152_v19  ;;  %v2853_v6 = vsel %vm2841_vm10, %v4983_v4, %v6761_v38  ;;  %v1764_v63 = vrot.slane %v1762_v32, 4  ;;  %v1775_v14 = vshrl.u32 %v6843_v25, 16 }
 0x110   : > { %v1166_v1 = vor.u32 %v1165_v27, %v1161_v3  ;;  %v1781_v60 = vshll.u32 %v4941_v28, 16  ;;  %2825 = vrot.lane.b32.xlu1 %v5116_v40, %s5653_s30  ;;  %2411 = vrot.lane.b32.xlu0 %v5037_v61, %s5646_s23  ;;  %v1767_v22 = vrot.slane %v1765_v36, 5  ;;  %v1773_v31 = vrot.slane %v1771_v52, 5  ;;  %v6880_v52 = vld [vmem:[%s5704_s22 + $0x6c] sm:$0xf] }
 0x111   : > { %v6863_v12 = vpop.permute.xlu0 %2327  ;;  %v1157_v2 = vrot.slane %v1156_v16, 4  ;;  %v4973_v38 = vrot.slane %v4957_v24, 9  ;;  %v1777_v53 = vrot.slane %v1775_v14, 4  ;;  %v2058_v35 = vrot.slane %v6843_v25, 5 }
 0x112   : > { %v1167_v33 = vrot.slane %v1166_v1, 4  ;;  %v1783_v19 = vrot.slane %v1781_v60, 5  ;;  %v1768_v40 = vor.u32 %v1767_v22, %v1764_v63  ;;  %v2061_v27 = vrot.slane %v4941_v28, 5 }
 0x113   : > { %v6869_v48 = vpop.permute.xlu1 %2759  ;;  %v1162_v4 = vsel %vm5744_vm5, %v1157_v2, %v1161_v3  ;;  %v3046_v61 = vsel %vm3038_vm8, %v3013_v57, %v6763_v51  ;;  %v1778_v24 = vor.u32 %v1777_v53, %v1773_v31  ;;  %v2059_v16 = vsel %vm5721_vm4, %v4973_v38, %v2058_v35  ;;  %v6887_v51 = vld [vmem:[%s5704_s22 + $0x70] sm:$0xf] }
 0x114   : > { %v1172_v32 = vsel %vm5744_vm5, %v1167_v33, %v1171_v21  ;;  %v2060_v36 = vrot.slane %v2058_v35, 4  ;;  %v1769_v3 = vrot.slane %v1768_v40, 4  ;;  %v2898_v28 = vsel %vm2890_vm11, %v2853_v6, %v6782_v29  ;;  %v308_v33 = vld [vmem:[%s5704_s22 + $0x74] sm:$0x1] }
 0x115   : > { %v6882_v1 = vpop.permute.xlu0 %2401  ;;  %v5053_v14 = vcombine.low %v1162_v4, %v1172_v32  ;;  %v4893_v63 = vrot.slane %v4877_v47, 9  ;;  %v1779_v57 = vrot.slane %v1778_v24, 4  ;;  %v1446_v60 = vrot.slane %v6821_v55, 5  ;;  %v711_v4 = vld [vmem:[%s5704_s22 + $0x6c] sm:$0xe] }
 0x116   : > { %v2062_v21 = vsel %vm5721_vm4, %v2060_v36, %v2061_v27  ;;  %v1449_v2 = vrot.slane %v6824_v0, 5  ;;  %v1774_v22 = vsel %vm5744_vm5, %v1769_v3, %v1773_v31  ;;  %v535_v29 = vshrl.u32 %v6880_v52, 16 }
 0x117   : > { %2491 = vrot.lane.b32.xlu1 %v5053_v14, %s5649_s8  ;;  %v5117_v38 = vcombine.low %v2059_v16, %v2062_v21  ;;  %v538_v6 = vshll.u32 %v6880_v52, 16  ;;  %v1784_v35 = vsel %vm5744_vm5, %v1779_v57, %v1783_v19  ;;  %v1447_v55 = vsel %vm5721_vm4, %v4893_v63, %v1446_v60 }
 0x118   : > { %v1448_v0 = vrot.slane %v1446_v60, 4  ;;  %v544_v47 = vshll.u32 %v6887_v51, 16  ;;  %v5101_v31 = vcombine.low %v1774_v22, %v1784_v35  ;;  %v537_v40 = vrot.slane %v535_v29, 4  ;;  %v6917_v60 = vld [vmem:[%s5704_s22 + $0x90] sm:$0xf] }
 0x119   : > { %v6899_v53 = vpop.permute.xlu1 %2481  ;;  %v540_v27 = vrot.slane %v538_v6, 5  ;;  %v548_v32 = vshrl.u32 %v6887_v51, 16  ;;  %v6908_v24 = vpop.permute.xlu0 %2561  ;;  %v554_v36 = vshll.u32 %v308_v33, 16  ;;  %v5085_v14 = vcombine.low %v6836_v15, %v6843_v25  ;;  %v6923_v35 = vld [vmem:[%s5704_s22 + $0x94] sm:$0xf] }
 0x11a   : > { %v1450_v16 = vsel %vm5721_vm4, %v1448_v0, %v1449_v2  ;;  %v546_v19 = vrot.slane %v544_v47, 5  ;;  %2747 = vrot.lane.b32.xlu0 %v5101_v31, %s5651_s24  ;;  %v4813_v21 = vrot.slane %v711_v4, 9  ;;  %v834_v29 = vrot.slane %v6887_v51, 5  ;;  %v4942_v47 = vld [vmem:[%s5704_s22 + $0x98] sm:$0x1] }
 0x11b   : > { %2827 = vrot.lane.b32.xlu1 %v5117_v38, %s5653_s30  ;;  %v5069_v3 = vcombine.low %v1447_v55, %v1450_v16  ;;  %v541_v63 = vor.u32 %v540_v27, %v537_v40  ;;  %v550_v57 = vrot.slane %v548_v32, 4  ;;  %v556_v22 = vrot.slane %v554_v36, 5  ;;  %v4958_v27 = vld [vmem:[%s5704_s22 + $0x90] sm:$0xe] }
 0x11c   : > { %v837_v2 = vrot.slane %v308_v33, 5  ;;  %v3082_v6 = vsel %vm3071_vm9, %v3046_v61, %v6788_v30  ;;  %v2934_v55 = vsel %vm2923_vm12, %v2898_v28, %v6711_v62  ;;  %v3004_v0 = vsel %vm2972_vm6, %v6792_v39, %v6805_v34 }
 0x11d   : > { %v542_v25 = vrot.slane %v541_v63, 4  ;;  %v551_v38 = vor.u32 %v550_v57, %v546_v19  ;;  %3417 = vmatprep.mubr.bf16.mxu0 %v3082_v6  ;;  %v835_v33 = vsel %vm5721_vm4, %v4813_v21, %v834_v29  ;;  %v836_v61 = vrot.slane %v834_v29, 4  ;;  %v6944_v32 = vpop.permute.xlu0 %2657  ;;  %v6954_v6 = vld [vmem:[%s5704_s22 + $0x84] sm:$0xf] }
 0x11e   : > { %v6925_v15 = vpop.permute.xlu1 %2225  ;;  %3418 = vmatmul.mubr.bf16.gmra.mrb[12].mxu0 %v2934_v55  ;;  %v3037_v4 = vsel %vm3005_vm7, %v3004_v0, %v6808_v26  ;;  %v1786_v31 = vshrl.u32 %v6917_v60, 16  ;;  %2571 = vrot.lane.b32.xlu0 %v5069_v3, %s5648_s29  ;;  %v1789_v34 = vshll.u32 %v6917_v60, 16  ;;  %v1795_v40 = vshll.u32 %v6923_v35, 16 }
 0x11f   : > { %v547_v62 = vsel %vm5744_vm5, %v542_v25, %v546_v19  ;;  %v552_v28 = vrot.slane %v551_v38, 4  ;;  %v838_v16 = vsel %vm5721_vm4, %v836_v61, %v837_v2  ;;  %v1799_v36 = vshrl.u32 %v6923_v35, 16 }
 0x120   : > { %v1788_v26 = vrot.slane %v1786_v31, 4  ;;  %v1805_v3 = vshll.u32 %v4942_v47, 16  ;;  %v5021_v57 = vcombine.low %v835_v33, %v838_v16  ;;  %v1791_v21 = vrot.slane %v1789_v34, 5 }
 0x121   : > { %v557_v19 = vsel %vm5744_vm5, %v552_v28, %v556_v22  ;;  %v1797_v29 = vrot.slane %v1795_v40, 5  ;;  %v1801_v38 = vrot.slane %v1799_v36, 4  ;;  %v4974_v55 = vrot.slane %v4958_v27, 9  ;;  %v6961_v22 = vld [vmem:[%s5704_s22 + $0x88] sm:$0xf] }
 0x122   : > { %v6949_v63 = vpop.permute.xlu1 %2305  ;;  %v5005_v25 = vcombine.low %v547_v62, %v557_v19  ;;  %v1807_v2 = vrot.slane %v1805_v3, 5  ;;  %2667 = vrot.lane.b32.xlu0 %v5085_v14, %s5647_s26  ;;  %v1792_v0 = vor.u32 %v1791_v21, %v1788_v26  ;;  %v2065_v61 = vrot.slane %v6923_v35, 5  ;;  %v6978_v36 = vld [vmem:[%s5704_s22 + $0x8c] sm:$0x1]  ;;  %v6988_v21 = vld [vmem:[%s5704_s22 + $0x9c] sm:$0xf] }
 0x123   : > { %v2068_v31 = vrot.slane %v4942_v47, 5  ;;  %v4995_v7 = vcombine.low %v5609_v9, %v5610_v42  ;;  %v1802_v33 = vor.u32 %v1801_v38, %v1797_v29  ;;  %v3070_v62 = vsel %vm3038_vm8, %v3037_v4, %v6847_v8 }
 0x124   : > { %2235 = vrot.lane.b32.xlu1 %v5005_v25, %s5652_s25  ;;  %v1174_v28 = vshrl.u32 %v6954_v6, 16  ;;  %v1177_v14 = vshll.u32 %v6954_v6, 16  ;;  %v1793_v34 = vrot.slane %v1792_v0, 4  ;;  %v2066_v47 = vsel %vm5721_vm4, %v4974_v55, %v2065_v61  ;;  %v6972_v40 = vpop.permute.xlu0 %2737  ;;  %v6991_v25 = vld [vmem:[%s5704_s22 + $0xa0] sm:$0xf] }
 0x125   : > { %v2067_v42 = vrot.slane %v2065_v61, 4  ;;  %v2889_v9 = vsel %vm2841_vm10, %v4995_v7, %v6845_v41  ;;  %v1803_v16 = vrot.slane %v1802_v33, 4  ;;  %v1187_v26 = vshrl.u32 %v6961_v22, 16  ;;  %v4943_v61 = vld [vmem:[%s5704_s22 + $0xa4] sm:$0x1] }
 0x126   : > { %v6974_v27 = vpop.permute.xlu1 %2809  ;;  %v1176_v8 = vrot.slane %v1174_v28, 4  ;;  %v1179_v4 = vrot.slane %v1177_v14, 5  ;;  %v1798_v3 = vsel %vm5744_vm5, %v1793_v34, %v1797_v29  ;;  %v5038_v7 = vcombine.low %v6954_v6, %v6961_v22 }
 0x127   : > { %v2069_v19 = vsel %vm5721_vm4, %v2067_v42, %v2068_v31  ;;  %v1183_v41 = vshll.u32 %v6961_v22, 16  ;;  %v1808_v38 = vsel %vm5744_vm5, %v1803_v16, %v1807_v2  ;;  %v1189_v0 = vrot.slane %v1187_v26, 4  ;;  %v4959_v2 = vld [vmem:[%s5704_s22 + $0x9c] sm:$0xe] }
 0x128   : > { %2315 = vrot.lane.b32.xlu1 %v5021_v57, %s5650_s9  ;;  %v5118_v55 = vcombine.low %v2066_v47, %v2069_v19  ;;  %v1180_v29 = vor.u32 %v1179_v4, %v1176_v8  ;;  %v5102_v31 = vcombine.low %v1798_v3, %v1808_v38  ;;  %v1193_v6 = vshll.u32 %v6978_v36, 16  ;;  %v7006_v26 = vpop.permute.xlu0 %2403  ;;  %v4878_v38 = vld [vmem:[%s5704_s22 + $0x84] sm:$0xe] }
 0x129   : > { %v1185_v33 = vrot.slane %v1183_v41, 5  ;;  %v2922_v28 = vsel %vm2890_vm11, %v2889_v9, %v6863_v12  ;;  %v1810_v34 = vshrl.u32 %v6988_v21, 16  ;;  %v1813_v57 = vshll.u32 %v6988_v21, 16 }
 0x12a   : > { %v1181_v14 = vrot.slane %v1180_v29, 4  ;;  %v1819_v42 = vshll.u32 %v6991_v25, 16  ;;  %2749 = vrot.lane.b32.xlu0 %v5102_v31, %s5651_s24  ;;  %v1195_v16 = vrot.slane %v1193_v6, 5  ;;  %v1823_v8 = vshrl.u32 %v6991_v25, 16 }
 0x12b   : > { %v1190_v47 = vor.u32 %v1189_v0, %v1185_v33  ;;  %v1829_v4 = vshll.u32 %v4943_v61, 16  ;;  %v1812_v9 = vrot.slane %v1810_v34, 4  ;;  %v1815_v19 = vrot.slane %v1813_v57, 5 }
 0x12c   : > { %v7008_v3 = vpop.permute.xlu1 %2483  ;;  %2829 = vrot.lane.b32.xlu1 %v5118_v55, %s5653_s30  ;;  %v1186_v12 = vsel %vm5744_vm5, %v1181_v14, %v1185_v33  ;;  %v1821_v41 = vrot.slane %v1819_v42, 5  ;;  %v1825_v0 = vrot.slane %v1823_v8, 4  ;;  %v4975_v6 = vrot.slane %v4959_v2, 9  ;;  %v7023_v42 = vld [vmem:[%s5704_s22 + $0x78] sm:$0xf] }
 0x12d   : > { %v1191_v29 = vrot.slane %v1190_v47, 4  ;;  %v1831_v31 = vrot.slane %v1829_v4, 5  ;;  %v1816_v45 = vor.u32 %v1815_v19, %v1812_v9  ;;  %v2072_v18 = vrot.slane %v6991_v25, 5  ;;  %v7036_v9 = vld [vmem:[%s5704_s22 + $0x7c] sm:$0xf] }
 0x12e   : > { %v2075_v50 = vrot.slane %v4943_v61, 5  ;;  %v3118_v55 = vsel %vm3071_vm9, %v3070_v62, %v6869_v48  ;;  %2413 = vrot.lane.b32.xlu0 %v5038_v7, %s5646_s23  ;;  %v1826_v14 = vor.u32 %v1825_v0, %v1821_v41  ;;  %v2970_v34 = vsel %vm2923_vm12, %v2922_v28, %v6792_v39  ;;  %v309_v19 = vld [vmem:[%s5704_s22 + $0x80] sm:$0x1] }
 0x12f   : > { %v1196_v33 = vsel %vm5744_vm5, %v1191_v29, %v1195_v16  ;;  %3513 = vmatprep.mubr.bf16.mxu1 %v3118_v55  ;;  %v4894_v57 = vrot.slane %v4878_v38, 9  ;;  %v1817_v61 = vrot.slane %v1816_v45, 4  ;;  %v2073_v62 = vsel %vm5721_vm4, %v4975_v6, %v2072_v18  ;;  %v7030_v16 = vld [vmem:[%s5704_s22 + $0xd4] sm:$0x1]  ;;  %v7038_v45 = vpop.permute.xlu0 %2811 }
 0x130   : > { %v5054_v2 = vcombine.low %v1186_v12, %v1196_v33  ;;  %v2074_v47 = vrot.slane %v2072_v18, 4  ;;  %3514 = vmatmul.mubr.bf16.gmra.mrb[12].mxu1 %v2970_v34  ;;  %v7027_v7 = vpop.permute.xlu1 %2563  ;;  %v2103_v8 = vrot.slane %v7030_v16, 5  ;;  %v1827_v4 = vrot.slane %v1826_v14, 4  ;;  %v712_v14 = vld [vmem:[%s5704_s22 + $0x78] sm:$0xe] }
 0x131   : > { %v1453_v39 = vrot.slane %v6961_v22, 5  ;;  %v1456_v28 = vrot.slane %v6978_v36, 5  ;;  %v1822_v18 = vsel %vm5744_vm5, %v1817_v61, %v1821_v41  ;;  %v559_v38 = vshrl.u32 %v7023_v42, 16 }
 0x132   : > { %2493 = vrot.lane.b32.xlu1 %v5054_v2, %s5649_s8  ;;  %v2076_v12 = vsel %vm5721_vm4, %v2074_v47, %v2075_v50  ;;  %v562_v22 = vshll.u32 %v7023_v42, 16  ;;  %v1832_v36 = vsel %vm5744_vm5, %v1827_v4, %v1831_v31  ;;  %v568_v50 = vshll.u32 %v7036_v9, 16  ;;  %v5612_v4 = vld [vmem:[%s5704_s22 + $0x30] sm:$0xf] }
 0x133   : > { %v5119_v29 = vcombine.low %v2073_v62, %v2076_v12  ;;  %v1454_v0 = vsel %vm5721_vm4, %v4894_v57, %v1453_v39  ;;  %v1455_v6 = vrot.slane %v1453_v39, 4  ;;  %v5103_v55 = vcombine.low %v1822_v18, %v1832_v36  ;;  %v5613_v39 = vld [vmem:[%s5704_s22 + $0x34] sm:$0xf]  ;;  %v4960_v12 = vld [vmem:[%s5704_s22 + $0xa8] sm:$0xe] }
 0x134   : > { %v561_v41 = vrot.slane %v559_v38, 4  ;;  %v564_v33 = vrot.slane %v562_v22, 5  ;;  %v2982_v34 = vsel %vm2972_vm6, %v6882_v1, %v6899_v53  ;;  %v572_v2 = vshrl.u32 %v7036_v9, 16  ;;  %v7065_v53 = vpop.permute.xlu1 %2659 }
 0x135   : > { %v1457_v31 = vsel %vm5721_vm4, %v1455_v6, %v1456_v28  ;;  %v578_v57 = vshll.u32 %v309_v19, 16  ;;  %2751 = vrot.lane.b32.xlu0 %v5103_v55, %s5651_s24  ;;  %v570_v47 = vrot.slane %v568_v50, 5  ;;  %v4984_v18 = vcombine.low %v5612_v4, %v5613_v39 }
 0x136   : > { %2831 = vrot.lane.b32.xlu1 %v5119_v29, %s5653_s30  ;;  %v5070_v61 = vcombine.low %v1454_v0, %v1457_v31  ;;  %v565_v62 = vor.u32 %v564_v33, %v561_v41  ;;  %v574_v38 = vrot.slane %v572_v2, 4  ;;  %v3015_v22 = vsel %vm3005_vm7, %v2982_v34, %v6908_v24  ;;  %v7069_v6 = vpop.permute.xlu0 %2227  ;;  %v7075_v33 = vld [vmem:[%s5704_s22 + $0x90] sm:$0xf] }
 0x137   : > { %v580_v28 = vrot.slane %v578_v57, 5  ;;  %v4814_v36 = vrot.slane %v712_v14, 9  ;;  %v5086_v0 = vcombine.low %v6917_v60, %v6923_v35  ;;  %v841_v55 = vrot.slane %v7036_v9, 5  ;;  %v7082_v14 = vld [vmem:[%s5704_s22 + $0x94] sm:$0xf] }
 0x138   : > { %v566_v29 = vrot.slane %v565_v62, 4  ;;  %v844_v41 = vrot.slane %v309_v19, 5  ;;  %v575_v50 = vor.u32 %v574_v38, %v570_v47  ;;  %v2856_v31 = vsel %vm2841_vm10, %v4984_v18, %v6925_v15 }
 0x139   : > { %v3048_v2 = vsel %vm3038_vm8, %v3015_v22, %v6944_v32  ;;  %v4976_v24 = vrot.slane %v4960_v12, 9  ;;  %2573 = vrot.lane.b32.xlu0 %v5070_v61, %s5648_s29  ;;  %v842_v35 = vsel %vm5721_vm4, %v4814_v36, %v841_v55  ;;  %v843_v19 = vrot.slane %v841_v55, 4  ;;  %v4961_v12 = vld [vmem:[%s5704_s22 + $0xb4] sm:$0xe] }
 0x13a   : > { %v571_v60 = vsel %vm5744_vm5, %v566_v29, %v570_v47  ;;  %v2081_v15 = vrot.slane %v2079_v13, 4  ;;  %v576_v34 = vrot.slane %v575_v50, 4  ;;  %v1198_v57 = vshrl.u32 %v7075_v33, 16  ;;  %v7097_v62 = vpop.permute.xlu0 %2307 }
 0x13b   : > { %v2080_v32 = vsel %vm5721_vm4, %v4976_v24, %v2079_v13  ;;  %v1201_v61 = vshll.u32 %v7075_v33, 16  ;;  %v845_v47 = vsel %vm5721_vm4, %v843_v19, %v844_v41  ;;  %v2900_v4 = vsel %vm2890_vm11, %v2856_v31, %v6949_v63  ;;  %v7109_v13 = vld [vmem:[%s5704_s22 + $0x98] sm:$0x1] }
 0x13c   : > { %v8270_v39 = vrot.slane %v5835_v20, 5  ;;  %v1211_v18 = vshrl.u32 %v7082_v14, 16  ;;  %v7112_v38 = vpop.permute.xlu1 %2739  ;;  %v581_v22 = vsel %vm5744_vm5, %v576_v34, %v580_v28  ;;  %v5022_v36 = vcombine.low %v842_v35, %v845_v47 }
 0x13d   : > { %v1200_v55 = vrot.slane %v1198_v57, 4  ;;  %v5006_v63 = vcombine.low %v571_v60, %v581_v22  ;;  %2669 = vrot.lane.b32.xlu0 %v5086_v0, %s5647_s26  ;;  %v1203_v20 = vrot.slane %v1201_v61, 5  ;;  %v1207_v41 = vshll.u32 %v7082_v14, 16  ;;  %v7131_v57 = vld [vmem:[%s5704_s22 + $0x84] sm:$0xf] }
 0x13e   : > { %v2083_v59 = vsel %vm5721_vm4, %v2081_v15, %v8270_v39  ;;  %v3122_v50 = vsel %vm3120_vm13, %v6240_v56, %v6974_v27  ;;  %v1213_v31 = vrot.slane %v1211_v18, 4  ;;  %v1217_v24 = vshll.u32 %v7109_v13, 16  ;;  %v7122_v35 = vpop.permute.xlu0 %2813  ;;  %v7155_v22 = vld [vmem:[%s5704_s22 + $0x88] sm:$0xf] }
 0x13f   : > { %v5120_v29 = vcombine.low %v2080_v32, %v2083_v59  ;;  %v4977_v28 = vrot.slane %v4961_v12, 9  ;;  %2237 = vrot.lane.b32.xlu1 %v5006_v63, %s5652_s25  ;;  %v1204_v60 = vor.u32 %v1203_v20, %v1200_v55  ;;  %v1209_v19 = vrot.slane %v1207_v41, 5  ;;  %v4879_v32 = vld [vmem:[%s5704_s22 + $0x90] sm:$0xe]  ;;  %5309 = vmatprep.mubr.msk.bf16.mxu1 %vm3324_vm14, %v3122_v50  ;;  %v310_v41 = vld [vmem:[%s5704_s22 + $0x8c] sm:$0x1] }
 0x140   : > { %v8271_v0 = vrot.slane %v5970_v49, 5  ;;  %v3085_v34 = vsel %vm3071_vm9, %v3048_v2, %v6972_v40  ;;  %v5039_v56 = vcombine.low %v7075_v33, %v7082_v14  ;;  %v1219_v27 = vrot.slane %v1217_v24, 5  ;;  %v5452_v2 = vld [vmem:[%s8249_s1 + $0xa0] ss:$0 sps:$4 sm:$0x33]   ;;  %v7144_v39 = vpop.permute.xlu1 %2405 }
 0x141   : > { %3425 = vmatprep.mubr.bf16.mxu0 %v3085_v34  ;;  %2833 = vrot.lane.b32.xlu0 %v5120_v29, %s5653_s30  ;;  %v1205_v59 = vrot.slane %v1204_v60, 4  ;;  %v1214_v33 = vor.u32 %v1213_v31, %v1209_v19  ;;  %v8273_v18 = vrot.slane %v5980_v5, 5  ;;  %v2937_v12 = vsel %vm2923_vm12, %v2900_v4, %v6882_v1 }
 0x142   : > { %v2088_v15 = vrot.slane %v8271_v0, 4  ;;  %v8272_v61 = vmov %v8271_v0  ;;  %3426 = vmatmul.mubr.bf16.gmra.mrb[16].mxu0 %v2937_v12  ;;  %v4895_v63 = vrot.slane %v4879_v32, 9  ;;  %v1460_v29 = vrot.slane %v7082_v14, 5  ;;  %5357 = vmatprep.subr.msk.bf16.mxu1 %vm3357_vm15, %v5452_v2  ;;  %v713_v0 = vld [vmem:[%s5704_s22 + $0x84] sm:$0xe] }
 0x143   : > { %v7139_v47 = vsel %vm5721_vm4, %v4977_v28, %v8272_v61  ;;  %v1463_v20 = vrot.slane %v7109_v13, 5  ;;  %2317 = vrot.lane.b32.xlu1 %v5022_v36, %s5650_s9  ;;  %v1210_v5 = vsel %vm5744_vm5, %v1205_v59, %v1209_v19  ;;  %v1215_v50 = vrot.slane %v1214_v33, 4 }
 0x144   : > { %v2090_v49 = vsel %vm5721_vm4, %v2088_v15, %v8273_v18  ;;  %v583_v1 = vshrl.u32 %v7131_v57, 16  ;;  %v1461_v4 = vsel %vm5721_vm4, %v4895_v63, %v1460_v29  ;;  %v1462_v31 = vrot.slane %v1460_v29, 4  ;;  %v7170_v24 = vpop.permute.xlu0 %2485 }
 0x145   : > { %v5121_v55 = vcombine.low %v7139_v47, %v2090_v49  ;;  %v586_v14 = vshll.u32 %v7131_v57, 16  ;;  %v592_v13 = vshll.u32 %v7155_v22, 16  ;;  %v1220_v36 = vsel %vm5744_vm5, %v1215_v50, %v1219_v27  ;;  %v2816_v47 = vpop.permute.xlu1 %2815  ;;  %v4962_v49 = vld [vmem:[%s5704_s22 + $0xc0] sm:$0xe] }
 0x146   : > { %v585_v28 = vrot.slane %v583_v1, 4  ;;  %v596_v60 = vshrl.u32 %v7155_v22, 16  ;;  %v602_v19 = vshll.u32 %v310_v41, 16  ;;  %v5055_v15 = vcombine.low %v1210_v5, %v1220_v36  ;;  %v4963_v1 = vld [vmem:[%s5704_s22 + $0xcc] sm:$0xe] }
 0x147   : > { %v1464_v34 = vsel %vm5721_vm4, %v1462_v31, %v1463_v20  ;;  %v588_v32 = vrot.slane %v586_v14, 5  ;;  %v594_v61 = vrot.slane %v592_v13, 5  ;;  %2415 = vrot.lane.b32.xlu1 %v5039_v56, %s5646_s23  ;;  %v2984_v59 = vsel %vm2972_vm6, %v7006_v26, %v7008_v3  ;;  %v5614_v14 = vld [vmem:[%s5704_s22 + $0x3c] sm:$0xf]  ;;  %v5615_v13 = vld [vmem:[%s5704_s22 + $0x40] sm:$0xf] }
 0x148   : > { %v5071_v27 = vcombine.low %v1461_v4, %v1464_v34  ;;  %v598_v33 = vrot.slane %v596_v60, 4  ;;  %v3359_v18 = vsel %vm3357_vm15, %v5452_v2, 0  ;;  %2495 = vrot.lane.b32.xlu0 %v5055_v15, %s5649_s8  ;;  %v604_v63 = vrot.slane %v602_v19, 5  ;;  %v2566_v20 = vpop.permute.xlu0 %2565  ;;  %s5164_s23 = sshll.u32 %s8342_s15, 8 }
 0x149   : > { %v589_v12 = vor.u32 %v588_v32, %v585_v28  ;;  %5308 = vmatpush3.bf16.msra.mxu1 %v3359_v18  ;;  %v3124_v56 = vsel %vm3120_vm13, %v6411_v23, %v7038_v45  ;;  %v4815_v29 = vrot.slane %v713_v0, 9  ;;  %v3017_v5 = vsel %vm3005_vm7, %v2984_v59, %v7027_v7  ;;  %s7259_s8 = scalar_lea.vmem %s8251_s3, %s5164_s23  ;;  %s8102_s27 = scalar_lea.vmem %s8252_s4, %s5164_s23 }
 0x14a   : > { %v599_v3 = vor.u32 %v598_v33, %v594_v61  ;;  %v848_v2 = vrot.slane %v7155_v22, 5  ;;  %v851_v50 = vrot.slane %v310_v41, 5  ;;  %v5087_v31 = vcombine.low %v6988_v21, %v6991_v25 }
 0x14b   : > { %v590_v4 = vrot.slane %v589_v12, 4  ;;  %v4985_v36 = vcombine.low %v5614_v14, %v5615_v13  ;;  %v4978_v28 = vrot.slane %v4962_v49, 9  ;;  %2835 = vrot.lane.b32.xlu1 %v5121_v55, %s5653_s30  ;;  %v3050_v7 = vsel %vm3038_vm8, %v3017_v5, %v7065_v53 }
 0x14c   : > { %v600_v23 = vrot.slane %v599_v3, 4  ;;  %v850_v45 = vrot.slane %v848_v2, 4  ;;  %5310 = vmatmul.mubr.msk.bf16.vlgmr.msra.gmra.mrb[16].mxu1 %vm3324_vm14, %v3124_v56  ;;  %v8274_v41 = vrot.slane %v6077_v37, 5  ;;  %2575 = vrot.lane.b32.xlu0 %v5071_v27, %s5648_s29  ;;  %v849_v25 = vsel %vm5721_vm4, %v4815_v29, %v848_v2  ;;  %v2662_v27 = vpop.permute.xlu0 %2661  ;;  %v5617_v29 = vld [vmem:[%s5704_s22 + $0x4c] sm:$0xf] }
 0x14d   : > { %v595_v21 = vsel %vm5744_vm5, %v590_v4, %v594_v61  ;;  %v4979_v0 = vrot.slane %v4963_v1, 9  ;;  %v2230_v15 = vpop.permute.xlu1 %2229  ;;  %v8276_v32 = vrot.slane %v6086_v54, 5  ;;  %v8277_v59 = vrot.slane %v6196_v46, 5 }
 0x14e   : > { %v2095_v60 = vrot.slane %v8274_v41, 4  ;;  %v8275_v55 = vmov %v8274_v41  ;;  %v605_v53 = vsel %vm5744_vm5, %v600_v23, %v604_v63  ;;  %v852_v34 = vsel %vm5721_vm4, %v850_v45, %v851_v50  ;;  %v3783_v41 = vld [vmem:[%s7259_s8 + $0x20] sm:$0xff] }
 0x14f   : > { %v2094_v19 = vsel %vm5721_vm4, %v4978_v28, %v8275_v55  ;;  %v2102_v37 = vrot.slane %v8277_v59, 4  ;;  %v5007_v33 = vcombine.low %v595_v21, %v605_v53  ;;  %v2859_v18 = vsel %vm2841_vm10, %v4985_v36, %v7069_v6  ;;  %v3780_v28 = vld [vmem:[%s7259_s8 + $0x8] sm:$0xff]  ;;  %v3786_v53 = vld [vmem:[%s7259_s8 + $0x38] sm:$0xff] }
 0x150   : > { %v2097_v61 = vsel %vm5721_vm4, %v2095_v60, %v8276_v32  ;;  %v8278_v43 = vmov %v8277_v59  ;;  %v2902_v63 = vsel %vm2890_vm11, %v2859_v18, %v7097_v62  ;;  %v3088_v56 = vsel %vm3071_vm9, %v3050_v7, %v7112_v38  ;;  %2671 = vrot.lane.b32.xlu0 %v5087_v31, %s5647_s26  ;;  %v3779_v31 = vld [vmem:[%s7259_s8] sm:$0xff]  ;;  %v3784_v21 = vld [vmem:[%s7259_s8 + $0x28] sm:$0xff] }
 0x151   : > { %v5122_v49 = vcombine.low %v2094_v19, %v2097_v61  ;;  %v2101_v12 = vsel %vm5721_vm4, %v4979_v0, %v8278_v43  ;;  %v2104_v54 = vsel %vm5721_vm4, %v2102_v37, %v2103_v8  ;;  %v3126_v46 = vsel %vm3120_vm13, %v6611_v10, %v7122_v35  ;;  %2239 = vrot.lane.b32.xlu1 %v5007_v33, %s5652_s25  ;;  %v2310_v6 = vpop.permute.xlu1 %2309  ;;  %v5616_v35 = vld [vmem:[%s5704_s22 + $0x48] sm:$0xf]  ;;  %v5618_v19 = vld [vmem:[%s5704_s22 + $0x54] sm:$0xf]  ;;  %s5654_s25 = smov 64  }
 0x152   : > { %v5023_v17 = vcombine.low %v849_v25, %v852_v34  ;;  %v5123_v16 = vcombine.low %v2101_v12, %v2104_v54  ;;  %v2940_v8 = vsel %vm2923_vm12, %v2902_v63, %v7006_v26  ;;  %3433 = vmatprep.mubr.bf16.mxu0 %v3088_v56  ;;  %5313 = vmatprep.mubr.msk.bf16.mxu1 %vm3324_vm14, %v3126_v46  ;;  %v3785_v25 = vld [vmem:[%s7259_s8 + $0x30] sm:$0xff]  ;;  %v3787_v34 = vld [vmem:[%s7259_s8 + $0x40] sm:$0xff] }
 0x153   : > { %v2986_v62 = vsel %vm2972_vm6, %v7144_v39, %v7170_v24  ;;  %v3128_v10 = vsel %vm3120_vm13, %v6788_v30, %v2816_v47  ;;  %v4986_v3 = vcombine.low %v5616_v35, %v5617_v29  ;;  %3434 = vmatmul.mubr.bf16.gmra.mrb[20].mxu0 %v2940_v8  ;;  %v4989_v26 = vcombine.low %v6880_v52, %v6887_v51  ;;  %v3789_v54 = vld [vmem:[%s7259_s8 + $0x50] sm:$0xff] }
 0x154   : > { %v3019_v5 = vsel %vm3005_vm7, %v2986_v62, %v2566_v20  ;;  %5314 = vmatmul.mubr.msk.bf16.gmra.mrb[20].mxu1 %vm3324_vm14, %v3128_v10  ;;  %v2742_v24 = vpop.permute.xlu0 %2741  ;;  %v4990_v47 = vcombine.low %v7023_v42, %v7036_v9  ;;  %v4991_v20 = vcombine.low %v7131_v57, %v7155_v22  ;;  %2837 = vrot.lane.b32.xlu0 %v5122_v49, %s5653_s30  ;;  %v3788_v49 = vld [vmem:[%s7259_s8 + $0x48] sm:$0xff]  ;;  %v3793_v35 = vld [vmem:[%s7259_s8 + $0x70] sm:$0xff] }
 0x155   : > { %v3052_v30 = vsel %vm3038_vm8, %v3019_v5, %v2662_v27  ;;  %2319 = vrot.lane.b32.xlu1 %v5023_v17, %s5650_s9  ;;  %v2818_v2 = vpop.permute.xlu1 %2817  ;;  %v2862_v1 = vsel %vm2841_vm10, %v4986_v3, %v2230_v15  ;;  %v3790_v17 = vld [vmem:[%s7259_s8 + $0x58] sm:$0xff]  ;;  %v3792_v62 = vld [vmem:[%s7259_s8 + $0x68] sm:$0xff]  ;;  %v3795_v5 = vld [vmem:[%s7259_s8 + $0x80] sm:$0xff] }
 0x156   : > { %v3091_v50 = vsel %vm3071_vm9, %v3052_v30, %v2742_v24  ;;  %v3130_v4 = vsel %vm3120_vm13, %v6972_v40, %v2818_v2  ;;  %v2904_v14 = vsel %vm2890_vm11, %v2862_v1, %v2310_v6  ;;  %v3781_v40 = vld [vmem:[%s7259_s8 + $0x10] sm:$0xff]  ;;  %v3794_v3 = vld [vmem:[%s7259_s8 + $0x78] sm:$0xff]  ;;  %v5621_v2 = vld [vmem:[%s5704_s22 + $0x64] sm:$0xf] }
 0x157   : > { %3441 = vmatprep.mubr.bf16.mxu0 %v3091_v50  ;;  %5317 = vmatprep.mubr.msk.bf16.mxu1 %vm3324_vm14, %v3130_v4  ;;  %v2943_v36 = vsel %vm2923_vm12, %v2904_v14, %v7144_v39  ;;  %v3782_v39 = vld [vmem:[%s7259_s8 + $0x18] sm:$0xff] }
 0x158   : > { %v2408_v13 = vpop.permute.xlu0 %2407  ;;  %3843 = vrot.lane.b32.xlu0 %v3779_v31, %s5653_s30 }
 0x159   : > { %2839 = vrot.lane.b32.xlu1 %v5123_v16, %s5653_s30  ;;  %v3791_v16 = vld [vmem:[%s7259_s8 + $0x60] sm:$0xff] }
 0x15b   : > { %3442 = vmatmul.mubr.bf16.gmra.mrb[24].mxu0 %v2943_v36  ;;  %v2488_v23 = vpop.permute.xlu1 %2487 }
 0x15c   : > { %v2820_v45 = vpop.permute.xlu0 %2819  ;;  %3847 = vrot.lane.b32.xlu0 %v3781_v40, %s5653_s30  ;;  %v2988_v32 = vsel %vm2972_vm6, %v2408_v13, %v2488_v23 }
 0x15d   : > { %v3132_v7 = vsel %vm3120_vm13, %v7112_v38, %v2820_v45  ;;  %3845 = vrot.lane.b32.xlu1 %v3780_v28, %s5653_s30  ;;  %v5619_v38 = vld [vmem:[%s5704_s22 + $0x58] sm:$0xf] }
 0x15e   : > { %5318 = vmatmul.mubr.msk.bf16.gmra.mrb[24].mxu1 %vm3324_vm14, %v3132_v7  ;;  %v4987_v0 = vcombine.low %v5618_v19, %v5619_v38  ;;  %v3799_v19 = vld [vmem:[%s7259_s8 + $0xa0] sm:$0xff]  ;;  %v3800_v38 = vld [vmem:[%s7259_s8 + $0xa8] sm:$0xff] }
 0x15f   : > { %v2568_v60 = vpop.permute.xlu1 %2567 }
 0x160   : > { %3851 = vrot.lane.b32.xlu0 %v3783_v41, %s5653_s30  ;;  %v3021_v61 = vsel %vm3005_vm7, %v2988_v32, %v2568_v60 }
 0x161   : > { %3849 = vrot.lane.b32.xlu1 %v3782_v39, %s5653_s30  ;;  %v3796_v39 = vld [vmem:[%s7259_s8 + $0x88] sm:$0xff] }
 0x163   : > { %v2664_v55 = vpop.permute.xlu1 %2663 }
 0x164   : > { %v2232_v15 = vpop.permute.xlu0 %2231  ;;  %3855 = vrot.lane.b32.xlu0 %v3785_v25, %s5653_s30  ;;  %v3054_v27 = vsel %vm3038_vm8, %v3021_v61, %v2664_v55  ;;  %v3798_v25 = vld [vmem:[%s7259_s8 + $0x98] sm:$0xff] }
 0x165   : > { %3853 = vrot.lane.b32.xlu1 %v3784_v21, %s5653_s30  ;;  %v2865_v59 = vsel %vm2841_vm10, %v4987_v0, %v2232_v15  ;;  %v3797_v21 = vld [vmem:[%s7259_s8 + $0x90] sm:$0xff] }
 0x168   : > { %v2312_v37 = vpop.permute.xlu0 %2311  ;;  %3859 = vrot.lane.b32.xlu0 %v3787_v34, %s5653_s30 }
 0x169   : > { %3857 = vrot.lane.b32.xlu1 %v3786_v53, %s5653_s30  ;;  %v2906_v33 = vsel %vm2890_vm11, %v2865_v59, %v2312_v37 }
 0x16a   : > { %v2744_v18 = vpop.permute.xlu1 %2743  ;;  %v2946_v12 = vsel %vm2923_vm12, %v2906_v33, %v2408_v13 }
 0x16b   : > { %v3094_v43 = vsel %vm3071_vm9, %v3054_v27, %v2744_v18 }
 0x16c   : > { %3449 = vmatprep.mubr.bf16.mxu0 %v3094_v43  ;;  %v2822_v63 = vpop.permute.xlu0 %2821  ;;  %3863 = vrot.lane.b32.xlu0 %v3789_v54, %s5653_s30 }
 0x16d   : > { %3450 = vmatmul.mubr.bf16.gmra.mrb[28].mxu0 %v2946_v12  ;;  %3861 = vrot.lane.b32.xlu1 %v3788_v49, %s5653_s30  ;;  %v3134_v56 = vsel %vm3120_vm13, %v2742_v24, %v2822_v63  ;;  %v5620_v24 = vld [vmem:[%s5704_s22 + $0x60] sm:$0xf] }
 0x16e   : > { %v2410_v46 = vpop.permute.xlu1 %2409  ;;  %5321 = vmatprep.mubr.msk.bf16.mxu1 %vm3324_vm14, %v3134_v56  ;;  %v4988_v50 = vcombine.low %v5620_v24, %v5621_v2  ;;  %v3801_v56 = vld [vmem:[%s7259_s8 + $0xb0] sm:$0xff] }
 0x170   : > { %3867 = vrot.lane.b32.xlu0 %v3791_v16, %s5653_s30 }
 0x171   : > { %v2490_v8 = vpop.permute.xlu0 %2489  ;;  %3865 = vrot.lane.b32.xlu1 %v3790_v17, %s5653_s30 }
 0x172   : > { %v2824_v6 = vpop.permute.xlu1 %2823  ;;  %v2990_v4 = vsel %vm2972_vm6, %v2410_v46, %v2490_v8 }
 0x173   : > { %v3136_v10 = vsel %vm3120_vm13, %v2744_v18, %v2824_v6  ;;  %v3802_v6 = vld [vmem:[%s7259_s8 + $0xb8] sm:$0xff] }
 0x174   : > { %5322 = vmatmul.mubr.msk.bf16.gmra.mrb[28].mxu1 %vm3324_vm14, %v3136_v10  ;;  %3871 = vrot.lane.b32.xlu0 %v3793_v35, %s5653_s30 }
 0x175   : > { %v2570_v29 = vpop.permute.xlu0 %2569  ;;  %3869 = vrot.lane.b32.xlu1 %v3792_v62, %s5653_s30 }
 0x176   : > { %v3023_v31 = vsel %vm3005_vm7, %v2990_v4, %v2570_v29  ;;  %v3806_v4 = vld [vmem:[%s7259_s8 + $0xd8] sm:$0xff] }
 0x178   : > { %3875 = vrot.lane.b32.xlu0 %v3795_v5, %s5653_s30  ;;  %v3804_v5 = vld [vmem:[%s7259_s8 + $0xc8] sm:$0xff] }
 0x179   : > { %v2666_v30 = vpop.permute.xlu0 %2665  ;;  %3873 = vrot.lane.b32.xlu1 %v3794_v3, %s5653_s30  ;;  %v3803_v3 = vld [vmem:[%s7259_s8 + $0xc0] sm:$0xff] }
 0x17a   : > { %v2234_v1 = vpop.permute.xlu1 %2233  ;;  %v3056_v13 = vsel %vm3038_vm8, %v3023_v31, %v2666_v30  ;;  %v3807_v31 = vld [vmem:[%s7259_s8 + $0xe0] sm:$0xff] }
 0x17b   : > { %v2868_v14 = vsel %vm2841_vm10, %v4988_v50, %v2234_v1  ;;  %v3805_v50 = vld [vmem:[%s7259_s8 + $0xd0] sm:$0xff] }
 0x17c   : > { %3879 = vrot.lane.b32.xlu0 %v3797_v21, %s5653_s30 }
 0x17d   : > { %3877 = vrot.lane.b32.xlu1 %v3796_v39, %s5653_s30 }
 0x17e   : > { %v2314_v36 = vpop.permute.xlu1 %2313  ;;  %v2746_v28 = vpop.permute.xlu0 %2745 }
 0x17f   : > { %v2908_v40 = vsel %vm2890_vm11, %v2868_v14, %v2314_v36  ;;  %v3097_v23 = vsel %vm3071_vm9, %v3056_v13, %v2746_v28  ;;  %v3808_v14 = vld [vmem:[%s7259_s8 + $0xe8] sm:$0xff] }
 0x180   : > { %3457 = vmatprep.mubr.bf16.mxu0 %v3097_v23  ;;  %v2949_v45 = vsel %vm2923_vm12, %v2908_v40, %v2410_v46  ;;  %3883 = vrot.lane.b32.xlu0 %v3799_v19, %s5653_s30  ;;  %v3809_v40 = vld [vmem:[%s7259_s8 + $0xf0] sm:$0xff] }
 0x181   : > { %3458 = vmatmul.mubr.bf16.gmra.mrb[32].mxu0 %v2949_v45  ;;  %3881 = vrot.lane.b32.xlu1 %v3798_v25, %s5653_s30 }
 0x182   : > { %v2826_v7 = vpop.permute.xlu1 %2825  ;;  %v2412_v60 = vpop.permute.xlu0 %2411 }
 0x183   : > { %v3138_v41 = vsel %vm3120_vm13, %v2746_v28, %v2826_v7  ;;  %v3810_v7 = vld [vmem:[%s7259_s8 + $0xf8] sm:$0xff] }
 0x184   : > { %5325 = vmatprep.mubr.msk.bf16.mxu1 %vm3324_vm14, %v3138_v41  ;;  %3887 = vrot.lane.b32.xlu0 %v3801_v56, %s5653_s30 }
 0x185   : > { %3885 = vrot.lane.b32.xlu1 %v3800_v38, %s5653_s30 }
 0x188   : > { %3891 = vrot.lane.b32.xlu0 %v3803_v3, %s5653_s30 }
 0x189   : > { %v2492_v55 = vpop.permute.xlu1 %2491  ;;  %3889 = vrot.lane.b32.xlu1 %v3802_v6, %s5653_s30 }
 0x18a   : > { %v2992_v18 = vsel %vm2972_vm6, %v2412_v60, %v2492_v55 }
 0x18c   : > { %v2748_v0 = vpop.permute.xlu0 %2747  ;;  %v5182_v34 = vpop.f32.mrb[0].mxu0  ;;  %3895 = vrot.lane.b32.xlu0 %v3805_v50, %s5653_s30 }
 0x18d   : > { %v2828_v15 = vpop.permute.xlu1 %2827  ;;  %v5183_v32 = vpop.f32.mrb[1].mxu0  ;;  %3893 = vrot.lane.b32.xlu1 %v3804_v5, %s5653_s30 }
 0x18e   : > { %v3140_v53 = vsel %vm3120_vm13, %v2748_v0, %v2828_v15  ;;  %v7351_v61 = vadd.f32 %v5183_v32, %v5182_v34  ;;  %v5185_v59 = vpop.f32.mrb[2].mxu0 }
 0x18f   : > { %5326 = vmatmul.mubr.msk.bf16.gmra.mrb[32].mxu1 %vm3324_vm14, %v3140_v53  ;;  %v5186_v27 = vpop.f32.mrb[3].mxu0 }
 0x190   : > { %v2572_v37 = vpop.permute.xlu0 %2571  ;;  %v7353_v33 = vadd.f32 %v5186_v27, %v5185_v59  ;;  %3899 = vrot.lane.b32.xlu0 %v3807_v31, %s5653_s30 }
 0x191   : > { %v3025_v49 = vsel %vm3005_vm7, %v2992_v18, %v2572_v37  ;;  %3897 = vrot.lane.b32.xlu1 %v3806_v4, %s5653_s30 }
 0x194   : > { %v2668_v43 = vpop.permute.xlu0 %2667  ;;  %3903 = vrot.lane.b32.xlu0 %v3809_v40, %s5653_s30 }
 0x195   : > { %v3058_v54 = vsel %vm3038_vm8, %v3025_v49, %v2668_v43  ;;  %3901 = vrot.lane.b32.xlu1 %v3808_v14, %s5653_s30 }
 0x196   : > { %v2236_v12 = vpop.permute.xlu1 %2235  ;;  %v5254_v63 = vpop.f32.mrb[0].mxu1  ;;  %v3100_v46 = vsel %vm3071_vm9, %v3058_v54, %v2748_v0 }
 0x197   : > { %v5255_v17 = vpop.f32.mrb[1].mxu1  ;;  %3465 = vmatprep.mubr.bf16.mxu0 %v3100_v46  ;;  %v2871_v10 = vsel %vm2841_vm10, %v4989_v26, %v2236_v12 }
 0x198   : > { %v7361_v16 = vadd.f32 %v5255_v17, %v5254_v63  ;;  %v5257_v8 = vpop.f32.mrb[2].mxu1 }
 0x199   : > { %v5258_v62 = vpop.f32.mrb[3].mxu1  ;;  %3905 = vrot.lane.b32.xlu1 %v3810_v7, %s5653_s30 }
 0x19a   : > { %v2316_v35 = vpop.permute.xlu1 %2315  ;;  %v7369_v29 = vadd.f32 %v5258_v62, %v5257_v8 }
 0x19b   : > { %v2910_v30 = vsel %vm2890_vm11, %v2871_v10, %v2316_v35 }
 0x19c   : > { %v2952_v24 = vsel %vm2923_vm12, %v2910_v30, %v2412_v60  ;;  %v2750_v2 = vpop.permute.xlu0 %2749 }
 0x19d   : > { %3466 = vmatmul.mubr.bf16.gmra.mrb[36].mxu0 %v2952_v24 }
 0x19e   : > { %v2830_v52 = vpop.permute.xlu1 %2829 }
 0x19f   : > { %v3142_v51 = vsel %vm3120_vm13, %v2750_v2, %v2830_v52 }
 0x1a0   : > { %5329 = vmatprep.mubr.msk.bf16.mxu1 %vm3324_vm14, %v3142_v51  ;;  %v2414_v26 = vpop.permute.xlu0 %2413 }
 0x1a4   : > { %v2494_v1 = vpop.permute.xlu1 %2493 }
 0x1a5   : > { %v2994_v55 = vsel %vm2972_vm6, %v2414_v26, %v2494_v1 }
 0x1a7   : > { %v2752_v13 = vpop.permute.xlu0 %2751 }
 0x1a8   : > { %v2832_v36 = vpop.permute.xlu1 %2831 }
 0x1a9   : > { %v3144_v28 = vsel %vm3120_vm13, %v2752_v13, %v2832_v36 }
 0x1aa   : > { %5330 = vmatmul.mubr.msk.bf16.gmra.mrb[36].mxu1 %vm3324_vm14, %v3144_v28  ;;  %v5188_v23 = vpop.f32.mrb[4].mxu0 }
 0x1ab   : > { %v5189_v45 = vpop.f32.mrb[5].mxu0  ;;  %v2574_v39 = vpop.permute.xlu0 %2573 }
 0x1ac   : > { %v7391_v41 = vadd.f32 %v5189_v45, %v5188_v23  ;;  %v5191_v60 = vpop.f32.mrb[6].mxu0  ;;  %v3027_v19 = vsel %vm3005_vm7, %v2994_v55, %v2574_v39 }
 0x1ad   : > { %v5192_v21 = vpop.f32.mrb[7].mxu0 }
 0x1ae   : > { %v7394_v25 = vadd.f32 %v5192_v21, %v5191_v60 }
 0x1af   : > { %v2670_v38 = vpop.permute.xlu0 %2669 }
 0x1b0   : > { %v3060_v0 = vsel %vm3038_vm8, %v3027_v19, %v2670_v38 }
 0x1b1   : > { %v2238_v15 = vpop.permute.xlu1 %2237  ;;  %v3103_v53 = vsel %vm3071_vm9, %v3060_v0, %v2750_v2 }
 0x1b2   : > { %3473 = vmatprep.mubr.bf16.mxu0 %v3103_v53  ;;  %v2874_v59 = vsel %vm2841_vm10, %v4990_v47, %v2238_v15 }
 0x1b3   : > { %v2834_v34 = vpop.permute.xlu0 %2833 }
 0x1b4   : > { %v3146_v32 = vsel %vm3120_vm13, %v6316_v58, %v2834_v34 }
 0x1b5   : > { %v2318_v37 = vpop.permute.xlu1 %2317  ;;  %5333 = vmatprep.mubr.msk.bf16.mxu1 %vm3324_vm14, %v3146_v32 }
 0x1b6   : > { %v2912_v27 = vsel %vm2890_vm11, %v2874_v59, %v2318_v37  ;;  %v7444_v37 = vld [vmem:[%s8250_s2] ss:$0 sm:$0xff] }
 0x1b7   : > { %v2955_v18 = vsel %vm2923_vm12, %v2912_v27, %v2414_v26  ;;  %v5260_v49 = vpop.f32.mrb[4].mxu1  ;;  %v3404_v27 = vadd.f32 %v7391_v41, %v7444_v37 }
 0x1b8   : > { %3474 = vmatmul.mubr.bf16.gmra.mrb[40].mxu0 %v2955_v18  ;;  %v5261_v12 = vpop.f32.mrb[5].mxu1 }
 0x1b9   : > { %v2416_v43 = vpop.permute.xlu1 %2415  ;;  %v7410_v63 = vadd.f32 %v5261_v12, %v5260_v49  ;;  %v5263_v58 = vpop.f32.mrb[6].mxu1  ;;  %v3396_v49 = vadd.f32 %v7351_v61, %v7444_v37 }
 0x1ba   : > { %v2496_v54 = vpop.permute.xlu0 %2495  ;;  %v5264_v56 = vpop.f32.mrb[7].mxu1 }
 0x1bb   : > { %v7412_v46 = vadd.f32 %v5264_v56, %v5263_v58  ;;  %v2996_v17 = vsel %vm2972_vm6, %v2416_v43, %v2496_v54  ;;  %v3407_v54 = vadd.f32 %v7394_v25, %v7444_v37 }
 0x1bd   : > { %v2836_v42 = vpop.permute.xlu1 %2835 }
 0x1be   : > { %v3148_v9 = vsel %vm3120_vm13, %v6518_v11, %v2836_v42  ;;  %v2576_v47 = vpop.permute.xlu0 %2575  ;;  %v3399_v42 = vadd.f32 %v7353_v33, %v7444_v37 }
 0x1bf   : > { %5334 = vmatmul.mubr.msk.bf16.gmra.mrb[40].mxu1 %vm3324_vm14, %v3148_v9  ;;  %v3029_v8 = vsel %vm3005_vm7, %v2996_v17, %v2576_v47 }
 0x1c2   : > { %v2672_v62 = vpop.permute.xlu0 %2671 }
 0x1c3   : > { %v2240_v6 = vpop.permute.xlu1 %2239  ;;  %v3062_v10 = vsel %vm3038_vm8, %v3029_v8, %v2672_v62 }
 0x1c4   : > { %v3106_v35 = vsel %vm3071_vm9, %v3062_v10, %v2752_v13  ;;  %v2877_v3 = vsel %vm2841_vm10, %v4991_v20, %v2240_v6 }
 0x1c5   : > { %3481 = vmatprep.mubr.bf16.mxu0 %v3106_v35 }
 0x1c6   : > { %v2838_v5 = vpop.permute.xlu0 %2837 }
 0x1c7   : > { %v2320_v11 = vpop.permute.xlu1 %2319  ;;  %v3150_v24 = vsel %vm3120_vm13, %v6700_v44, %v2838_v5 }
 0x1c8   : > { %v2914_v30 = vsel %vm2890_vm11, %v2877_v3, %v2320_v11  ;;  %5337 = vmatprep.mubr.msk.bf16.mxu1 %vm3324_vm14, %v3150_v24 }
 0x1c9   : > { %v2958_v2 = vsel %vm2923_vm12, %v2914_v30, %v2416_v43 }
 0x1ca   : > { %3482 = vmatmul.mubr.bf16.gmra.mrb[44].mxu0 %v2958_v2 }
 0x1cb   : > { %v2840_v52 = vpop.permute.xlu1 %2839 }
 0x1cc   : > { %v3152_v51 = vsel %vm3120_vm13, %v6869_v48, %v2840_v52  ;;  %v5194_v57 = vpop.f32.mrb[8].mxu0 }
 0x1cd   : > { %5338 = vmatmul.mubr.msk.bf16.gmra.mrb[44].mxu1 %vm3324_vm14, %v3152_v51  ;;  %v5195_v22 = vpop.f32.mrb[9].mxu0 }
 0x1ce   : > { %v5196_v20 = vadd.f32 %v5195_v22, %v5194_v57  ;;  %v5197_v26 = vpop.f32.mrb[10].mxu0 }
 0x1cf   : > { %v5198_v50 = vpop.f32.mrb[11].mxu0 }
 0x1d0   : > { %v5199_v1 = vadd.f32 %v5198_v50, %v5197_v26  ;;  %v3412_v62 = vadd.f32 %v5196_v20, %v7444_v37 }
 0x1d2   : > { %v3415_v24 = vadd.f32 %v5199_v1, %v7444_v37 }
 0x1dd   : > { %v5266_v4 = vpop.f32.mrb[8].mxu1 }
 0x1de   : > { %v5267_v31 = vpop.f32.mrb[9].mxu1 }
 0x1df   : > { %v7433_v44 = vadd.f32 %v5267_v31, %v5266_v4  ;;  %v5269_v14 = vpop.f32.mrb[10].mxu1 }
 0x1e0   : > { %v5270_v13 = vpop.f32.mrb[11].mxu1 }
 0x1e1   : > { %v7435_v36 = vadd.f32 %v5270_v13, %v5269_v14 }
 0x1f1   : > { %v5200_v28 = vpop.f32.mrb[12].mxu0 }
 0x1f2   : > { %v5201_v40 = vpop.f32.mrb[13].mxu0 }
 0x1f3   : > { %v5202_v23 = vadd.f32 %v5201_v40, %v5200_v28  ;;  %v5203_v48 = vpop.f32.mrb[14].mxu0 }
 0x1f4   : > { %v5204_v45 = vpop.f32.mrb[15].mxu0 }
 0x1f5   : > { %v5205_v7 = vadd.f32 %v5204_v45, %v5203_v48  ;;  %v3420_v8 = vadd.f32 %v5202_v23, %v7444_v37 }
 0x1f7   : > { %v3423_v33 = vadd.f32 %v5205_v7, %v7444_v37 }
 0x203   : > { %v5272_v39 = vpop.f32.mrb[12].mxu1 }
 0x204   : > { %v5273_v60 = vpop.f32.mrb[13].mxu1 }
 0x205   : > { %v7437_v21 = vadd.f32 %v5273_v60, %v5272_v39  ;;  %v5275_v55 = vpop.f32.mrb[14].mxu1 }
 0x206   : > { %v5276_v19 = vpop.f32.mrb[15].mxu1 }
 0x207   : > { %v7439_v38 = vadd.f32 %v5276_v19, %v5275_v55 }
 0x215   : > { %v5206_v0 = vpop.f32.mrb[16].mxu0 }
 0x216   : > { %v5207_v15 = vpop.f32.mrb[17].mxu0 }
 0x217   : > { %v5208_v53 = vadd.f32 %v5207_v15, %v5206_v0  ;;  %v5209_v34 = vpop.f32.mrb[18].mxu0 }
 0x218   : > { %v5210_v32 = vpop.f32.mrb[19].mxu0 }
 0x219   : > { %v5211_v59 = vadd.f32 %v5210_v32, %v5209_v34  ;;  %v3428_v40 = vadd.f32 %v5208_v53, %v7444_v37 }
 0x21b   : > { %v3431_v19 = vadd.f32 %v5211_v59, %v7444_v37 }
 0x21f   : > { %v5311_v18 = vpop.f32.mrb[16].mxu1 }
 0x220   : > { %v3565_v43 = vadd.f32 %v5311_v18, %v3404_v27  ;;  %v3556_v12 = vpop.f32.mrb[17].mxu1 }
 0x221   : > { %v3557_v58 = vadd.f32 %v3556_v12, %v3396_v49  ;;  %v5312_v56 = vpop.f32.mrb[18].mxu1 }
 0x222   : > { %5461 = vtanh.f32 %v3565_v43  ;;  %v3568_v9 = vadd.f32 %v5312_v56, %v3407_v54  ;;  %v3559_v47 = vpop.f32.mrb[19].mxu1 }
 0x223   : > { %v3560_v17 = vadd.f32 %v3559_v47, %v3399_v42 }
 0x224   : > { %5463 = vtanh.f32 %v3568_v9 }
 0x225   : > { %5465 = vtanh.f32 %v3557_v58 }
 0x226   : > { %v5212_v41 = vpop.f32.mrb[20].mxu0  ;;  %5467 = vtanh.f32 %v3560_v17 }
 0x227   : > { %v5213_v61 = vpop.f32.mrb[21].mxu0  ;;  %v5315_v6 = vpop.f32.mrb[20].mxu1 }
 0x228   : > { %v5214_v25 = vadd.f32 %v5213_v61, %v5212_v41  ;;  %v5215_v10 = vpop.f32.mrb[22].mxu0  ;;  %v3581_v35 = vadd.f32 %v5315_v6, %v3420_v8  ;;  %v3572_v3 = vpop.f32.mrb[21].mxu1 }
 0x229   : > { %v5216_v11 = vpop.f32.mrb[23].mxu0  ;;  %v3573_v5 = vadd.f32 %v3572_v3, %v3412_v62  ;;  %v5316_v30 = vpop.f32.mrb[22].mxu1 }
 0x22a   : > { %v5217_v2 = vadd.f32 %v5216_v11, %v5215_v10  ;;  %5469 = vtanh.f32 %v3581_v35  ;;  %v3584_v52 = vadd.f32 %v5316_v30, %v3423_v33  ;;  %v3575_v51 = vpop.f32.mrb[23].mxu1  ;;  %v3436_v14 = vadd.f32 %v5214_v25, %v7444_v37  ;;  %v7516_v30 = vpop.permute.xlu0 %3843 }
 0x22b   : > { %v3576_v57 = vadd.f32 %v3575_v51, %v3415_v24 }
 0x22c   : > { %v7458_v22 = vpop.eup %5461  ;;  %5471 = vtanh.f32 %v3584_v52  ;;  %v3439_v39 = vadd.f32 %v5217_v2, %v7444_v37 }
 0x22d   : > { %4007 = vrot.lane.b32.xlu0 %v7458_v22, %s5653_s30  ;;  %5473 = vtanh.f32 %v3573_v5 }
 0x22e   : > { %v7462_v20 = vpop.eup %5463  ;;  %v5218_v26 = vpop.f32.mrb[24].mxu0  ;;  %5475 = vtanh.f32 %v3576_v57 }
 0x22f   : > { %4009 = vrot.lane.b32.xlu1 %v7462_v20, %s5653_s30  ;;  %v5219_v50 = vpop.f32.mrb[25].mxu0  ;;  %v7466_v1 = vpop.eup %5465 }
 0x230   : > { %v5220_v4 = vadd.f32 %v5219_v50, %v5218_v26  ;;  %v5221_v31 = vpop.f32.mrb[26].mxu0  ;;  %v7472_v23 = vpop.eup %5467 }
 0x231   : > { %4003 = vrot.lane.b32.xlu0 %v7466_v1, %s5653_s30  ;;  %v5222_v13 = vpop.f32.mrb[27].mxu0  ;;  %v5319_v28 = vpop.f32.mrb[24].mxu1 }
 0x232   : > { %v5223_v48 = vadd.f32 %v5222_v13, %v5221_v31  ;;  %v3597_v45 = vadd.f32 %v5319_v28, %v3436_v14  ;;  %v3588_v7 = vpop.f32.mrb[25].mxu1  ;;  %v3444_v8 = vadd.f32 %v5220_v4, %v7444_v37  ;;  %v7526_v31 = vpop.permute.xlu1 %3845 }
 0x233   : > { %4005 = vrot.lane.b32.xlu1 %v7472_v23, %s5653_s30  ;;  %v3589_v60 = vadd.f32 %v3588_v7, %v3428_v40  ;;  %v5320_v55 = vpop.f32.mrb[26].mxu1  ;;  %v7532_v13 = vpop.permute.xlu0 %3847 }
 0x234   : > { %v7478_v0 = vpop.eup %5469  ;;  %5477 = vtanh.f32 %v3597_v45  ;;  %v3600_v15 = vadd.f32 %v5320_v55, %v3439_v39  ;;  %v3591_v34 = vpop.f32.mrb[27].mxu1  ;;  %v3447_v35 = vadd.f32 %v5223_v48, %v7444_v37 }
 0x235   : > { %4015 = vrot.lane.b32.xlu0 %v7478_v0, %s5653_s30  ;;  %v3592_v53 = vadd.f32 %v3591_v34, %v3431_v19 }
 0x236   : > { %v7482_v32 = vpop.eup %5471  ;;  %5479 = vtanh.f32 %v3600_v15  ;;  %v7538_v40 = vpop.permute.xlu1 %3849 }
 0x237   : > { %4017 = vrot.lane.b32.xlu1 %v7482_v32, %s5653_s30  ;;  %v7486_v27 = vpop.eup %5473  ;;  %5481 = vtanh.f32 %v3589_v60  ;;  %v7536_v28 = vpop.permute.xlu0 %3851 }
 0x238   : > { %v7490_v59 = vpop.eup %5475  ;;  %5483 = vtanh.f32 %v3592_v53 }
 0x239   : > { %4011 = vrot.lane.b32.xlu0 %v7486_v27, %s5653_s30 }
 0x23a   : > { %v7541_v39 = vpop.permute.xlu1 %3853 }
 0x23b   : > { %4013 = vrot.lane.b32.xlu1 %v7490_v59, %s5653_s30  ;;  %v7544_v15 = vpop.permute.xlu0 %3855 }
 0x23e   : > { %v7494_v18 = vpop.eup %5477 }
 0x23f   : > { %4023 = vrot.lane.b32.xlu0 %v7494_v18, %s5653_s30 }
 0x240   : > { %v7498_v49 = vpop.eup %5479  ;;  %v5224_v43 = vpop.f32.mrb[28].mxu0 }
 0x241   : > { %v5225_v12 = vpop.f32.mrb[29].mxu0  ;;  %4025 = vrot.lane.b32.xlu1 %v7498_v49, %s5653_s30  ;;  %v7502_v54 = vpop.eup %5481 }
 0x242   : > { %v5226_v58 = vadd.f32 %v5225_v12, %v5224_v43  ;;  %v5227_v56 = vpop.f32.mrb[30].mxu0  ;;  %v7506_v9 = vpop.eup %5483 }
 0x243   : > { %v5228_v42 = vpop.f32.mrb[31].mxu0  ;;  %4019 = vrot.lane.b32.xlu0 %v7502_v54, %s5653_s30  ;;  %v7546_v43 = vpop.permute.xlu0 %3859 }
 0x244   : > { %v5229_v47 = vadd.f32 %v5228_v42, %v5227_v56  ;;  %v3452_v17 = vadd.f32 %v5226_v58, %v7444_v37  ;;  %v7548_v12 = vpop.permute.xlu1 %3857 }
 0x245   : > { %4021 = vrot.lane.b32.xlu1 %v7506_v9, %s5653_s30 }
 0x246   : > { %v3455_v62 = vadd.f32 %v5229_v47, %v7444_v37 }
 0x247   : > { %v5323_v41 = vpop.f32.mrb[28].mxu1  ;;  %v7552_v56 = vpop.permute.xlu0 %3863 }
 0x248   : > { %v3613_v61 = vadd.f32 %v5323_v41, %v3452_v17  ;;  %v3604_v6 = vpop.f32.mrb[29].mxu1  ;;  %v7550_v58 = vpop.permute.xlu1 %3861 }
 0x249   : > { %v3605_v25 = vadd.f32 %v3604_v6, %v3444_v8  ;;  %v5324_v10 = vpop.f32.mrb[30].mxu1 }
 0x24a   : > { %v3616_v3 = vadd.f32 %v5324_v10, %v3455_v62  ;;  %v3607_v33 = vpop.f32.mrb[31].mxu1 }
 0x24b   : > { %5485 = vtanh.f32 %v3605_v25  ;;  %v3608_v11 = vadd.f32 %v3607_v33, %v3447_v35  ;;  %v7560_v6 = vpop.permute.xlu0 %3867 }
 0x24c   : > { %v7564_v25 = vpop.permute.xlu1 %3865 }
 0x24d   : > { %5487 = vtanh.f32 %v3608_v11 }
 0x24e   : > { %5489 = vtanh.f32 %v3613_v61 }
 0x24f   : > { %5491 = vtanh.f32 %v3616_v3 }
 0x250   : > { %v7568_v11 = vpop.permute.xlu1 %3869 }
 0x254   : > { %v5230_v24 = vpop.f32.mrb[32].mxu0 }
 0x255   : > { %v7514_v5 = vpop.eup %5485  ;;  %v5231_v2 = vpop.f32.mrb[33].mxu0 }
 0x256   : > { %4027 = vrot.lane.b32.xlu0 %v7514_v5, %s5653_s30  ;;  %v5232_v51 = vadd.f32 %v5231_v2, %v5230_v24  ;;  %v5233_v57 = vpop.f32.mrb[34].mxu0  ;;  %v7570_v2 = vpop.permute.xlu0 %3871 }
 0x257   : > { %v7520_v52 = vpop.eup %5487  ;;  %v5234_v26 = vpop.f32.mrb[35].mxu0 }
 0x258   : > { %4029 = vrot.lane.b32.xlu1 %v7520_v52, %s5653_s30  ;;  %v7524_v50 = vpop.eup %5489  ;;  %v5235_v4 = vadd.f32 %v5234_v26, %v5233_v57  ;;  %v3460_v45 = vadd.f32 %v5232_v51, %v7444_v37  ;;  %v7576_v26 = vpop.permute.xlu1 %3873 }
 0x259   : > { %v7530_v14 = vpop.eup %5491 }
 0x25a   : > { %4031 = vrot.lane.b32.xlu0 %v7524_v50, %s5653_s30  ;;  %v3463_v19 = vadd.f32 %v5235_v4, %v7444_v37  ;;  %v7572_v51 = vpop.permute.xlu0 %3875 }
 0x25b   : > { %8279 = vst [vmem:[#allocation2_spill] sm:$0xff] %v7572_v51 }
 0x25c   : > { %4033 = vrot.lane.b32.xlu1 %v7530_v14, %s5653_s30 }
 0x262   : > { %v5327_v48 = vpop.f32.mrb[32].mxu1 }
 0x263   : > { %v3620_v7 = vpop.f32.mrb[33].mxu1 }
 0x264   : > { %v3621_v60 = vadd.f32 %v3620_v7, %v3460_v45  ;;  %v5328_v55 = vpop.f32.mrb[34].mxu1 }
 0x265   : > { %v3623_v34 = vpop.f32.mrb[35].mxu1 }
 0x266   : > { %5493 = vtanh.f32 %v3621_v60  ;;  %v3624_v53 = vadd.f32 %v3623_v34, %v3463_v19  ;;  %v7584_v19 = vpop.permute.xlu1 %3877 }
 0x267   : > { %8281 = vst [vmem:[#allocation4_spill] sm:$0xff] %v7584_v19 }
 0x268   : > { %5495 = vtanh.f32 %v3624_v53 }
 0x26a   : > { %v7592_v34 = vpop.permute.xlu1 %3881 }
 0x26b   : > { %8282 = vst [vmem:[#allocation5_spill] sm:$0xff] %v7592_v34  ;;  %v3500_v34 = vadd.f32 %v7410_v63, %v7444_v37 }
 0x270   : > { %v7554_v42 = vpop.eup %5493  ;;  %v5236_v47 = vpop.f32.mrb[36].mxu0 }
 0x271   : > { %v5237_v17 = vpop.f32.mrb[37].mxu0  ;;  %4035 = vrot.lane.b32.xlu0 %v7554_v42, %s5653_s30 }
 0x272   : > { %v7558_v41 = vpop.eup %5495  ;;  %v5238_v8 = vadd.f32 %v5237_v17, %v5236_v47  ;;  %v5239_v61 = vpop.f32.mrb[38].mxu0 }
 0x273   : > { %v5240_v62 = vpop.f32.mrb[39].mxu0  ;;  %4037 = vrot.lane.b32.xlu1 %v7558_v41, %s5653_s30  ;;  %v7596_v17 = vpop.permute.xlu1 %3885 }
 0x274   : > { %v3468_v10 = vadd.f32 %v5238_v8, %v7444_v37  ;;  %v5241_v35 = vadd.f32 %v5240_v62, %v5239_v61  ;;  %8284 = vst [vmem:[#allocation7_spill] sm:$0xff] %v7596_v17  ;;  %v3492_v17 = vadd.f32 %v7361_v16, %v7444_v37 }
 0x276   : > { %v3629_v3 = vadd.f32 %v5327_v48, %v3468_v10  ;;  %v3471_v33 = vadd.f32 %v5241_v35, %v7444_v37  ;;  %v7580_v48 = vpop.permute.xlu0 %3879 }
 0x277   : > { %8280 = vst [vmem:[#allocation3_spill] sm:$0xff] %v7580_v48  ;;  %v7604_v19 = vpop.permute.xlu1 %3889 }
 0x278   : > { %5497 = vtanh.f32 %v3629_v3  ;;  %v3632_v24 = vadd.f32 %v5328_v55, %v3471_v33  ;;  %8286 = vst [vmem:[#allocation9_spill] sm:$0xff] %v7604_v19 }
 0x27a   : > { %5499 = vtanh.f32 %v3632_v24  ;;  %v7594_v53 = vpop.permute.xlu0 %3883 }
 0x27b   : > { %8283 = vst [vmem:[#allocation6_spill] sm:$0xff] %v7594_v53  ;;  %v7614_v19 = vpop.permute.xlu1 %3893 }
 0x27c   : > { %8288 = vst [vmem:[#allocation11_spill] sm:$0xff] %v7614_v19 }
 0x27d   : > { %v7574_v57 = vpop.f32.mrb[36].mxu1 }
 0x27e   : > { %v3636_v4 = vpop.f32.mrb[37].mxu1  ;;  %v7598_v61 = vpop.permute.xlu0 %3887 }
 0x27f   : > { %v7578_v45 = vpop.f32.mrb[38].mxu1  ;;  %8285 = vst [vmem:[#allocation8_spill] sm:$0xff] %v7598_v61 }
 0x280   : > { %v3639_v7 = vpop.f32.mrb[39].mxu1 }
 0x282   : > { %v7582_v60 = vpop.eup %5497  ;;  %v7608_v51 = vpop.permute.xlu0 %3891 }
 0x283   : > { %4039 = vrot.lane.b32.xlu0 %v7582_v60, %s5653_s30  ;;  %8287 = vst [vmem:[#allocation10_spill] sm:$0xff] %v7608_v51 }
 0x284   : > { %v7588_v55 = vpop.eup %5499 }
 0x285   : > { %4041 = vrot.lane.b32.xlu1 %v7588_v55, %s5653_s30 }
 0x286   : > { %v7616_v16 = vpop.permute.xlu0 %3895 }
 0x287   : > { %8289 = vst [vmem:[#allocation12_spill] sm:$0xff] %v7616_v16 }
 0x28b   : > { %v5242_v47 = vpop.f32.mrb[40].mxu0 }
 0x28c   : > { %v5243_v8 = vpop.f32.mrb[41].mxu0 }
 0x28d   : > { %v5244_v62 = vadd.f32 %v5243_v8, %v5242_v47  ;;  %v5245_v10 = vpop.f32.mrb[42].mxu0 }
 0x28e   : > { %v5246_v35 = vpop.f32.mrb[43].mxu0 }
 0x28f   : > { %v3476_v3 = vadd.f32 %v5244_v62, %v7444_v37  ;;  %v5247_v33 = vadd.f32 %v5246_v35, %v5245_v10  ;;  %v3503_v62 = vadd.f32 %v7412_v46, %v7444_v37  ;;  %v3495_v35 = vadd.f32 %v7369_v29, %v7444_v37 }
 0x291   : > { %v3637_v24 = vadd.f32 %v3636_v4, %v3476_v3  ;;  %v3479_v48 = vadd.f32 %v5247_v33, %v7444_v37 }
 0x292   : > { %v5335_v53 = vpop.f32.mrb[40].mxu1 }
 0x293   : > { %v3640_v47 = vadd.f32 %v3639_v7, %v3479_v48  ;;  %v3661_v8 = vadd.f32 %v5335_v53, %v3500_v34  ;;  %v3652_v61 = vpop.f32.mrb[41].mxu1  ;;  %v7618_v48 = vpop.permute.xlu1 %3897 }
 0x294   : > { %v3653_v4 = vadd.f32 %v3652_v61, %v3492_v17  ;;  %v5336_v10 = vpop.f32.mrb[42].mxu1  ;;  %8290 = vst [vmem:[#allocation13_spill] sm:$0xff] %v7618_v48  ;;  %v7620_v53 = vpop.permute.xlu0 %3899  ;;  %v3516_v61 = vadd.f32 %v7437_v21, %v7444_v37 }
 0x295   : > { %v3664_v63 = vadd.f32 %v5336_v10, %v3503_v62  ;;  %v3655_v3 = vpop.f32.mrb[43].mxu1  ;;  %5501 = vtanh.f32 %v3661_v8  ;;  %8291 = vst [vmem:[#allocation14_spill] sm:$0xff] %v7620_v53  ;;  %v3508_v62 = vadd.f32 %v7433_v44, %v7444_v37  ;;  %v3721_v53 = vmul.f32 0.5, %v7478_v0 }
 0x296   : > { %v3656_v33 = vadd.f32 %v3655_v3, %v3495_v35 }
 0x297   : > { %5503 = vtanh.f32 %v3664_v63  ;;  %v7704_v51 = vadd.f32 0.5, %v3721_v53 }
 0x298   : > { %5505 = vtanh.f32 %v3653_v4 }
 0x299   : > { %5507 = vtanh.f32 %v3656_v33 }
 0x29a   : > { %5509 = vtanh.f32 %v3637_v24 }
 0x29b   : > { %5511 = vtanh.f32 %v3640_v47 }
 0x29d   : > { %v5248_v7 = vpop.f32.mrb[44].mxu0 }
 0x29e   : > { %v5249_v46 = vpop.f32.mrb[45].mxu0 }
 0x29f   : > { %v5250_v34 = vadd.f32 %v5249_v46, %v5248_v7  ;;  %v5251_v29 = vpop.f32.mrb[46].mxu0  ;;  %v7626_v10 = vpop.eup %5501 }
 0x2a0   : > { %v5252_v17 = vpop.f32.mrb[47].mxu0  ;;  %v5339_v8 = vpop.f32.mrb[44].mxu1  ;;  %4055 = vrot.lane.b32.xlu0 %v7626_v10, %s5653_s30 }
 0x2a1   : > { %v3484_v4 = vadd.f32 %v5250_v34, %v7444_v37  ;;  %v5253_v35 = vadd.f32 %v5252_v17, %v5251_v29  ;;  %v3668_v63 = vpop.f32.mrb[45].mxu1  ;;  %v3677_v24 = vadd.f32 %v5339_v8, %v3516_v61  ;;  %v7631_v7 = vpop.eup %5503  ;;  %v3519_v29 = vadd.f32 %v7439_v38, %v7444_v37 }
 0x2a2   : > { %v3669_v3 = vadd.f32 %v3668_v63, %v3508_v62  ;;  %v5340_v33 = vpop.f32.mrb[46].mxu1  ;;  %4057 = vrot.lane.b32.xlu1 %v7631_v7, %s5653_s30  ;;  %v7637_v47 = vpop.eup %5505  ;;  %v3511_v17 = vadd.f32 %v7435_v36, %v7444_v37 }
 0x2a3   : > { %v3645_v21 = vadd.f32 %v7574_v57, %v3484_v4  ;;  %v3671_v46 = vpop.f32.mrb[47].mxu1  ;;  %v3487_v44 = vadd.f32 %v5253_v35, %v7444_v37  ;;  %5513 = vtanh.f32 %v3677_v24  ;;  %v7639_v34 = vpop.permute.xlu1 %3901  ;;  %v3680_v62 = vadd.f32 %v5340_v33, %v3519_v29 }
 0x2a4   : > { %8292 = vst [vmem:[#allocation15_spill] sm:$0xff] %v7639_v34  ;;  %v7646_v57 = vpop.permute.xlu0 %3903  ;;  %4051 = vrot.lane.b32.xlu0 %v7637_v47, %s5653_s30  ;;  %v7650_v8 = vpop.eup %5507  ;;  %v3672_v4 = vadd.f32 %v3671_v46, %v3511_v17  ;;  %5515 = vtanh.f32 %v3669_v3  ;;  %v3717_v46 = vmul.f32 0.5, %v7458_v22  ;;  %v3715_v17 = vmul.f32 0.5, %v7466_v1 }
 0x2a5   : > { %v3648_v61 = vadd.f32 %v7578_v45, %v3487_v44  ;;  %8293 = vst [vmem:[#allocation16_spill] sm:$0xff] %v7646_v57  ;;  %v7654_v35 = vpop.eup %5509  ;;  %5517 = vtanh.f32 %v3680_v62  ;;  %v3718_v22 = vmul.f32 0.5, %v7462_v20 }
 0x2a6   : > { %4053 = vrot.lane.b32.xlu1 %v7650_v8, %s5653_s30  ;;  %v7658_v36 = vpop.eup %5511  ;;  %5519 = vtanh.f32 %v3645_v21 }
 0x2a7   : > { %v7660_v38 = vpop.permute.xlu1 %3905  ;;  %5521 = vtanh.f32 %v3672_v4  ;;  %v7697_v57 = vadd.f32 0.5, %v3718_v22 }
 0x2a8   : > { %4043 = vrot.lane.b32.xlu0 %v7654_v35, %s5653_s30  ;;  %8294 = vst [vmem:[#allocation17_spill] sm:$0xff] %v7660_v38  ;;  %v4008_v37 = vpop.permute.xlu0 %4007  ;;  %5523 = vtanh.f32 %v3648_v61  ;;  %v7682_v61 = vadd.f32 0.5, %v3717_v46  ;;  %v7692_v38 = vadd.f32 0.5, %v3715_v17  ;;  %v3716_v46 = vmul.f32 0.5, %v7472_v23 }
 0x2a9   : > { %v3719_v17 = vmul.f32 0.5, %v7486_v27  ;;  %v3722_v23 = vmul.f32 0.5, %v7482_v32  ;;  %v3720_v27 = vmul.f32 0.5, %v7490_v59  ;;  %v3723_v32 = vmul.f32 0.5, %v7502_v54 }
 0x2aa   : > { %4045 = vrot.lane.b32.xlu1 %v7658_v36, %s5653_s30  ;;  %v4101_v4 = vmul.f32 %v4008_v37, %v7682_v61  ;;  %v7707_v0 = vadd.f32 0.5, %v3716_v46  ;;  %v3726_v46 = vmul.f32 0.5, %v7498_v49  ;;  %v3727_v54 = vmul.f32 0.5, %v7514_v5 }
 0x2ab   : > { %v4010_v63 = vpop.permute.xlu1 %4009  ;;  %v7714_v16 = vadd.f32 0.5, %v3719_v17  ;;  %v7732_v17 = vadd.f32 0.5, %v3723_v32  ;;  %v3729_v5 = vmul.f32 0.5, %v7524_v50  ;;  %v3730_v50 = vmul.f32 0.5, %v7530_v14 }
 0x2ac   : > { %v4004_v3 = vpop.permute.xlu0 %4003  ;;  %v4102_v37 = vmul.f32 %v4010_v63, %v7697_v57  ;;  %v3731_v14 = vmul.f32 0.5, %v7554_v42  ;;  %v3734_v42 = vmul.f32 0.5, %v7588_v55  ;;  %v3739_v55 = vmul.f32 0.5, %v7637_v47 }
 0x2ad   : > { %v7664_v45 = vpop.eup %5513  ;;  %v4099_v19 = vmul.f32 %v4004_v3, %v7692_v38  ;;  %v3736_v47 = vmul.f32 0.5, %v7658_v36 }
 0x2ae   : > { %4063 = vrot.lane.b32.xlu0 %v7664_v45, %s5653_s30  ;;  %v7668_v24 = vpop.eup %5515 }
 0x2af   : > { %v7670_v33 = vpop.eup %5517  ;;  %v4006_v62 = vpop.permute.xlu1 %4005 }
 0x2b0   : > { %4065 = vrot.lane.b32.xlu1 %v7670_v33, %s5653_s30  ;;  %v7677_v21 = vpop.eup %5519  ;;  %v4016_v44 = vpop.permute.xlu0 %4015  ;;  %v4100_v63 = vmul.f32 %v4006_v62, %v7707_v0 }
 0x2b1   : > { %v7679_v29 = vpop.eup %5521  ;;  %v4105_v48 = vmul.f32 %v4016_v44, %v7704_v51 }
 0x2b2   : > { %4059 = vrot.lane.b32.xlu0 %v7668_v24, %s5653_s30  ;;  %v7690_v34 = vpop.eup %5523 }
 0x2b3   : > { %v4018_v1 = vpop.permute.xlu1 %4017 }
 0x2b4   : > { %4061 = vrot.lane.b32.xlu1 %v7679_v29, %s5653_s30  ;;  %v4012_v20 = vpop.permute.xlu0 %4011 }
 0x2b6   : > { %4047 = vrot.lane.b32.xlu0 %v7677_v21, %s5653_s30 }
 0x2b7   : > { %v4014_v3 = vpop.permute.xlu1 %4013 }
 0x2b8   : > { %4049 = vrot.lane.b32.xlu1 %v7690_v34, %s5653_s30  ;;  %v4024_v22 = vpop.permute.xlu0 %4023 }
 0x2ba   : > { %4167 = vrot.lane.b32.xlu0 %v4101_v4, %s5653_s30  ;;  %v3725_v4 = vmul.f32 0.5, %v7494_v18  ;;  %v4103_v18 = vmul.f32 %v4012_v20, %v7714_v16  ;;  %v3724_v20 = vmul.f32 0.5, %v7506_v9  ;;  %v3728_v9 = vmul.f32 0.5, %v7520_v52 }
 0x2bb   : > { %v4026_v44 = vpop.permute.xlu1 %4025 }
 0x2bc   : > { %4169 = vrot.lane.b32.xlu1 %v4102_v37, %s5653_s30  ;;  %v7722_v53 = vadd.f32 0.5, %v3725_v4  ;;  %v4020_v37 = vpop.permute.xlu0 %4019  ;;  %v7746_v32 = vadd.f32 0.5, %v3724_v20  ;;  %v7762_v20 = vadd.f32 0.5, %v3730_v50 }
 0x2bd   : > { %v4107_v4 = vmul.f32 %v4020_v37, %v7732_v17  ;;  %v7753_v37 = vadd.f32 0.5, %v3729_v5 }
 0x2be   : > { %4163 = vrot.lane.b32.xlu0 %v4099_v19, %s5653_s30  ;;  %v7718_v19 = vadd.f32 0.5, %v3722_v23  ;;  %v4109_v59 = vmul.f32 %v4024_v22, %v7722_v53  ;;  %v7736_v23 = vadd.f32 0.5, %v3726_v46 }
 0x2bf   : > { %v4022_v22 = vpop.permute.xlu1 %4021 }
 0x2c0   : > { %4165 = vrot.lane.b32.xlu1 %v4100_v63, %s5653_s30  ;;  %v4106_v62 = vmul.f32 %v4018_v1, %v7718_v19  ;;  %v4110_v63 = vmul.f32 %v4026_v44, %v7736_v23  ;;  %v4108_v46 = vmul.f32 %v4022_v22, %v7746_v32  ;;  %v7755_v44 = vadd.f32 0.5, %v3728_v9 }
 0x2c2   : > { %4175 = vrot.lane.b32.xlu0 %v4105_v48, %s5653_s30  ;;  %v7729_v48 = vadd.f32 0.5, %v3720_v27  ;;  %v7743_v27 = vadd.f32 0.5, %v3727_v54 }
 0x2c4   : > { %4177 = vrot.lane.b32.xlu1 %v4106_v62, %s5653_s30  ;;  %v4104_v49 = vmul.f32 %v4014_v3, %v7729_v48 }
 0x2c6   : > { %4171 = vrot.lane.b32.xlu0 %v4103_v18, %s5653_s30 }
 0x2c8   : > { %v4028_v1 = vpop.permute.xlu0 %4027  ;;  %4173 = vrot.lane.b32.xlu1 %v4104_v49, %s5653_s30 }
 0x2c9   : > { %v4111_v3 = vmul.f32 %v4028_v1, %v7743_v27  ;;  %v3732_v1 = vmul.f32 0.5, %v7558_v41 }
 0x2ca   : > { %4183 = vrot.lane.b32.xlu0 %v4109_v59, %s5653_s30  ;;  %v4030_v18 = vpop.permute.xlu1 %4029 }
 0x2cb   : > { %v4112_v59 = vmul.f32 %v4030_v18, %v7755_v44  ;;  %v3733_v18 = vmul.f32 0.5, %v7582_v60  ;;  %v3742_v60 = vmul.f32 0.5, %v7631_v7 }
 0x2cc   : > { %4185 = vrot.lane.b32.xlu1 %v4110_v63, %s5653_s30  ;;  %v4032_v62 = vpop.permute.xlu0 %4031  ;;  %v7772_v63 = vadd.f32 0.5, %v3732_v1  ;;  %v3740_v1 = vmul.f32 0.5, %v7650_v8 }
 0x2cd   : > { %v4113_v52 = vmul.f32 %v4032_v62, %v7753_v37  ;;  %v7782_v62 = vadd.f32 0.5, %v3734_v42 }
 0x2ce   : > { %4179 = vrot.lane.b32.xlu0 %v4107_v4, %s5653_s30  ;;  %v4034_v54 = vpop.permute.xlu1 %4033  ;;  %v7770_v4 = vadd.f32 0.5, %v3731_v14  ;;  %v7803_v42 = vadd.f32 0.5, %v3740_v1 }
 0x2cf   : > { %v4114_v49 = vmul.f32 %v4034_v54, %v7762_v20  ;;  %v3741_v54 = vmul.f32 0.5, %v7626_v10 }
 0x2d0   : > { %4181 = vrot.lane.b32.xlu1 %v4108_v46, %s5653_s30  ;;  %v7780_v46 = vadd.f32 0.5, %v3733_v18  ;;  %v7798_v18 = vadd.f32 0.5, %v3739_v55  ;;  %v3743_v55 = vmul.f32 0.5, %v7668_v24 }
 0x2d2   : > { %4187 = vrot.lane.b32.xlu0 %v4111_v3, %s5653_s30  ;;  %v7819_v1 = vadd.f32 0.5, %v3743_v55 }
 0x2d4   : > { %4189 = vrot.lane.b32.xlu1 %v4112_v59, %s5653_s30 }
 0x2d6   : > { %4191 = vrot.lane.b32.xlu0 %v4113_v52, %s5653_s30 }
 0x2d8   : > { %4193 = vrot.lane.b32.xlu1 %v4114_v49, %s5653_s30  ;;  %v7791_v49 = vadd.f32 0.5, %v3741_v54 }
 0x2e3   : > { %v4036_v22 = vpop.permute.xlu0 %4035 }
 0x2e4   : > { %v4115_v5 = vmul.f32 %v4036_v22, %v7770_v4  ;;  %v7794_v22 = vadd.f32 0.5, %v3742_v60 }
 0x2e5   : > { %v4038_v9 = vpop.permute.xlu1 %4037 }
 0x2e6   : > { %v4116_v3 = vmul.f32 %v4038_v9, %v7772_v63  ;;  %4195 = vrot.lane.b32.xlu0 %v4115_v5, %s5653_s30 }
 0x2e8   : > { %4197 = vrot.lane.b32.xlu1 %v4116_v3, %s5653_s30  ;;  %v3735_v3 = vmul.f32 0.5, %v7654_v35 }
 0x2f5   : > { %v4040_v41 = vpop.permute.xlu0 %4039 }
 0x2f6   : > { %v4117_v50 = vmul.f32 %v4040_v41, %v7780_v46 }
 0x2f7   : > { %v4042_v52 = vpop.permute.xlu1 %4041 }
 0x2f8   : > { %v4118_v59 = vmul.f32 %v4042_v52, %v7782_v62  ;;  %4199 = vrot.lane.b32.xlu0 %v4117_v50, %s5653_s30  ;;  %v7807_v50 = vadd.f32 0.5, %v3735_v3  ;;  %v3744_v3 = vmul.f32 0.5, %v7679_v29  ;;  %v3941_v29 = vmul.f32 %v7532_v13, %v7682_v61 }
 0x2f9   : > { %v3939_v13 = vmul.f32 %v7516_v30, %v7692_v38  ;;  %v3945_v30 = vmul.f32 %v7544_v15, %v7704_v51  ;;  %v3946_v15 = vmul.f32 %v7548_v12, %v7718_v19 }
 0x2fa   : > { %4201 = vrot.lane.b32.xlu1 %v4118_v59, %s5653_s30  ;;  %v7811_v59 = vadd.f32 0.5, %v3736_v47  ;;  %v3745_v47 = vmul.f32 0.5, %v7664_v45  ;;  %v7828_v24 = vadd.f32 0.5, %v3744_v3  ;;  %v3746_v45 = vmul.f32 0.5, %v7670_v33 }
 0x2fb   : > { %v3942_v33 = vmul.f32 %v7538_v40, %v7697_v57  ;;  %v3940_v40 = vmul.f32 %v7526_v31, %v7707_v0 }
 0x312   : > { %v4056_v14 = vpop.permute.xlu0 %4055 }
 0x313   : > { %v4125_v5 = vmul.f32 %v4056_v14, %v7791_v49 }
 0x314   : > { %v4058_v9 = vpop.permute.xlu1 %4057 }
 0x315   : > { %v4126_v10 = vmul.f32 %v4058_v9, %v7794_v22  ;;  %4215 = vrot.lane.b32.xlu0 %v4125_v5, %s5653_s30  ;;  %v3737_v5 = vmul.f32 0.5, %v7677_v21 }
 0x316   : > { %v4052_v7 = vpop.permute.xlu0 %4051 }
 0x317   : > { %v4123_v8 = vmul.f32 %v4052_v7, %v7798_v18  ;;  %4217 = vrot.lane.b32.xlu1 %v4126_v10, %s5653_s30 }
 0x318   : > { %v4054_v41 = vpop.permute.xlu1 %4053 }
 0x319   : > { %v4124_v35 = vmul.f32 %v4054_v41, %v7803_v42  ;;  %4211 = vrot.lane.b32.xlu0 %v4123_v8, %s5653_s30  ;;  %v7826_v8 = vadd.f32 0.5, %v3737_v5 }
 0x31a   : > { %v4044_v52 = vpop.permute.xlu0 %4043 }
 0x31b   : > { %v4119_v54 = vmul.f32 %v4044_v52, %v7807_v50  ;;  %4213 = vrot.lane.b32.xlu1 %v4124_v35, %s5653_s30  ;;  %v3738_v35 = vmul.f32 0.5, %v7690_v34 }
 0x31c   : > { %v4046_v36 = vpop.permute.xlu1 %4045 }
 0x31d   : > { %v4120_v60 = vmul.f32 %v4046_v36, %v7811_v59  ;;  %4203 = vrot.lane.b32.xlu0 %v4119_v54, %s5653_s30  ;;  %v7835_v36 = vadd.f32 0.5, %v3745_v47 }
 0x31f   : > { %4205 = vrot.lane.b32.xlu1 %v4120_v60, %s5653_s30  ;;  %v7840_v60 = vadd.f32 0.5, %v3738_v35 }
 0x320   : > { %v4064_v14 = vpop.permute.xlu0 %4063 }
 0x321   : > { %v4129_v34 = vmul.f32 %v4064_v14, %v7835_v36 }
 0x322   : > { %v4066_v10 = vpop.permute.xlu1 %4065 }
 0x324   : > { %v4060_v9 = vpop.permute.xlu0 %4059 }
 0x325   : > { %v4127_v7 = vmul.f32 %v4060_v9, %v7819_v1 }
 0x326   : > { %v4062_v52 = vpop.permute.xlu1 %4061 }
 0x327   : > { %4219 = vrot.lane.b32.xlu0 %v4127_v7, %s5653_s30  ;;  %v4128_v54 = vmul.f32 %v4062_v52, %v7828_v24  ;;  %v7852_v7 = vadd.f32 0.5, %v3746_v45 }
 0x328   : > { %v4048_v41 = vpop.permute.xlu0 %4047 }
 0x329   : > { %v4121_v21 = vmul.f32 %v4048_v41, %v7826_v8  ;;  %4221 = vrot.lane.b32.xlu1 %v4128_v54, %s5653_s30  ;;  %v4130_v35 = vmul.f32 %v4066_v10, %v7852_v7  ;;  %v3943_v10 = vmul.f32 %v7536_v28, %v7714_v16  ;;  %v3944_v28 = vmul.f32 %v7541_v39, %v7729_v48 }
 0x32a   : > { %v4050_v5 = vpop.permute.xlu1 %4049  ;;  %v3950_v39 = vmul.f32 %v7564_v25, %v7736_v23  ;;  %v3948_v25 = vmul.f32 %v7550_v58, %v7746_v32  ;;  %v3952_v58 = vmul.f32 %v7568_v11, %v7755_v44 }
 0x32b   : > { %4207 = vrot.lane.b32.xlu0 %v4121_v21, %s5653_s30  ;;  %v4122_v3 = vmul.f32 %v4050_v5, %v7840_v60 }
 0x32c   : > { %v4168_v55 = vpop.permute.xlu0 %4167 }
 0x32d   : > { %v7843_v9 = vadd.f32 %v4168_v55, %v3941_v29  ;;  %4209 = vrot.lane.b32.xlu1 %v4122_v3, %s5653_s30 }
 0x32e   : > { %v4170_v47 = vpop.permute.xlu1 %4169 }
 0x32f   : > { %5525 = vtanh.f32 %v7843_v9  ;;  %4223 = vrot.lane.b32.xlu0 %v4129_v34, %s5653_s30  ;;  %v7858_v52 = vadd.f32 %v4170_v47, %v3942_v33 }
 0x330   : > { %v4164_v14 = vpop.permute.xlu0 %4163 }
 0x331   : > { %v7855_v41 = vadd.f32 %v4164_v14, %v3939_v13  ;;  %4225 = vrot.lane.b32.xlu1 %v4130_v35, %s5653_s30  ;;  %v3949_v13 = vmul.f32 %v7552_v56, %v7722_v53  ;;  %v3947_v56 = vmul.f32 %v7546_v43, %v7732_v17  ;;  %v3951_v43 = vmul.f32 %v7560_v6, %v7743_v27 }
 0x332   : > { %v4166_v54 = vpop.permute.xlu1 %4165  ;;  %v3953_v6 = vmul.f32 %v7570_v2, %v7753_v37  ;;  %v3954_v2 = vmul.f32 %v7576_v26, %v7762_v20 }
 0x333   : > { %5527 = vtanh.f32 %v7855_v41  ;;  %v7869_v45 = vadd.f32 %v4166_v54, %v3940_v40 }
 0x334   : > { %5529 = vtanh.f32 %v7858_v52  ;;  %v4176_v21 = vpop.permute.xlu0 %4175 }
 0x335   : > { %v7867_v29 = vadd.f32 %v4176_v21, %v3945_v30 }
 0x336   : > { %v4178_v34 = vpop.permute.xlu1 %4177 }
 0x337   : > { %5531 = vtanh.f32 %v7867_v29  ;;  %v7879_v3 = vadd.f32 %v4178_v34, %v3946_v15 }
 0x338   : > { %5533 = vtanh.f32 %v7869_v45  ;;  %v4172_v31 = vpop.permute.xlu0 %4171 }
 0x339   : > { %v5526_v55 = vpop.eup %5525  ;;  %v7877_v5 = vadd.f32 %v4172_v31, %v3943_v10 }
 0x33a   : > { %4359 = vrot.lane.b32.xlu0 %v5526_v55, %s5653_s30  ;;  %v4174_v14 = vpop.permute.xlu1 %4173 }
 0x33b   : > { %5535 = vtanh.f32 %v7877_v5  ;;  %v7890_v30 = vadd.f32 %v4174_v14, %v3944_v28 }
 0x33c   : > { %5537 = vtanh.f32 %v7879_v3  ;;  %v4184_v12 = vpop.permute.xlu0 %4183 }
 0x33d   : > { %v5528_v33 = vpop.eup %5527  ;;  %v7888_v47 = vadd.f32 %v4184_v12, %v3949_v13 }
 0x33e   : > { %v5530_v35 = vpop.eup %5529  ;;  %4355 = vrot.lane.b32.xlu0 %v5528_v33, %s5653_s30  ;;  %v4186_v54 = vpop.permute.xlu1 %4185 }
 0x33f   : > { %4361 = vrot.lane.b32.xlu1 %v5530_v35, %s5653_s30  ;;  %5539 = vtanh.f32 %v7888_v47  ;;  %v7903_v31 = vadd.f32 %v4186_v54, %v3950_v39 }
 0x340   : > { %5541 = vtanh.f32 %v7890_v30  ;;  %v4180_v40 = vpop.permute.xlu0 %4179 }
 0x341   : > { %v5532_v21 = vpop.eup %5531  ;;  %v7900_v10 = vadd.f32 %v4180_v40, %v3947_v56 }
 0x342   : > { %v5534_v15 = vpop.eup %5533  ;;  %4367 = vrot.lane.b32.xlu0 %v5532_v21, %s5653_s30  ;;  %v4182_v13 = vpop.permute.xlu1 %4181 }
 0x343   : > { %4357 = vrot.lane.b32.xlu1 %v5534_v15, %s5653_s30  ;;  %5543 = vtanh.f32 %v7900_v10  ;;  %v7915_v33 = vadd.f32 %v4182_v13, %v3948_v25  ;;  %v8297_v13 = vld [vmem:[#allocation2_spill] sm:$0xff] }
 0x344   : > { %5545 = vtanh.f32 %v7903_v31  ;;  %v4188_v55 = vpop.permute.xlu0 %4187 }
 0x345   : > { %v5536_v34 = vpop.eup %5535  ;;  %v7912_v28 = vadd.f32 %v4188_v55, %v3951_v43 }
 0x346   : > { %v5538_v12 = vpop.eup %5537  ;;  %4363 = vrot.lane.b32.xlu0 %v5536_v34, %s5653_s30  ;;  %v4190_v56 = vpop.permute.xlu1 %4189 }
 0x347   : > { %4369 = vrot.lane.b32.xlu1 %v5538_v12, %s5653_s30  ;;  %5547 = vtanh.f32 %v7912_v28  ;;  %v7927_v21 = vadd.f32 %v4190_v56, %v3952_v58  ;;  %v3955_v12 = vmul.f32 %v8297_v13, %v7770_v4  ;;  %v8298_v58 = vld [vmem:[#allocation4_spill] sm:$0xff] }
 0x348   : > { %5549 = vtanh.f32 %v7915_v33  ;;  %v4192_v14 = vpop.permute.xlu0 %4191 }
 0x349   : > { %v5540_v35 = vpop.eup %5539  ;;  %v7924_v39 = vadd.f32 %v4192_v14, %v3953_v6  ;;  %8295 = vst [vmem:[#allocation18_spill] sm:$0xff] %v7927_v21  ;;  %v3956_v14 = vmul.f32 %v8298_v58, %v7772_v63 }
 0x34a   : > { %v5542_v40 = vpop.eup %5541  ;;  %4375 = vrot.lane.b32.xlu0 %v5540_v35, %s5653_s30  ;;  %v4194_v54 = vpop.permute.xlu1 %4193 }
 0x34b   : > { %4365 = vrot.lane.b32.xlu1 %v5542_v40, %s5653_s30  ;;  %5551 = vtanh.f32 %v7924_v39  ;;  %v7935_v43 = vadd.f32 %v4194_v54, %v3954_v2 }
 0x34c   : > { %5553 = vtanh.f32 %v7927_v21 }
 0x34d   : > { %v5544_v11 = vpop.eup %5543  ;;  %8296 = vst [vmem:[#allocation19_spill] sm:$0xff] %v7935_v43  ;;  %5555 = vtanh.f32 %v7935_v43 }
 0x34e   : > { %v5546_v15 = vpop.eup %5545  ;;  %4371 = vrot.lane.b32.xlu0 %v5544_v11, %s5653_s30 }
 0x34f   : > { %4377 = vrot.lane.b32.xlu1 %v5546_v15, %s5653_s30  ;;  %v8301_v15 = vld [vmem:[#allocation3_spill] sm:$0xff] }
 0x351   : > { %v5548_v25 = vpop.eup %5547 }
 0x352   : > { %v5550_v55 = vpop.eup %5549  ;;  %4379 = vrot.lane.b32.xlu0 %v5548_v25, %s5653_s30  ;;  %v3957_v25 = vmul.f32 %v8301_v15, %v7780_v46 }
 0x353   : > { %4373 = vrot.lane.b32.xlu1 %v5550_v55, %s5653_s30 }
 0x355   : > { %v5552_v26 = vpop.eup %5551 }
 0x356   : > { %v5554_v34 = vpop.eup %5553  ;;  %4383 = vrot.lane.b32.xlu0 %v5552_v26, %s5653_s30  ;;  %v8302_v26 = vld [vmem:[#allocation5_spill] sm:$0xff] }
 0x357   : > { %4381 = vrot.lane.b32.xlu1 %v5554_v34, %s5653_s30  ;;  %v5556_v40 = vpop.eup %5555  ;;  %v3958_v34 = vmul.f32 %v8302_v26, %v7782_v62  ;;  %v8308_v26 = vld [vmem:[#allocation10_spill] sm:$0xff] }
 0x358   : > { %v4196_v6 = vpop.permute.xlu0 %4195 }
 0x359   : > { %v7947_v35 = vadd.f32 %v4196_v6, %v3955_v12 }
 0x35a   : > { %v4198_v56 = vpop.permute.xlu1 %4197 }
 0x35b   : > { %8299 = vst [vmem:[#allocation2_spill] sm:$0xff] %v7947_v35  ;;  %5557 = vtanh.f32 %v7947_v35  ;;  %v7950_v2 = vadd.f32 %v4198_v56, %v3956_v14  ;;  %4385 = vrot.lane.b32.xlu1 %v5556_v40, %s5653_s30  ;;  %v8305_v56 = vld [vmem:[#allocation12_spill] sm:$0xff] }
 0x35c   : > { %v3965_v40 = vmul.f32 %v8305_v56, %v7791_v49 }
 0x35d   : > { %8300 = vst [vmem:[#allocation4_spill] sm:$0xff] %v7950_v2  ;;  %5559 = vtanh.f32 %v7950_v2  ;;  %v8320_v2 = vld [vmem:[#allocation8_spill] sm:$0xff] }
 0x35e   : > { %v3961_v43 = vmul.f32 %v8320_v2, %v7826_v8 }
 0x365   : > { %v5558_v11 = vpop.eup %5557 }
 0x366   : > { %4387 = vrot.lane.b32.xlu0 %v5558_v11, %s5653_s30 }
 0x367   : > { %v5560_v54 = vpop.eup %5559 }
 0x368   : > { %4389 = vrot.lane.b32.xlu1 %v5560_v54, %s5653_s30  ;;  %v8306_v54 = vld [vmem:[#allocation13_spill] sm:$0xff] }
 0x369   : > { %v3966_v15 = vmul.f32 %v8306_v54, %v7794_v22 }
 0x36a   : > { %v4200_v55 = vpop.permute.xlu0 %4199 }
 0x36b   : > { %v7960_v13 = vadd.f32 %v4200_v55, %v3957_v25 }
 0x36c   : > { %v4202_v12 = vpop.permute.xlu1 %4201 }
 0x36d   : > { %8303 = vst [vmem:[#allocation3_spill] sm:$0xff] %v7960_v13  ;;  %5561 = vtanh.f32 %v7960_v13  ;;  %v7963_v6 = vadd.f32 %v4202_v12, %v3958_v34  ;;  %v3963_v34 = vmul.f32 %v8308_v26, %v7798_v18 }
 0x36f   : > { %8304 = vst [vmem:[#allocation5_spill] sm:$0xff] %v7963_v6  ;;  %5563 = vtanh.f32 %v7963_v6 }
 0x377   : > { %v5562_v58 = vpop.eup %5561 }
 0x378   : > { %4391 = vrot.lane.b32.xlu0 %v5562_v58, %s5653_s30 }
 0x379   : > { %v5564_v14 = vpop.eup %5563 }
 0x37a   : > { %4393 = vrot.lane.b32.xlu1 %v5564_v14, %s5653_s30  ;;  %v8310_v14 = vld [vmem:[#allocation11_spill] sm:$0xff] }
 0x37b   : > { %v3964_v6 = vmul.f32 %v8310_v14, %v7803_v42 }
 0x387   : > { %v4216_v11 = vpop.permute.xlu0 %4215 }
 0x388   : > { %v7972_v25 = vadd.f32 %v4216_v11, %v3965_v40  ;;  %v8312_v40 = vld [vmem:[#allocation6_spill] sm:$0xff] }
 0x389   : > { %v4218_v55 = vpop.permute.xlu1 %4217  ;;  %v3959_v11 = vmul.f32 %v8312_v40, %v7807_v50 }
 0x38a   : > { %8307 = vst [vmem:[#allocation12_spill] sm:$0xff] %v7972_v25  ;;  %5565 = vtanh.f32 %v7972_v25  ;;  %v7977_v12 = vadd.f32 %v4218_v55, %v3966_v15  ;;  %v8314_v15 = vld [vmem:[#allocation7_spill] sm:$0xff] }
 0x38b   : > { %v4212_v58 = vpop.permute.xlu0 %4211  ;;  %v3960_v55 = vmul.f32 %v8314_v15, %v7811_v59 }
 0x38c   : > { %8309 = vst [vmem:[#allocation13_spill] sm:$0xff] %v7977_v12  ;;  %5567 = vtanh.f32 %v7977_v12  ;;  %v7982_v56 = vadd.f32 %v4212_v58, %v3963_v34 }
 0x38d   : > { %v4214_v13 = vpop.permute.xlu1 %4213 }
 0x38e   : > { %8311 = vst [vmem:[#allocation10_spill] sm:$0xff] %v7982_v56  ;;  %5569 = vtanh.f32 %v7982_v56  ;;  %v7987_v54 = vadd.f32 %v4214_v13, %v3964_v6 }
 0x38f   : > { %v4204_v26 = vpop.permute.xlu0 %4203 }
 0x390   : > { %8313 = vst [vmem:[#allocation11_spill] sm:$0xff] %v7987_v54  ;;  %5571 = vtanh.f32 %v7987_v54  ;;  %v7992_v25 = vadd.f32 %v4204_v26, %v3959_v11 }
 0x391   : > { %v4206_v14 = vpop.permute.xlu1 %4205 }
 0x392   : > { %8315 = vst [vmem:[#allocation6_spill] sm:$0xff] %v7992_v25  ;;  %5573 = vtanh.f32 %v7992_v25  ;;  %v7995_v34 = vadd.f32 %v4206_v14, %v3960_v55  ;;  %v8317_v14 = vld [vmem:[#allocation16_spill] sm:$0xff] }
 0x394   : > { %8316 = vst [vmem:[#allocation7_spill] sm:$0xff] %v7995_v34  ;;  %v5566_v58 = vpop.eup %5565  ;;  %5575 = vtanh.f32 %v7995_v34  ;;  %v3969_v34 = vmul.f32 %v8317_v14, %v7835_v36 }
 0x395   : > { %4407 = vrot.lane.b32.xlu0 %v5566_v58, %s5653_s30 }
 0x396   : > { %v5568_v13 = vpop.eup %5567 }
 0x397   : > { %4409 = vrot.lane.b32.xlu1 %v5568_v13, %s5653_s30  ;;  %v8318_v13 = vld [vmem:[#allocation14_spill] sm:$0xff] }
 0x398   : > { %v5570_v6 = vpop.eup %5569  ;;  %v3967_v54 = vmul.f32 %v8318_v13, %v7819_v1 }
 0x399   : > { %v4220_v40 = vpop.permute.xlu0 %4219  ;;  %4403 = vrot.lane.b32.xlu0 %v5570_v6, %s5653_s30 }
 0x39a   : > { %v5572_v15 = vpop.eup %5571  ;;  %v8010_v12 = vadd.f32 %v4220_v40, %v3967_v54  ;;  %v8323_v40 = vld [vmem:[#allocation9_spill] sm:$0xff] }
 0x39b   : > { %4405 = vrot.lane.b32.xlu1 %v5572_v15, %s5653_s30  ;;  %v4222_v25 = vpop.permute.xlu1 %4221  ;;  %v8319_v15 = vld [vmem:[#allocation17_spill] sm:$0xff] }
 0x39c   : > { %v5574_v11 = vpop.eup %5573 }
 0x39d   : > { %v4208_v26 = vpop.permute.xlu0 %4207  ;;  %4395 = vrot.lane.b32.xlu0 %v5574_v11, %s5653_s30  ;;  %v3970_v11 = vmul.f32 %v8319_v15, %v7852_v7 }
 0x39e   : > { %v5576_v55 = vpop.eup %5575 }
 0x39f   : > { %4397 = vrot.lane.b32.xlu1 %v5576_v55, %s5653_s30  ;;  %v4210_v56 = vpop.permute.xlu1 %4209  ;;  %v8321_v55 = vld [vmem:[#allocation15_spill] sm:$0xff] }
 0x3a0   : > { %v3968_v35 = vmul.f32 %v8321_v55, %v7828_v24 }
 0x3a1   : > { %v4224_v58 = vpop.permute.xlu0 %4223 }
 0x3a2   : > { %v8008_v6 = vadd.f32 %v4224_v58, %v3969_v34  ;;  %v8022_v34 = vadd.f32 %v4208_v26, %v3961_v43  ;;  %v8024_v54 = vadd.f32 %v4222_v25, %v3968_v35  ;;  %v3962_v58 = vmul.f32 %v8323_v40, %v7840_v60 }
 0x3a3   : > { %v4226_v14 = vpop.permute.xlu1 %4225 }
 0x3a4   : > { %5577 = vtanh.f32 %v8008_v6  ;;  %v8019_v21 = vadd.f32 %v4226_v14, %v3970_v11  ;;  %v8031_v13 = vadd.f32 %v4210_v56, %v3962_v58 }
 0x3a5   : > { %5579 = vtanh.f32 %v8010_v12 }
 0x3a6   : > { %8322 = vst [vmem:[#allocation16_spill] sm:$0xff] %v8019_v21  ;;  %5581 = vtanh.f32 %v8019_v21 }
 0x3a7   : > { %5583 = vtanh.f32 %v8022_v34 }
 0x3a8   : > { %5585 = vtanh.f32 %v8024_v54 }
 0x3a9   : > { %5587 = vtanh.f32 %v8031_v13 }
 0x3ac   : > { %v4360_v2 = vpop.permute.xlu0 %4359 }
 0x3ad   : > { %v4453_v56 = vmul.f32 %v4360_v2, %v7682_v61 }
 0x3ae   : > { %v5578_v15 = vpop.eup %5577 }
 0x3af   : > { %4415 = vrot.lane.b32.xlu0 %v5578_v15, %s5653_s30  ;;  %v5580_v35 = vpop.eup %5579 }
 0x3b0   : > { %v4356_v11 = vpop.permute.xlu0 %4355  ;;  %v5582_v25 = vpop.eup %5581 }
 0x3b1   : > { %v4362_v43 = vpop.permute.xlu1 %4361  ;;  %4417 = vrot.lane.b32.xlu1 %v5582_v25, %s5653_s30  ;;  %v5584_v14 = vpop.eup %5583 }
 0x3b2   : > { %v5586_v40 = vpop.eup %5585  ;;  %v4454_v25 = vmul.f32 %v4362_v43, %v7697_v57 }
 0x3b3   : > { %4411 = vrot.lane.b32.xlu0 %v5580_v35, %s5653_s30  ;;  %v5588_v58 = vpop.eup %5587  ;;  %v4451_v35 = vmul.f32 %v4356_v11, %v7692_v38 }
 0x3b4   : > { %v4368_v55 = vpop.permute.xlu0 %4367 }
 0x3b5   : > { %v4358_v26 = vpop.permute.xlu1 %4357  ;;  %4413 = vrot.lane.b32.xlu1 %v5586_v40, %s5653_s30  ;;  %v4457_v40 = vmul.f32 %v4368_v55, %v7704_v51 }
 0x3b6   : > { %v4452_v2 = vmul.f32 %v4358_v26, %v7707_v0 }
 0x3b7   : > { %4399 = vrot.lane.b32.xlu0 %v5584_v14, %s5653_s30 }
 0x3b8   : > { %v4364_v21 = vpop.permute.xlu0 %4363 }
 0x3b9   : > { %v4370_v15 = vpop.permute.xlu1 %4369  ;;  %4401 = vrot.lane.b32.xlu1 %v5588_v58, %s5653_s30 }
 0x3ba   : > { %v4458_v38 = vmul.f32 %v4370_v15, %v7718_v19 }
 0x3bb   : > { %4519 = vrot.lane.b32.xlu0 %v4453_v56, %s5654_s25  ;;  %v4455_v56 = vmul.f32 %v4364_v21, %v7714_v16 }
 0x3bc   : > { %v4376_v14 = vpop.permute.xlu0 %4375 }
 0x3bd   : > { %4521 = vrot.lane.b32.xlu1 %v4454_v25, %s5654_s25  ;;  %v4366_v61 = vpop.permute.xlu1 %4365  ;;  %v4461_v11 = vmul.f32 %v4376_v14, %v7722_v53 }
 0x3be   : > { %v4456_v51 = vmul.f32 %v4366_v61, %v7729_v48 }
 0x3bf   : > { %4515 = vrot.lane.b32.xlu0 %v4451_v35, %s5654_s25 }
 0x3c0   : > { %v4372_v57 = vpop.permute.xlu0 %4371 }
 0x3c1   : > { %4517 = vrot.lane.b32.xlu1 %v4452_v2, %s5654_s25  ;;  %v4378_v58 = vpop.permute.xlu1 %4377  ;;  %v4459_v16 = vmul.f32 %v4372_v57, %v7732_v17 }
 0x3c2   : > { %v4462_v21 = vmul.f32 %v4378_v58, %v7736_v23 }
 0x3c3   : > { %4527 = vrot.lane.b32.xlu0 %v4457_v40, %s5654_s25 }
 0x3c4   : > { %v4380_v43 = vpop.permute.xlu0 %4379 }
 0x3c5   : > { %4529 = vrot.lane.b32.xlu1 %v4458_v38, %s5654_s25  ;;  %v4374_v0 = vpop.permute.xlu1 %4373  ;;  %v4463_v19 = vmul.f32 %v4380_v43, %v7743_v27 }
 0x3c6   : > { %v4460_v48 = vmul.f32 %v4374_v0, %v7746_v32 }
 0x3c7   : > { %4523 = vrot.lane.b32.xlu0 %v4455_v56, %s5654_s25 }
 0x3c8   : > { %v4384_v53 = vpop.permute.xlu0 %4383 }
 0x3c9   : > { %4525 = vrot.lane.b32.xlu1 %v4456_v51, %s5654_s25  ;;  %v4382_v26 = vpop.permute.xlu1 %4381  ;;  %v4465_v55 = vmul.f32 %v4384_v53, %v7753_v37 }
 0x3ca   : > { %v4464_v17 = vmul.f32 %v4382_v26, %v7755_v44 }
 0x3cb   : > { %4535 = vrot.lane.b32.xlu0 %v4461_v11, %s5654_s25 }
 0x3cd   : > { %4537 = vrot.lane.b32.xlu1 %v4462_v21, %s5654_s25  ;;  %v4386_v15 = vpop.permute.xlu1 %4385 }
 0x3ce   : > { %v4466_v27 = vmul.f32 %v4386_v15, %v7762_v20 }
 0x3cf   : > { %4531 = vrot.lane.b32.xlu0 %v4459_v16, %s5654_s25 }
 0x3d1   : > { %4533 = vrot.lane.b32.xlu1 %v4460_v48, %s5654_s25 }
 0x3d3   : > { %4539 = vrot.lane.b32.xlu0 %v4463_v19, %s5654_s25 }
 0x3d5   : > { %4541 = vrot.lane.b32.xlu1 %v4464_v17, %s5654_s25 }
 0x3d7   : > { %4543 = vrot.lane.b32.xlu0 %v4465_v55, %s5654_s25 }
 0x3d8   : > { %v4388_v23 = vpop.permute.xlu0 %4387 }
 0x3d9   : > { %v4467_v35 = vmul.f32 %v4388_v23, %v7770_v4  ;;  %4545 = vrot.lane.b32.xlu1 %v4466_v27, %s5654_s25 }
 0x3da   : > { %v4390_v25 = vpop.permute.xlu1 %4389 }
 0x3db   : > { %4547 = vrot.lane.b32.xlu0 %v4467_v35, %s5654_s25  ;;  %v4468_v32 = vmul.f32 %v4390_v25, %v7772_v63 }
 0x3dd   : > { %4549 = vrot.lane.b32.xlu1 %v4468_v32, %s5654_s25 }
 0x3ea   : > { %v4392_v37 = vpop.permute.xlu0 %4391 }
 0x3eb   : > { %v4469_v44 = vmul.f32 %v4392_v37, %v7780_v46 }
 0x3ec   : > { %v4394_v14 = vpop.permute.xlu1 %4393 }
 0x3ed   : > { %v4470_v40 = vmul.f32 %v4394_v14, %v7782_v62  ;;  %4551 = vrot.lane.b32.xlu0 %v4469_v44, %s5654_s25  ;;  %v8324_v44 = vld [vmem:[#allocation18_spill] sm:$0xff] }
 0x3ef   : > { %4553 = vrot.lane.b32.xlu1 %v4470_v40, %s5654_s25  ;;  %v8325_v40 = vld [vmem:[#allocation2_spill] sm:$0xff] }
 0x407   : > { %v4408_v20 = vpop.permute.xlu0 %4407 }
 0x408   : > { %v4477_v4 = vmul.f32 %v4408_v20, %v7791_v49 }
 0x409   : > { %v4410_v61 = vpop.permute.xlu1 %4409 }
 0x40a   : > { %v4478_v2 = vmul.f32 %v4410_v61, %v7794_v22  ;;  %4567 = vrot.lane.b32.xlu0 %v4477_v4, %s5654_s25  ;;  %v8326_v4 = vld [vmem:[#allocation19_spill] sm:$0xff] }
 0x40b   : > { %v4404_v63 = vpop.permute.xlu0 %4403 }
 0x40c   : > { %v4475_v56 = vmul.f32 %v4404_v63, %v7798_v18  ;;  %4569 = vrot.lane.b32.xlu1 %v4478_v2, %s5654_s25  ;;  %v8327_v2 = vld [vmem:[#allocation4_spill] sm:$0xff] }
 0x40d   : > { %v4406_v46 = vpop.permute.xlu1 %4405 }
 0x40e   : > { %v4476_v62 = vmul.f32 %v4406_v46, %v7803_v42  ;;  %4563 = vrot.lane.b32.xlu0 %v4475_v56, %s5654_s25  ;;  %v8328_v46 = vld [vmem:[#allocation3_spill] sm:$0xff] }
 0x40f   : > { %v4396_v58 = vpop.permute.xlu0 %4395 }
 0x410   : > { %v4471_v38 = vmul.f32 %v4396_v58, %v7807_v50  ;;  %4565 = vrot.lane.b32.xlu1 %v4476_v62, %s5654_s25 }
 0x411   : > { %v4398_v49 = vpop.permute.xlu1 %4397 }
 0x412   : > { %v4472_v22 = vmul.f32 %v4398_v49, %v7811_v59  ;;  %4555 = vrot.lane.b32.xlu0 %v4471_v38, %s5654_s25  ;;  %v8329_v38 = vld [vmem:[#allocation5_spill] sm:$0xff] }
 0x414   : > { %4557 = vrot.lane.b32.xlu1 %v4472_v22, %s5654_s25 }
 0x421   : > { %v4416_v18 = vpop.permute.xlu0 %4415 }
 0x423   : > { %v4418_v11 = vpop.permute.xlu1 %4417 }
 0x425   : > { %v4412_v57 = vpop.permute.xlu0 %4411 }
 0x426   : > { %v4479_v42 = vmul.f32 %v4412_v57, %v7819_v1  ;;  %v4481_v1 = vmul.f32 %v4416_v18, %v7835_v36  ;;  %v4482_v36 = vmul.f32 %v4418_v11, %v7852_v7  ;;  %v8330_v18 = vld [vmem:[#allocation12_spill] sm:$0xff] }
 0x427   : > { %v4414_v43 = vpop.permute.xlu1 %4413 }
 0x428   : > { %4571 = vrot.lane.b32.xlu0 %v4479_v42, %s5654_s25  ;;  %v4480_v0 = vmul.f32 %v4414_v43, %v7828_v24  ;;  %v8331_v42 = vld [vmem:[#allocation13_spill] sm:$0xff] }
 0x429   : > { %v4400_v51 = vpop.permute.xlu0 %4399 }
 0x42a   : > { %v4473_v50 = vmul.f32 %v4400_v51, %v7826_v8  ;;  %4573 = vrot.lane.b32.xlu1 %v4480_v0, %s5654_s25 }
 0x42b   : > { %v4402_v8 = vpop.permute.xlu1 %4401 }
 0x42c   : > { %4559 = vrot.lane.b32.xlu0 %v4473_v50, %s5654_s25  ;;  %v4474_v16 = vmul.f32 %v4402_v8, %v7840_v60  ;;  %v8332_v50 = vld [vmem:[#allocation10_spill] sm:$0xff] }
 0x42d   : > { %v4520_v59 = vpop.permute.xlu0 %4519 }
 0x42e   : > { %v4613_v24 = vsel %vm3120_vm13, %v4520_v59, %v7843_v9  ;;  %4561 = vrot.lane.b32.xlu1 %v4474_v16, %s5654_s25  ;;  %v8334_v16 = vld [vmem:[#allocation6_spill] sm:$0xff] }
 0x42f   : > { %4646 = vst.msk [vmem:[%s8102_s27 + $0x10] sm:$0xff] %vm4643_vm0, %v4613_v24  ;;  %v4522_v19 = vpop.permute.xlu1 %4521 }
 0x430   : > { %4575 = vrot.lane.b32.xlu0 %v4481_v1, %s5654_s25  ;;  %v4614_v60 = vsel %vm3120_vm13, %v4522_v19, %v7858_v52  ;;  %v8333_v1 = vld [vmem:[#allocation11_spill] sm:$0xff] }
 0x431   : > { %v4516_v21 = vpop.permute.xlu0 %4515  ;;  %4647 = vst.msk [vmem:[%s8102_s27 + $0x18] sm:$0xff] %vm4643_vm0, %v4614_v60 }
 0x432   : > { %v4611_v26 = vsel %vm3120_vm13, %v4516_v21, %v7855_v41  ;;  %4577 = vrot.lane.b32.xlu1 %v4482_v36, %s5654_s25 }
 0x433   : > { %4644 = vst.msk [vmem:[%s8102_s27] sm:$0xff] %vm4643_vm0, %v4611_v26  ;;  %v4518_v53 = vpop.permute.xlu1 %4517  ;;  %v8335_v26 = vld [vmem:[#allocation7_spill] sm:$0xff] }
 0x434   : > { %v4612_v7 = vsel %vm3120_vm13, %v4518_v53, %v7869_v45 }
 0x435   : > { %v4528_v9 = vpop.permute.xlu0 %4527  ;;  %4645 = vst.msk [vmem:[%s8102_s27 + $0x8] sm:$0xff] %vm4643_vm0, %v4612_v7 }
 0x436   : > { %v4617_v41 = vsel %vm3120_vm13, %v4528_v9, %v7867_v29 }
 0x437   : > { %4650 = vst.msk [vmem:[%s8102_s27 + $0x30] sm:$0xff] %vm4643_vm0, %v4617_v41  ;;  %v4530_v48 = vpop.permute.xlu1 %4529 }
 0x438   : > { %v4618_v17 = vsel %vm3120_vm13, %v4530_v48, %v7879_v3 }
 0x439   : > { %v4524_v52 = vpop.permute.xlu0 %4523  ;;  %4651 = vst.msk [vmem:[%s8102_s27 + $0x38] sm:$0xff] %vm4643_vm0, %v4618_v17 }
 0x43a   : > { %v4615_v55 = vsel %vm3120_vm13, %v4524_v52, %v7877_v5 }
 0x43b   : > { %4648 = vst.msk [vmem:[%s8102_s27 + $0x20] sm:$0xff] %vm4643_vm0, %v4615_v55  ;;  %v4526_v45 = vpop.permute.xlu1 %4525 }
 0x43c   : > { %v4616_v23 = vsel %vm3120_vm13, %v4526_v45, %v7890_v30 }
 0x43d   : > { %v4536_v29 = vpop.permute.xlu0 %4535  ;;  %4649 = vst.msk [vmem:[%s8102_s27 + $0x28] sm:$0xff] %vm4643_vm0, %v4616_v23 }
 0x43e   : > { %v4621_v15 = vsel %vm3120_vm13, %v4536_v29, %v7888_v47  ;;  %v8336_v29 = vld [vmem:[#allocation16_spill] sm:$0xff] }
 0x43f   : > { %4654 = vst.msk [vmem:[%s8102_s27 + $0x50] sm:$0xff] %vm4643_vm0, %v4621_v15  ;;  %v4538_v3 = vpop.permute.xlu1 %4537 }
 0x440   : > { %v4622_v35 = vsel %vm3120_vm13, %v4538_v3, %v7903_v31 }
 0x441   : > { %v4532_v5 = vpop.permute.xlu0 %4531  ;;  %4655 = vst.msk [vmem:[%s8102_s27 + $0x58] sm:$0xff] %vm4643_vm0, %v4622_v35 }
 0x442   : > { %v4619_v27 = vsel %vm3120_vm13, %v4532_v5, %v7900_v10 }
 0x443   : > { %4652 = vst.msk [vmem:[%s8102_s27 + $0x40] sm:$0xff] %vm4643_vm0, %v4619_v27  ;;  %v4534_v30 = vpop.permute.xlu1 %4533 }
 0x444   : > { %v4620_v32 = vsel %vm3120_vm13, %v4534_v30, %v7915_v33 }
 0x445   : > { %v4540_v47 = vpop.permute.xlu0 %4539  ;;  %4653 = vst.msk [vmem:[%s8102_s27 + $0x48] sm:$0xff] %vm4643_vm0, %v4620_v32 }
 0x446   : > { %v4623_v25 = vsel %vm3120_vm13, %v4540_v47, %v7912_v28 }
 0x447   : > { %4656 = vst.msk [vmem:[%s8102_s27 + $0x60] sm:$0xff] %vm4643_vm0, %v4623_v25  ;;  %v4542_v31 = vpop.permute.xlu1 %4541 }
 0x448   : > { %v4624_v14 = vsel %vm3120_vm13, %v4542_v31, %v8324_v44 }
 0x449   : > { %v4544_v10 = vpop.permute.xlu0 %4543  ;;  %4657 = vst.msk [vmem:[%s8102_s27 + $0x68] sm:$0xff] %vm4643_vm0, %v4624_v14 }
 0x44a   : > { %v4625_v37 = vsel %vm3120_vm13, %v4544_v10, %v7924_v39 }
 0x44b   : > { %4658 = vst.msk [vmem:[%s8102_s27 + $0x70] sm:$0xff] %vm4643_vm0, %v4625_v37  ;;  %v4546_v33 = vpop.permute.xlu1 %4545 }
 0x44c   : > { %v4626_v61 = vsel %vm3120_vm13, %v4546_v33, %v8326_v4 }
 0x44d   : > { %v4548_v28 = vpop.permute.xlu0 %4547  ;;  %4659 = vst.msk [vmem:[%s8102_s27 + $0x78] sm:$0xff] %vm4643_vm0, %v4626_v61 }
 0x44e   : > { %v4627_v20 = vsel %vm3120_vm13, %v4548_v28, %v8325_v40 }
 0x44f   : > { %4660 = vst.msk [vmem:[%s8102_s27 + $0x80] sm:$0xff] %vm4643_vm0, %v4627_v20  ;;  %v4550_v39 = vpop.permute.xlu1 %4549 }
 0x450   : > { %v4628_v63 = vsel %vm3120_vm13, %v4550_v39, %v8327_v2 }
 0x451   : > { %4661 = vst.msk [vmem:[%s8102_s27 + $0x88] sm:$0xff] %vm4643_vm0, %v4628_v63 }
 0x45f   : > { %v4552_v56 = vpop.permute.xlu0 %4551 }
 0x460   : > { %v4629_v62 = vsel %vm3120_vm13, %v4552_v56, %v8328_v46 }
 0x461   : > { %4662 = vst.msk [vmem:[%s8102_s27 + $0x90] sm:$0xff] %vm4643_vm0, %v4629_v62  ;;  %v4554_v58 = vpop.permute.xlu1 %4553 }
 0x462   : > { %v4630_v49 = vsel %vm3120_vm13, %v4554_v58, %v8329_v38 }
 0x463   : > { %4663 = vst.msk [vmem:[%s8102_s27 + $0x98] sm:$0xff] %vm4643_vm0, %v4630_v49 }
 0x47c   : > { %v4568_v22 = vpop.permute.xlu0 %4567 }
 0x47d   : > { %v4637_v57 = vsel %vm3120_vm13, %v4568_v22, %v8330_v18 }
 0x47e   : > { %4670 = vst.msk [vmem:[%s8102_s27 + $0xd0] sm:$0xff] %vm4643_vm0, %v4637_v57  ;;  %v4570_v11 = vpop.permute.xlu1 %4569 }
 0x47f   : > { %v4638_v51 = vsel %vm3120_vm13, %v4570_v11, %v8331_v42 }
 0x480   : > { %4671 = vst.msk [vmem:[%s8102_s27 + $0xd8] sm:$0xff] %vm4643_vm0, %v4638_v51  ;;  %v4564_v43 = vpop.permute.xlu0 %4563 }
 0x481   : > { %v4635_v0 = vsel %vm3120_vm13, %v4564_v43, %v8332_v50 }
 0x482   : > { %4668 = vst.msk [vmem:[%s8102_s27 + $0xc0] sm:$0xff] %vm4643_vm0, %v4635_v0  ;;  %v4566_v59 = vpop.permute.xlu1 %4565 }
 0x483   : > { %v4636_v8 = vsel %vm3120_vm13, %v4566_v59, %v8333_v1 }
 0x484   : > { %4669 = vst.msk [vmem:[%s8102_s27 + $0xc8] sm:$0xff] %vm4643_vm0, %v4636_v8  ;;  %v4556_v24 = vpop.permute.xlu0 %4555 }
 0x485   : > { %v4631_v21 = vsel %vm3120_vm13, %v4556_v24, %v8334_v16 }
 0x486   : > { %4664 = vst.msk [vmem:[%s8102_s27 + $0xa0] sm:$0xff] %vm4643_vm0, %v4631_v21  ;;  %v4558_v19 = vpop.permute.xlu1 %4557 }
 0x487   : > { %v4632_v36 = vsel %vm3120_vm13, %v4558_v19, %v8335_v26 }
 0x488   : > { %4665 = vst.msk [vmem:[%s8102_s27 + $0xa8] sm:$0xff] %vm4643_vm0, %v4632_v36 }
 0x49a   : > { %v4572_v60 = vpop.permute.xlu0 %4571 }
 0x49b   : > { %v4639_v9 = vsel %vm3120_vm13, %v4572_v60, %v8010_v12 }
 0x49c   : > { %4672 = vst.msk [vmem:[%s8102_s27 + $0xe0] sm:$0xff] %vm4643_vm0, %v4639_v9  ;;  %v4574_v41 = vpop.permute.xlu1 %4573 }
 0x49d   : > { %v4640_v52 = vsel %vm3120_vm13, %v4574_v41, %v8024_v54 }
 0x49e   : > { %v4560_v53 = vpop.permute.xlu0 %4559  ;;  %4673 = vst.msk [vmem:[%s8102_s27 + $0xe8] sm:$0xff] %vm4643_vm0, %v4640_v52 }
 0x49f   : > { %v4633_v7 = vsel %vm3120_vm13, %v4560_v53, %v8022_v34 }
 0x4a0   : > { %4666 = vst.msk [vmem:[%s8102_s27 + $0xb0] sm:$0xff] %vm4643_vm0, %v4633_v7  ;;  %v4562_v55 = vpop.permute.xlu1 %4561 }
 0x4a1   : > { %v4634_v17 = vsel %vm3120_vm13, %v4562_v55, %v8031_v13 }
 0x4a2   : > { %v4576_v48 = vpop.permute.xlu0 %4575  ;;  %4667 = vst.msk [vmem:[%s8102_s27 + $0xb8] sm:$0xff] %vm4643_vm0, %v4634_v17 }
 0x4a3   : > { %v4641_v12 = vsel %vm3120_vm13, %v4576_v48, %v8008_v6 }
 0x4a4   : > { %4674 = vst.msk [vmem:[%s8102_s27 + $0xf0] sm:$0xff] %vm4643_vm0, %v4641_v12  ;;  %v4578_v34 = vpop.permute.xlu1 %4577 }
 0x4a5   : > { %v4642_v54 = vsel %vm3120_vm13, %v4578_v34, %v8336_v29 }
 0x4a6   : > { %4675 = vst.msk [vmem:[%s8102_s27 + $0xf8] sm:$0xff] %vm4643_vm0, %v4642_v54 }
 0x4a7 PF: > { %s14_s17 = sadd.s32 1, %s5644_s17   ;;  %s8337_s15 = smov %s5640_s16 }
 0x4a8   : > { %p11_p5 = scmp.ge.s32.totalorder %s14_s17, 4   ;;  %s8338_s16 = smov %s8340_s18 }
 0x4aa   :  { %13 = sbr.rel (!%p11_p5) target bundleno = 2 (0x2), region = 72 }

</bundles_post_ra>
